<compile_context>
chip_gen: v7x
topology: tpu7x:2x2x1
jax: 0.10.0
libtpu: 0.0.40
codegen_flags: <defaults>
</compile_context>

<pallas_src>
import functools

import jax
import jax.numpy as jnp
from jax import lax
from jax.experimental import pallas as pl
from jax.experimental.pallas import tpu as pltpu

# Module constants (STDPLinear.__init__ defaults and module-level `plus`)
DECAY = 0.99         # LIF decay
DECAY_TRACE = 0.99   # STDP trace decay
OFFSET = 0.3         # STDP offset
INH = 1.625          # lateral inhibition strength (STDPLinear default)
PLUS = 0.002         # ATB threshold increment
THR_CAP = 350.0      # ATB threshold cap


def _round_up(v, m):
    return ((v + m - 1) // m) * m


def _pick_chunk(T, Bp, INp, OUTp, budget_bytes=4 << 20):
    """Largest divisor of T (<=32) whose streamed chunk fits a small VMEM budget."""
    per_step = Bp * (OUTp * 4 + INp * 2 + OUTp * 2 + INp * 2)  # cur + x + spk + scratch
    cap = max(1, min(T, 32, budget_bytes // max(per_step, 1)))
    for u in range(int(cap), 0, -1):
        if T % u == 0:
            return u
    return 1


def _stdp_linear_kernel(cur_ref, x_ref, thr0_ref, mem0_ref, trace0_ref,
                        spk_ref, thr_ref, mem_ref, trace_ref, dw_ref,
                        tmo_ref,
                        *, thre_init, n_out, n_batch, inv_batch, steps, bp):
    """U = `steps` time steps of STDPLinear.forward per grid iteration.

    thr/mem/trace/dw output blocks use a constant block index, so they stay
    VMEM-resident across the grid and carry the state; `cur`/`x` stream in per
    chunk and `spk` streams out per chunk.
    """
    t = pl.program_id(0)

    # ---- load initial state / zero the dw accumulator on the first chunk ----
    @pl.when(t == 0)
    def _init():
        thr_ref[...] = thr0_ref[...]
        mem_ref[...] = mem0_ref[...]
        trace_ref[...] = trace0_ref[...]
        dw_ref[...] = jnp.zeros_like(dw_ref)

    outp = thr_ref.shape[-1]
    neg = jnp.float32(-1e30)

    # Hoisted constants (JAX does not CSE broadcast_in_dim — keep out of the loop).
    col = lax.broadcasted_iota(jnp.int32, (bp, outp), 1)
    row = lax.broadcasted_iota(jnp.int32, (bp, outp), 0)
    out_valid = col < n_out            # mask zero-padded OUT columns
    batch_valid = row < n_batch        # mask zero-padded batch rows
    valid = out_valid & batch_valid

    chunk_spiked = jnp.float32(0.0)

    for u in range(steps):             # statically unrolled inner time loop
        sl = pl.ds(u * bp, bp)
        current = cur_ref[sl, :]                        # (Bp, OUTp) f32, precomputed x@W^T
        x = x_ref[sl, :].astype(jnp.float32)            # (Bp, INp)  spikes

        # ---- adaptive threshold init (self.thre_init): thr = 3 * max over batch ----
        if thre_init and u == 0:
            @pl.when(t == 0)
            def _thr_init():
                cm = jnp.where(batch_valid, current, neg)
                thr_ref[...] = jnp.max(cm, axis=0, keepdims=True) * 3.0

        thr = thr_ref[...]                              # (1, OUTp)

        # ---- LIFSTDP membrane update ----
        # TODO(synk): LIFSTDP class is not in the provided source; standard BrainCog
        # semantics assumed: mem = mem*decay + I; spike = (mem - thr) > 0; mem *= (1-spike).
        mem = mem_ref[...] * DECAY + current
        spike = ((mem > thr) & valid).astype(jnp.float32)
        mem = mem * (1.0 - spike)

        # ---- WTA (k=1): exactly one spiking winner per sample ----
        # TODO(synk): torch WTALayer breaks ties among spiking neurons with torch.rand;
        # here the spiking neuron with the largest current wins, ties -> lowest index.
        masked_cur = jnp.where(spike > 0.0, current, neg)
        row_max = jnp.max(masked_cur, axis=1, keepdims=True)        # (Bp, 1)
        cand = jnp.where(masked_cur >= row_max, col, jnp.int32(outp))
        winner = jnp.min(cand, axis=1, keepdims=True)
        wta = jnp.where(col == winner, spike, 0.0)                  # (Bp, OUTp)
        any_spike = (jnp.max(row_max) > jnp.float32(-1e29)).astype(jnp.float32)

        # ---- adaptive lateral inhibition (mode='max'), only when something spiked ----
        # TODO(synk): LateralInhibition class not provided; assumed
        # mem -= inh * current.max(dim=1, keepdim=True) * (1 - wta_spike).
        cur_for_max = jnp.where(out_valid, current, neg)
        inh_term = INH * jnp.max(cur_for_max, axis=1, keepdims=True) * (1.0 - wta)
        mem = mem - any_spike * inh_term                 # scalar gate, no full-array where

        # ---- ATB (getthresh): thr += (plus*current*spikes).sum(0); global cap shift ----
        thr_new = thr + jnp.sum(PLUS * current * wta, axis=0, keepdims=True)
        over = jnp.maximum(jnp.max(thr_new) - THR_CAP, 0.0)
        thr_new = thr_new - over

        # ---- STDP trace (zero-init state reproduces first-call trace = x.clone()) ----
        trace_new = trace_ref[...] * DECAY_TRACE + x     # (Bp, INp) f32

        # ---- write-backs / stage chunk operands for the dw matmul ----
        spk_ref[sl, :] = wta.astype(spk_ref.dtype)                       # bf16, exact 0/1
        tmo_ref[sl, :] = (trace_new - OFFSET).astype(tmo_ref.dtype)      # bf16 MXU operand
        thr_ref[...] = thr_new
        mem_ref[...] = mem
        trace_ref[...] = trace_new
        chunk_spiked = jnp.maximum(chunk_spiked, any_spike)

    # ---- chunked dw contraction: dw^T += (trace - offset)^T @ wta over K = U*Bp rows.
    # Skipped entirely when the whole chunk was silent (wta == 0 -> dw_step == 0 exactly).
    @pl.when(chunk_spiked > 0.0)
    def _dw_update():
        dw_step = lax.dot_general(
            tmo_ref[...], spk_ref[...],
            (((0,), (0,)), ((), ())),
            preferred_element_type=jnp.float32) * inv_batch              # (INp, OUTp)
        dw_ref[...] = dw_ref[...] + dw_step


@functools.partial(jax.jit, static_argnames=("thre_init",))
def stdp_linear_forward(x_seq, weight, threshold, mem, trace, *, thre_init=True):
    """Fused T-step STDPLinear forward.

    x_seq:     (T, B, IN) spike input, one forward() call per step
    weight:    (OUT, IN)  nn.Linear.weight layout
    threshold: (1, OUT)   lif.threshold state
    mem:       (B, OUT)   lif.mem state
    trace:     (B, IN)    STDP trace state
    Returns (spikes (T,B,OUT), new_threshold, new_mem, new_trace, dw (OUT,IN))
    where dw is the accumulated self.dw over the T steps.
    """
    T, B, IN = x_seq.shape
    OUT = weight.shape[0]
    INp = _round_up(IN, 128)
    OUTp = _round_up(OUT, 128)
    Bp = _round_up(B, 8)
    U = _pick_chunk(T, Bp, INp, OUTp)

    # Pad to lane/sublane-dense shapes; cast MXU operands to bf16 (x is 0/1 so exact).
    xp = jnp.pad(x_seq.astype(jnp.float32),
                 ((0, 0), (0, Bp - B), (0, INp - IN))).astype(jnp.bfloat16)
    x_flat = xp.reshape(T * Bp, INp)
    w_t = jnp.pad(weight.astype(jnp.float32),
                  ((0, OUTp - OUT), (0, INp - IN))).T.astype(jnp.bfloat16)   # (INp, OUTp)

    # Hoisted time-invariant forward matmul: one large-M MXU contraction outside
    # the kernel (M = T*Bp instead of B); its f32 result is streamed per chunk.
    cur_all = jnp.dot(x_flat, w_t, preferred_element_type=jnp.float32)       # (T*Bp, OUTp)

    thr_p = jnp.pad(jnp.reshape(threshold, (1, OUT)).astype(jnp.float32),
                    ((0, 0), (0, OUTp - OUT)))
    mem_p = jnp.pad(mem.astype(jnp.float32), ((0, Bp - B), (0, OUTp - OUT)))
    trace_p = jnp.pad(trace.astype(jnp.float32), ((0, Bp - B), (0, INp - IN)))

    out_shapes = (
        jax.ShapeDtypeStruct((T * Bp, OUTp), jnp.bfloat16),  # spikes (flattened T x Bp)
        jax.ShapeDtypeStruct((1, OUTp), jnp.float32),        # lif.threshold
        jax.ShapeDtypeStruct((Bp, OUTp), jnp.float32),       # lif.mem
        jax.ShapeDtypeStruct((Bp, INp), jnp.float32),        # stdp trace
        jax.ShapeDtypeStruct((INp, OUTp), jnp.float32),      # dw (transposed)
    )

    kernel = functools.partial(_stdp_linear_kernel,
                               thre_init=thre_init,
                               n_out=OUT, n_batch=B,
                               inv_batch=1.0 / B,
                               steps=U, bp=Bp)

    # Explicit VMEM budget (default scoped limit is 16/32 MiB on v5e/v6e/v7x).
    vmem_bytes = (
        INp * OUTp * 4                       # dw accumulator (resident)
        + 2 * U * Bp * OUTp * 4              # current stream (double buffered)
        + 2 * U * Bp * INp * 2               # x stream
        + 2 * U * Bp * OUTp * 2              # spike stream out
        + U * Bp * INp * 2                   # (trace - offset) scratch
        + 4 * (Bp * OUTp + Bp * INp + OUTp) * 4   # state blocks (in + out)
    )
    vmem_limit = int(min(max(2 * vmem_bytes, 16 << 20), 64 << 20))

    # TODO(synk): for layers where dw (INp*OUTp f32) alone exceeds the v7x 64 MiB
    # VMEM, add OUT tiling with a two-pass WTA/threshold epilogue; unnecessary at
    # these layer sizes.
    spk, thr_o, mem_o, trace_o, dw_o = pl.pallas_call(
        kernel,
        out_shape=out_shapes,
        grid=(T // U,),
        in_specs=[
            pl.BlockSpec((U * Bp, OUTp), lambda t: (t, 0)),   # current: per-chunk stream
            pl.BlockSpec((U * Bp, INp), lambda t: (t, 0)),    # x: per-chunk stream
            pl.BlockSpec((1, OUTp), lambda t: (0, 0)),        # threshold init
            pl.BlockSpec((Bp, OUTp), lambda t: (0, 0)),       # mem init
            pl.BlockSpec((Bp, INp), lambda t: (0, 0)),        # trace init
        ],
        out_specs=(
            pl.BlockSpec((U * Bp, OUTp), lambda t: (t, 0)),   # spikes per chunk
            pl.BlockSpec((1, OUTp), lambda t: (0, 0)),        # threshold (resident)
            pl.BlockSpec((Bp, OUTp), lambda t: (0, 0)),       # mem (resident)
            pl.BlockSpec((Bp, INp), lambda t: (0, 0)),        # trace (resident)
            pl.BlockSpec((INp, OUTp), lambda t: (0, 0)),      # dw accumulator (resident)
        ),
        scratch_shapes=[pltpu.VMEM((U * Bp, INp), jnp.bfloat16)],  # staged (trace - offset)
        input_output_aliases={2: 1, 3: 2, 4: 3},              # donate state buffers
        compiler_params=pltpu.CompilerParams(
            dimension_semantics=("arbitrary",),               # chunks are sequential
            vmem_limit_bytes=vmem_limit),
    )(cur_all, x_flat, thr_p, mem_p, trace_p)

    # Strip padding; restore (T, B, OUT) spike layout; dw back to torch (OUT, IN).
    spikes = spk.reshape(T, Bp, OUTp)[:, :B, :OUT].astype(jnp.float32)
    return (spikes,
            thr_o[:, :OUT],
            mem_o[:B, :OUT],
            trace_o[:B, :IN],
            dw_o[:IN, :OUT].T)


if __name__ == "__main__":
    T, B, IN, OUT = 10, 8, 96, 120   # small, non-128-aligned to exercise padding

    key = jax.random.PRNGKey(0)
    kx, kw = jax.random.split(key)

    # Per-step input spikes (T, B, C), 0/1
    x_seq = (jax.random.uniform(kx, (T, B, IN)) < 0.5).astype(jnp.float32)

    # Deterministic weight init + normweight(): clamp to [0,1], then scale each
    # row so its max equals 0.1 (w /= w.max(1, keepdim=True) / 0.1)
    w = jax.random.uniform(kw, (OUT, IN), minval=0.0, maxval=1.0)
    w = jnp.clip(w, 0.0, 1.0)
    w = w / (jnp.max(w, axis=1, keepdims=True) / 0.1)

    # Initial state (lif.mem = 0, trace = None -> zeros, threshold set on first call)
    threshold = jnp.zeros((1, OUT), jnp.float32)
    mem = jnp.zeros((B, OUT), jnp.float32)
    trace = jnp.zeros((B, IN), jnp.float32)

    spikes, threshold, mem, trace, dw = stdp_linear_forward(
        x_seq, w, threshold, mem, trace, thre_init=True)

    jax.block_until_ready((spikes, threshold, mem, trace, dw))
    print("KERNEL_OK")
</pallas_src>

<mosaic_0001>
module attributes {stable_mosaic.version = 11 : i64} {
  func.func @_stdp_linear_kernel(%arg0: i32, %arg1: memref<80x128xf32, #tpu.memory_space<vmem>>, %arg2: memref<80x128xbf16, #tpu.memory_space<vmem>>, %arg3: memref<1x128xf32, #tpu.memory_space<vmem>>, %arg4: memref<8x128xf32, #tpu.memory_space<vmem>>, %arg5: memref<8x128xf32, #tpu.memory_space<vmem>>, %arg6: memref<80x128xbf16, #tpu.memory_space<vmem>>, %arg7: memref<1x128xf32, #tpu.memory_space<vmem>>, %arg8: memref<8x128xf32, #tpu.memory_space<vmem>>, %arg9: memref<8x128xf32, #tpu.memory_space<vmem>>, %arg10: memref<128x128xf32, #tpu.memory_space<vmem>>, %arg11: memref<80x128xbf16, #tpu.memory_space<vmem>>) attributes {dimension_semantics = [#tpu.dimension_semantics<arbitrary>], iteration_bounds = array<i64: 1>, scalar_prefetch = 0 : i64, scratch_operands = 1 : i64, tpu.core_type = #tpu.core_type<tc>, window_params = [{transform_indices = @transform_0, window_bounds = array<i64: 80, 128>}, {transform_indices = @transform_1, window_bounds = array<i64: 80, 128>}, {pipeline_mode = #tpu.pipeline_mode<synchronous>, transform_indices = @transform_2, window_bounds = array<i64: 1, 128>}, {pipeline_mode = #tpu.pipeline_mode<synchronous>, transform_indices = @transform_3, window_bounds = array<i64: 8, 128>}, {pipeline_mode = #tpu.pipeline_mode<synchronous>, transform_indices = @transform_4, window_bounds = array<i64: 8, 128>}, {transform_indices = @transform_5, window_bounds = array<i64: 80, 128>}, {pipeline_mode = #tpu.pipeline_mode<synchronous>, transform_indices = @transform_6, window_bounds = array<i64: 1, 128>}, {pipeline_mode = #tpu.pipeline_mode<synchronous>, transform_indices = @transform_7, window_bounds = array<i64: 8, 128>}, {pipeline_mode = #tpu.pipeline_mode<synchronous>, transform_indices = @transform_8, window_bounds = array<i64: 8, 128>}, {pipeline_mode = #tpu.pipeline_mode<synchronous>, transform_indices = @transform_9, window_bounds = array<i64: 128, 128>}]} {
    %c0_i32 = arith.constant 0 : i32
    %0 = arith.cmpi eq, %arg0, %c0_i32 : i32
    %1 = arith.extui %0 : i1 to i32
    %c0_i32_0 = arith.constant 0 : i32
    %2 = arith.cmpi ne, %1, %c0_i32_0 : i32
    scf.if %2 {
      %c0_405 = arith.constant 0 : index
      %c0_406 = arith.constant 0 : index
      %816 = vector.load %arg3[%c0_405, %c0_406] : memref<1x128xf32, #tpu.memory_space<vmem>>, vector<1x128xf32>
      %c0_407 = arith.constant 0 : index
      %c0_408 = arith.constant 0 : index
      %817 = vector.load %arg7[%c0_407, %c0_408] : memref<1x128xf32, #tpu.memory_space<vmem>>, vector<1x128xf32>
      tpu.vector_store %arg7[%c0_407, %c0_408], %816 {strides = array<i32>} : memref<1x128xf32, #tpu.memory_space<vmem>>, vector<1x128xf32>,
      %c0_409 = arith.constant 0 : index
      %c0_410 = arith.constant 0 : index
      %818 = vector.load %arg4[%c0_409, %c0_410] : memref<8x128xf32, #tpu.memory_space<vmem>>, vector<8x128xf32>
      %c0_411 = arith.constant 0 : index
      %c0_412 = arith.constant 0 : index
      %819 = vector.load %arg8[%c0_411, %c0_412] : memref<8x128xf32, #tpu.memory_space<vmem>>, vector<8x128xf32>
      tpu.vector_store %arg8[%c0_411, %c0_412], %818 {strides = array<i32>} : memref<8x128xf32, #tpu.memory_space<vmem>>, vector<8x128xf32>,
      %c0_413 = arith.constant 0 : index
      %c0_414 = arith.constant 0 : index
      %820 = vector.load %arg5[%c0_413, %c0_414] : memref<8x128xf32, #tpu.memory_space<vmem>>, vector<8x128xf32>
      %c0_415 = arith.constant 0 : index
      %c0_416 = arith.constant 0 : index
      %821 = vector.load %arg9[%c0_415, %c0_416] : memref<8x128xf32, #tpu.memory_space<vmem>>, vector<8x128xf32>
      tpu.vector_store %arg9[%c0_415, %c0_416], %820 {strides = array<i32>} : memref<8x128xf32, #tpu.memory_space<vmem>>, vector<8x128xf32>,
      %cst_417 = arith.constant 0.000000e+00 : f32
      %822 = vector.broadcast %cst_417 : f32 to vector<128x128xf32>
      %c0_418 = arith.constant 0 : index
      %c0_419 = arith.constant 0 : index
      %823 = vector.load %arg10[%c0_418, %c0_419] : memref<128x128xf32, #tpu.memory_space<vmem>>, vector<128x128xf32>
      tpu.vector_store %arg10[%c0_418, %c0_419], %822 {strides = array<i32>} : memref<128x128xf32, #tpu.memory_space<vmem>>, vector<128x128xf32>,
    } else {
    }
    %3 = tpu.iota {dimensions = array<i32: 1>} : vector<8x128xi32>
    %4 = tpu.iota {dimensions = array<i32: 0>} : vector<8x128xi32>
    %c120_i32 = arith.constant 120 : i32
    %5 = vector.broadcast %c120_i32 : i32 to vector<8x128xi32>
    %6 = arith.cmpi slt, %3, %5 : vector<8x128xi32>
    %c8_i32 = arith.constant 8 : i32
    %7 = vector.broadcast %c8_i32 : i32 to vector<8x128xi32>
    %8 = arith.cmpi slt, %4, %7 : vector<8x128xi32>
    %9 = arith.andi %6, %8 : vector<8x128xi1>
    %c0 = arith.constant 0 : index
    %c0_1 = arith.constant 0 : index
    %10 = vector.load %arg1[%c0, %c0_1] : memref<80x128xf32, #tpu.memory_space<vmem>>, vector<8x128xf32>
    %c0_2 = arith.constant 0 : index
    %c0_3 = arith.constant 0 : index
    %11 = vector.load %arg2[%c0_2, %c0_3] : memref<80x128xbf16, #tpu.memory_space<vmem>>, vector<8x128xbf16>
    %12 = arith.extf %11 : vector<8x128xbf16> to vector<8x128xf32>
    %c0_i32_4 = arith.constant 0 : i32
    %13 = arith.cmpi eq, %arg0, %c0_i32_4 : i32
    %14 = arith.extui %13 : i1 to i32
    %cst = arith.constant -1.000000e+30 : f32
    %c0_i32_5 = arith.constant 0 : i32
    %15 = arith.cmpi ne, %14, %c0_i32_5 : i32
    scf.if %15 {
      %816 = vector.broadcast %cst : f32 to vector<8x128xf32>
      %817 = arith.select %8, %10, %816 : vector<8x128xi1>, vector<8x128xf32>
      %cst_405 = arith.constant dense<0xFF800000> : vector<128xf32>
      %818 = vector.multi_reduction <maximumf>, %817, %cst_405 [0] : vector<8x128xf32> to vector<128xf32>
      %819 = vector.shape_cast %818 : vector<128xf32> to vector<1x128xf32>
      %cst_406 = arith.constant 3.000000e+00 : f32
      %820 = vector.broadcast %cst_406 : f32 to vector<1x128xf32>
      %821 = arith.mulf %819, %820 : vector<1x128xf32>
      %c0_407 = arith.constant 0 : index
      %c0_408 = arith.constant 0 : index
      %822 = vector.load %arg7[%c0_407, %c0_408] : memref<1x128xf32, #tpu.memory_space<vmem>>, vector<1x128xf32>
      tpu.vector_store %arg7[%c0_407, %c0_408], %821 {strides = array<i32>} : memref<1x128xf32, #tpu.memory_space<vmem>>, vector<1x128xf32>,
    } else {
    }
    %c0_6 = arith.constant 0 : index
    %c0_7 = arith.constant 0 : index
    %16 = vector.load %arg7[%c0_6, %c0_7] : memref<1x128xf32, #tpu.memory_space<vmem>>, vector<1x128xf32>
    %c0_8 = arith.constant 0 : index
    %c0_9 = arith.constant 0 : index
    %17 = vector.load %arg8[%c0_8, %c0_9] : memref<8x128xf32, #tpu.memory_space<vmem>>, vector<8x128xf32>
    %cst_10 = arith.constant 9.900000e-01 : f32
    %18 = vector.broadcast %cst_10 : f32 to vector<8x128xf32>
    %19 = arith.mulf %17, %18 : vector<8x128xf32>
    %20 = arith.addf %19, %10 : vector<8x128xf32>
    %21 = vector.broadcast %16 : vector<1x128xf32> to vector<8x128xf32>
    %22 = arith.cmpf ogt, %20, %21 : vector<8x128xf32>
    %23 = arith.andi %22, %9 : vector<8x128xi1>
    %24 = arith.extui %23 : vector<8x128xi1> to vector<8x128xi32>
    %25 = arith.sitofp %24 : vector<8x128xi32> to vector<8x128xf32>
    %cst_11 = arith.constant 1.000000e+00 : f32
    %26 = vector.broadcast %cst_11 : f32 to vector<8x128xf32>
    %27 = arith.subf %26, %25 : vector<8x128xf32>
    %28 = arith.mulf %20, %27 : vector<8x128xf32>
    %cst_12 = arith.constant 0.000000e+00 : f32
    %29 = vector.broadcast %cst_12 : f32 to vector<8x128xf32>
    %30 = arith.cmpf ogt, %25, %29 : vector<8x128xf32>
    %cst_13 = arith.constant -1.000000e+30 : f32
    %31 = vector.broadcast %cst_13 : f32 to vector<8x128xf32>
    %32 = arith.select %30, %10, %31 : vector<8x128xi1>, vector<8x128xf32>
    %cst_14 = arith.constant dense<0xFF800000> : vector<8xf32>
    %33 = vector.multi_reduction <maximumf>, %32, %cst_14 [1] : vector<8x128xf32> to vector<8xf32>
    %34 = vector.shape_cast %33 : vector<8xf32> to vector<8x1xf32>
    %35 = vector.broadcast %34 : vector<8x1xf32> to vector<8x128xf32>
    %36 = arith.cmpf oge, %32, %35 : vector<8x128xf32>
    %c128_i32 = arith.constant 128 : i32
    %37 = vector.broadcast %c128_i32 : i32 to vector<8x128xi32>
    %38 = arith.select %36, %3, %37 : vector<8x128xi1>, vector<8x128xi32>
    %cst_15 = arith.constant dense<2147483647> : vector<8xi32>
    %39 = vector.multi_reduction <minsi>, %38, %cst_15 [1] : vector<8x128xi32> to vector<8xi32>
    %40 = vector.shape_cast %39 : vector<8xi32> to vector<8x1xi32>
    %41 = vector.broadcast %40 : vector<8x1xi32> to vector<8x128xi32>
    %42 = arith.cmpi eq, %3, %41 : vector<8x128xi32>
    %cst_16 = arith.constant 0.000000e+00 : f32
    %43 = vector.broadcast %cst_16 : f32 to vector<8x128xf32>
    %44 = arith.select %42, %25, %43 : vector<8x128xi1>, vector<8x128xf32>
    %45 = vector.shape_cast %34 : vector<8x1xf32> to vector<1x8x1xf32>
    %cst_17 = arith.constant dense<0xFF800000> : vector<1xf32>
    %46 = vector.multi_reduction <maximumf>, %45, %cst_17 [1, 2] : vector<1x8x1xf32> to vector<1xf32>
    %47 = vector.shape_cast %46 : vector<1xf32> to vector<1x1x1xf32>
    %48 = vector.extract %47[0, 0, 0] : f32 from vector<1x1x1xf32>
    %cst_18 = arith.constant -1.000000e+29 : f32
    %49 = arith.cmpf ogt, %48, %cst_18 : f32
    %50 = arith.extui %49 : i1 to i32
    %51 = arith.sitofp %50 : i32 to f32
    %cst_19 = arith.constant -1.000000e+30 : f32
    %52 = vector.broadcast %cst_19 : f32 to vector<8x128xf32>
    %53 = arith.select %6, %10, %52 : vector<8x128xi1>, vector<8x128xf32>
    %cst_20 = arith.constant dense<0xFF800000> : vector<8xf32>
    %54 = vector.multi_reduction <maximumf>, %53, %cst_20 [1] : vector<8x128xf32> to vector<8xf32>
    %55 = vector.shape_cast %54 : vector<8xf32> to vector<8x1xf32>
    %cst_21 = arith.constant 1.625000e+00 : f32
    %56 = vector.broadcast %cst_21 : f32 to vector<8x1xf32>
    %57 = arith.mulf %56, %55 : vector<8x1xf32>
    %cst_22 = arith.constant 1.000000e+00 : f32
    %58 = vector.broadcast %cst_22 : f32 to vector<8x128xf32>
    %59 = arith.subf %58, %44 : vector<8x128xf32>
    %60 = vector.broadcast %57 : vector<8x1xf32> to vector<8x128xf32>
    %61 = arith.mulf %60, %59 : vector<8x128xf32>
    %62 = vector.broadcast %51 : f32 to vector<8x128xf32>
    %63 = arith.mulf %62, %61 : vector<8x128xf32>
    %64 = arith.subf %28, %63 : vector<8x128xf32>
    %cst_23 = arith.constant 2.000000e-03 : f32
    %65 = vector.broadcast %cst_23 : f32 to vector<8x128xf32>
    %66 = arith.mulf %65, %10 : vector<8x128xf32>
    %67 = arith.mulf %66, %44 : vector<8x128xf32>
    %cst_24 = arith.constant dense<0.000000e+00> : vector<128xf32>
    %68 = vector.multi_reduction <add>, %67, %cst_24 [0] : vector<8x128xf32> to vector<128xf32>
    %69 = vector.shape_cast %68 : vector<128xf32> to vector<1x128xf32>
    %70 = arith.addf %16, %69 : vector<1x128xf32>
    %71 = vector.shape_cast %70 : vector<1x128xf32> to vector<1x1x128xf32>
    %cst_25 = arith.constant dense<0xFF800000> : vector<1xf32>
    %72 = vector.multi_reduction <maximumf>, %71, %cst_25 [1, 2] : vector<1x1x128xf32> to vector<1xf32>
    %73 = vector.shape_cast %72 : vector<1xf32> to vector<1x1x1xf32>
    %74 = vector.extract %73[0, 0, 0] : f32 from vector<1x1x1xf32>
    %cst_26 = arith.constant 3.500000e+02 : f32
    %75 = arith.subf %74, %cst_26 : f32
    %cst_27 = arith.constant 0.000000e+00 : f32
    %76 = arith.maximumf %75, %cst_27 : f32
    %77 = vector.broadcast %76 : f32 to vector<1x128xf32>
    %78 = arith.subf %70, %77 : vector<1x128xf32>
    %c0_28 = arith.constant 0 : index
    %c0_29 = arith.constant 0 : index
    %79 = vector.load %arg9[%c0_28, %c0_29] : memref<8x128xf32, #tpu.memory_space<vmem>>, vector<8x128xf32>
    %cst_30 = arith.constant 9.900000e-01 : f32
    %80 = vector.broadcast %cst_30 : f32 to vector<8x128xf32>
    %81 = arith.mulf %79, %80 : vector<8x128xf32>
    %82 = arith.addf %81, %12 : vector<8x128xf32>
    %83 = arith.truncf %44 : vector<8x128xf32> to vector<8x128xbf16>
    %c0_31 = arith.constant 0 : index
    %c0_32 = arith.constant 0 : index
    %84 = vector.load %arg6[%c0_31, %c0_32] : memref<80x128xbf16, #tpu.memory_space<vmem>>, vector<8x128xbf16>
    tpu.vector_store %arg6[%c0_31, %c0_32], %83 {strides = array<i32>} : memref<80x128xbf16, #tpu.memory_space<vmem>>, vector<8x128xbf16>,
    %cst_33 = arith.constant 3.000000e-01 : f32
    %85 = vector.broadcast %cst_33 : f32 to vector<8x128xf32>
    %86 = arith.subf %82, %85 : vector<8x128xf32>
    %87 = arith.truncf %86 : vector<8x128xf32> to vector<8x128xbf16>
    %c0_34 = arith.constant 0 : index
    %c0_35 = arith.constant 0 : index
    %88 = vector.load %arg11[%c0_34, %c0_35] : memref<80x128xbf16, #tpu.memory_space<vmem>>, vector<8x128xbf16>
    tpu.vector_store %arg11[%c0_34, %c0_35], %87 {strides = array<i32>} : memref<80x128xbf16, #tpu.memory_space<vmem>>, vector<8x128xbf16>,
    %c0_36 = arith.constant 0 : index
    %c0_37 = arith.constant 0 : index
    %89 = vector.load %arg7[%c0_36, %c0_37] : memref<1x128xf32, #tpu.memory_space<vmem>>, vector<1x128xf32>
    tpu.vector_store %arg7[%c0_36, %c0_37], %78 {strides = array<i32>} : memref<1x128xf32, #tpu.memory_space<vmem>>, vector<1x128xf32>,
    %c0_38 = arith.constant 0 : index
    %c0_39 = arith.constant 0 : index
    %90 = vector.load %arg8[%c0_38, %c0_39] : memref<8x128xf32, #tpu.memory_space<vmem>>, vector<8x128xf32>
    tpu.vector_store %arg8[%c0_38, %c0_39], %64 {strides = array<i32>} : memref<8x128xf32, #tpu.memory_space<vmem>>, vector<8x128xf32>,
    %c0_40 = arith.constant 0 : index
    %c0_41 = arith.constant 0 : index
    %91 = vector.load %arg9[%c0_40, %c0_41] : memref<8x128xf32, #tpu.memory_space<vmem>>, vector<8x128xf32>
    tpu.vector_store %arg9[%c0_40, %c0_41], %82 {strides = array<i32>} : memref<8x128xf32, #tpu.memory_space<vmem>>, vector<8x128xf32>,
    %cst_42 = arith.constant 0.000000e+00 : f32
    %92 = arith.maximumf %cst_42, %51 : f32
    %c8 = arith.constant 8 : index
    %c0_43 = arith.constant 0 : index
    %93 = vector.load %arg1[%c8, %c0_43] : memref<80x128xf32, #tpu.memory_space<vmem>>, vector<8x128xf32>
    %c8_44 = arith.constant 8 : index
    %c0_45 = arith.constant 0 : index
    %94 = vector.load %arg2[%c8_44, %c0_45] : memref<80x128xbf16, #tpu.memory_space<vmem>>, vector<8x128xbf16>
    %95 = arith.extf %94 : vector<8x128xbf16> to vector<8x128xf32>
    %c0_46 = arith.constant 0 : index
    %c0_47 = arith.constant 0 : index
    %96 = vector.load %arg7[%c0_46, %c0_47] : memref<1x128xf32, #tpu.memory_space<vmem>>, vector<1x128xf32>
    %c0_48 = arith.constant 0 : index
    %c0_49 = arith.constant 0 : index
    %97 = vector.load %arg8[%c0_48, %c0_49] : memref<8x128xf32, #tpu.memory_space<vmem>>, vector<8x128xf32>
    %cst_50 = arith.constant 9.900000e-01 : f32
    %98 = vector.broadcast %cst_50 : f32 to vector<8x128xf32>
    %99 = arith.mulf %97, %98 : vector<8x128xf32>
    %100 = arith.addf %99, %93 : vector<8x128xf32>
    %101 = vector.broadcast %96 : vector<1x128xf32> to vector<8x128xf32>
    %102 = arith.cmpf ogt, %100, %101 : vector<8x128xf32>
    %103 = arith.andi %102, %9 : vector<8x128xi1>
    %104 = arith.extui %103 : vector<8x128xi1> to vector<8x128xi32>
    %105 = arith.sitofp %104 : vector<8x128xi32> to vector<8x128xf32>
    %cst_51 = arith.constant 1.000000e+00 : f32
    %106 = vector.broadcast %cst_51 : f32 to vector<8x128xf32>
    %107 = arith.subf %106, %105 : vector<8x128xf32>
    %108 = arith.mulf %100, %107 : vector<8x128xf32>
    %cst_52 = arith.constant 0.000000e+00 : f32
    %109 = vector.broadcast %cst_52 : f32 to vector<8x128xf32>
    %110 = arith.cmpf ogt, %105, %109 : vector<8x128xf32>
    %cst_53 = arith.constant -1.000000e+30 : f32
    %111 = vector.broadcast %cst_53 : f32 to vector<8x128xf32>
    %112 = arith.select %110, %93, %111 : vector<8x128xi1>, vector<8x128xf32>
    %cst_54 = arith.constant dense<0xFF800000> : vector<8xf32>
    %113 = vector.multi_reduction <maximumf>, %112, %cst_54 [1] : vector<8x128xf32> to vector<8xf32>
    %114 = vector.shape_cast %113 : vector<8xf32> to vector<8x1xf32>
    %115 = vector.broadcast %114 : vector<8x1xf32> to vector<8x128xf32>
    %116 = arith.cmpf oge, %112, %115 : vector<8x128xf32>
    %c128_i32_55 = arith.constant 128 : i32
    %117 = vector.broadcast %c128_i32_55 : i32 to vector<8x128xi32>
    %118 = arith.select %116, %3, %117 : vector<8x128xi1>, vector<8x128xi32>
    %cst_56 = arith.constant dense<2147483647> : vector<8xi32>
    %119 = vector.multi_reduction <minsi>, %118, %cst_56 [1] : vector<8x128xi32> to vector<8xi32>
    %120 = vector.shape_cast %119 : vector<8xi32> to vector<8x1xi32>
    %121 = vector.broadcast %120 : vector<8x1xi32> to vector<8x128xi32>
    %122 = arith.cmpi eq, %3, %121 : vector<8x128xi32>
    %cst_57 = arith.constant 0.000000e+00 : f32
    %123 = vector.broadcast %cst_57 : f32 to vector<8x128xf32>
    %124 = arith.select %122, %105, %123 : vector<8x128xi1>, vector<8x128xf32>
    %125 = vector.shape_cast %114 : vector<8x1xf32> to vector<1x8x1xf32>
    %cst_58 = arith.constant dense<0xFF800000> : vector<1xf32>
    %126 = vector.multi_reduction <maximumf>, %125, %cst_58 [1, 2] : vector<1x8x1xf32> to vector<1xf32>
    %127 = vector.shape_cast %126 : vector<1xf32> to vector<1x1x1xf32>
    %128 = vector.extract %127[0, 0, 0] : f32 from vector<1x1x1xf32>
    %cst_59 = arith.constant -1.000000e+29 : f32
    %129 = arith.cmpf ogt, %128, %cst_59 : f32
    %130 = arith.extui %129 : i1 to i32
    %131 = arith.sitofp %130 : i32 to f32
    %cst_60 = arith.constant -1.000000e+30 : f32
    %132 = vector.broadcast %cst_60 : f32 to vector<8x128xf32>
    %133 = arith.select %6, %93, %132 : vector<8x128xi1>, vector<8x128xf32>
    %cst_61 = arith.constant dense<0xFF800000> : vector<8xf32>
    %134 = vector.multi_reduction <maximumf>, %133, %cst_61 [1] : vector<8x128xf32> to vector<8xf32>
    %135 = vector.shape_cast %134 : vector<8xf32> to vector<8x1xf32>
    %cst_62 = arith.constant 1.625000e+00 : f32
    %136 = vector.broadcast %cst_62 : f32 to vector<8x1xf32>
    %137 = arith.mulf %136, %135 : vector<8x1xf32>
    %cst_63 = arith.constant 1.000000e+00 : f32
    %138 = vector.broadcast %cst_63 : f32 to vector<8x128xf32>
    %139 = arith.subf %138, %124 : vector<8x128xf32>
    %140 = vector.broadcast %137 : vector<8x1xf32> to vector<8x128xf32>
    %141 = arith.mulf %140, %139 : vector<8x128xf32>
    %142 = vector.broadcast %131 : f32 to vector<8x128xf32>
    %143 = arith.mulf %142, %141 : vector<8x128xf32>
    %144 = arith.subf %108, %143 : vector<8x128xf32>
    %cst_64 = arith.constant 2.000000e-03 : f32
    %145 = vector.broadcast %cst_64 : f32 to vector<8x128xf32>
    %146 = arith.mulf %145, %93 : vector<8x128xf32>
    %147 = arith.mulf %146, %124 : vector<8x128xf32>
    %cst_65 = arith.constant dense<0.000000e+00> : vector<128xf32>
    %148 = vector.multi_reduction <add>, %147, %cst_65 [0] : vector<8x128xf32> to vector<128xf32>
    %149 = vector.shape_cast %148 : vector<128xf32> to vector<1x128xf32>
    %150 = arith.addf %96, %149 : vector<1x128xf32>
    %151 = vector.shape_cast %150 : vector<1x128xf32> to vector<1x1x128xf32>
    %cst_66 = arith.constant dense<0xFF800000> : vector<1xf32>
    %152 = vector.multi_reduction <maximumf>, %151, %cst_66 [1, 2] : vector<1x1x128xf32> to vector<1xf32>
    %153 = vector.shape_cast %152 : vector<1xf32> to vector<1x1x1xf32>
    %154 = vector.extract %153[0, 0, 0] : f32 from vector<1x1x1xf32>
    %cst_67 = arith.constant 3.500000e+02 : f32
    %155 = arith.subf %154, %cst_67 : f32
    %cst_68 = arith.constant 0.000000e+00 : f32
    %156 = arith.maximumf %155, %cst_68 : f32
    %157 = vector.broadcast %156 : f32 to vector<1x128xf32>
    %158 = arith.subf %150, %157 : vector<1x128xf32>
    %c0_69 = arith.constant 0 : index
    %c0_70 = arith.constant 0 : index
    %159 = vector.load %arg9[%c0_69, %c0_70] : memref<8x128xf32, #tpu.memory_space<vmem>>, vector<8x128xf32>
    %cst_71 = arith.constant 9.900000e-01 : f32
    %160 = vector.broadcast %cst_71 : f32 to vector<8x128xf32>
    %161 = arith.mulf %159, %160 : vector<8x128xf32>
    %162 = arith.addf %161, %95 : vector<8x128xf32>
    %163 = arith.truncf %124 : vector<8x128xf32> to vector<8x128xbf16>
    %c8_72 = arith.constant 8 : index
    %c0_73 = arith.constant 0 : index
    %164 = vector.load %arg6[%c8_72, %c0_73] : memref<80x128xbf16, #tpu.memory_space<vmem>>, vector<8x128xbf16>
    tpu.vector_store %arg6[%c8_72, %c0_73], %163 {strides = array<i32>} : memref<80x128xbf16, #tpu.memory_space<vmem>>, vector<8x128xbf16>,
    %cst_74 = arith.constant 3.000000e-01 : f32
    %165 = vector.broadcast %cst_74 : f32 to vector<8x128xf32>
    %166 = arith.subf %162, %165 : vector<8x128xf32>
    %167 = arith.truncf %166 : vector<8x128xf32> to vector<8x128xbf16>
    %c8_75 = arith.constant 8 : index
    %c0_76 = arith.constant 0 : index
    %168 = vector.load %arg11[%c8_75, %c0_76] : memref<80x128xbf16, #tpu.memory_space<vmem>>, vector<8x128xbf16>
    tpu.vector_store %arg11[%c8_75, %c0_76], %167 {strides = array<i32>} : memref<80x128xbf16, #tpu.memory_space<vmem>>, vector<8x128xbf16>,
    %c0_77 = arith.constant 0 : index
    %c0_78 = arith.constant 0 : index
    %169 = vector.load %arg7[%c0_77, %c0_78] : memref<1x128xf32, #tpu.memory_space<vmem>>, vector<1x128xf32>
    tpu.vector_store %arg7[%c0_77, %c0_78], %158 {strides = array<i32>} : memref<1x128xf32, #tpu.memory_space<vmem>>, vector<1x128xf32>,
    %c0_79 = arith.constant 0 : index
    %c0_80 = arith.constant 0 : index
    %170 = vector.load %arg8[%c0_79, %c0_80] : memref<8x128xf32, #tpu.memory_space<vmem>>, vector<8x128xf32>
    tpu.vector_store %arg8[%c0_79, %c0_80], %144 {strides = array<i32>} : memref<8x128xf32, #tpu.memory_space<vmem>>, vector<8x128xf32>,
    %c0_81 = arith.constant 0 : index
    %c0_82 = arith.constant 0 : index
    %171 = vector.load %arg9[%c0_81, %c0_82] : memref<8x128xf32, #tpu.memory_space<vmem>>, vector<8x128xf32>
    tpu.vector_store %arg9[%c0_81, %c0_82], %162 {strides = array<i32>} : memref<8x128xf32, #tpu.memory_space<vmem>>, vector<8x128xf32>,
    %172 = arith.maximumf %92, %131 : f32
    %c16 = arith.constant 16 : index
    %c0_83 = arith.constant 0 : index
    %173 = vector.load %arg1[%c16, %c0_83] : memref<80x128xf32, #tpu.memory_space<vmem>>, vector<8x128xf32>
    %c16_84 = arith.constant 16 : index
    %c0_85 = arith.constant 0 : index
    %174 = vector.load %arg2[%c16_84, %c0_85] : memref<80x128xbf16, #tpu.memory_space<vmem>>, vector<8x128xbf16>
    %175 = arith.extf %174 : vector<8x128xbf16> to vector<8x128xf32>
    %c0_86 = arith.constant 0 : index
    %c0_87 = arith.constant 0 : index
    %176 = vector.load %arg7[%c0_86, %c0_87] : memref<1x128xf32, #tpu.memory_space<vmem>>, vector<1x128xf32>
    %c0_88 = arith.constant 0 : index
    %c0_89 = arith.constant 0 : index
    %177 = vector.load %arg8[%c0_88, %c0_89] : memref<8x128xf32, #tpu.memory_space<vmem>>, vector<8x128xf32>
    %cst_90 = arith.constant 9.900000e-01 : f32
    %178 = vector.broadcast %cst_90 : f32 to vector<8x128xf32>
    %179 = arith.mulf %177, %178 : vector<8x128xf32>
    %180 = arith.addf %179, %173 : vector<8x128xf32>
    %181 = vector.broadcast %176 : vector<1x128xf32> to vector<8x128xf32>
    %182 = arith.cmpf ogt, %180, %181 : vector<8x128xf32>
    %183 = arith.andi %182, %9 : vector<8x128xi1>
    %184 = arith.extui %183 : vector<8x128xi1> to vector<8x128xi32>
    %185 = arith.sitofp %184 : vector<8x128xi32> to vector<8x128xf32>
    %cst_91 = arith.constant 1.000000e+00 : f32
    %186 = vector.broadcast %cst_91 : f32 to vector<8x128xf32>
    %187 = arith.subf %186, %185 : vector<8x128xf32>
    %188 = arith.mulf %180, %187 : vector<8x128xf32>
    %cst_92 = arith.constant 0.000000e+00 : f32
    %189 = vector.broadcast %cst_92 : f32 to vector<8x128xf32>
    %190 = arith.cmpf ogt, %185, %189 : vector<8x128xf32>
    %cst_93 = arith.constant -1.000000e+30 : f32
    %191 = vector.broadcast %cst_93 : f32 to vector<8x128xf32>
    %192 = arith.select %190, %173, %191 : vector<8x128xi1>, vector<8x128xf32>
    %cst_94 = arith.constant dense<0xFF800000> : vector<8xf32>
    %193 = vector.multi_reduction <maximumf>, %192, %cst_94 [1] : vector<8x128xf32> to vector<8xf32>
    %194 = vector.shape_cast %193 : vector<8xf32> to vector<8x1xf32>
    %195 = vector.broadcast %194 : vector<8x1xf32> to vector<8x128xf32>
    %196 = arith.cmpf oge, %192, %195 : vector<8x128xf32>
    %c128_i32_95 = arith.constant 128 : i32
    %197 = vector.broadcast %c128_i32_95 : i32 to vector<8x128xi32>
    %198 = arith.select %196, %3, %197 : vector<8x128xi1>, vector<8x128xi32>
    %cst_96 = arith.constant dense<2147483647> : vector<8xi32>
    %199 = vector.multi_reduction <minsi>, %198, %cst_96 [1] : vector<8x128xi32> to vector<8xi32>
    %200 = vector.shape_cast %199 : vector<8xi32> to vector<8x1xi32>
    %201 = vector.broadcast %200 : vector<8x1xi32> to vector<8x128xi32>
    %202 = arith.cmpi eq, %3, %201 : vector<8x128xi32>
    %cst_97 = arith.constant 0.000000e+00 : f32
    %203 = vector.broadcast %cst_97 : f32 to vector<8x128xf32>
    %204 = arith.select %202, %185, %203 : vector<8x128xi1>, vector<8x128xf32>
    %205 = vector.shape_cast %194 : vector<8x1xf32> to vector<1x8x1xf32>
    %cst_98 = arith.constant dense<0xFF800000> : vector<1xf32>
    %206 = vector.multi_reduction <maximumf>, %205, %cst_98 [1, 2] : vector<1x8x1xf32> to vector<1xf32>
    %207 = vector.shape_cast %206 : vector<1xf32> to vector<1x1x1xf32>
    %208 = vector.extract %207[0, 0, 0] : f32 from vector<1x1x1xf32>
    %cst_99 = arith.constant -1.000000e+29 : f32
    %209 = arith.cmpf ogt, %208, %cst_99 : f32
    %210 = arith.extui %209 : i1 to i32
    %211 = arith.sitofp %210 : i32 to f32
    %cst_100 = arith.constant -1.000000e+30 : f32
    %212 = vector.broadcast %cst_100 : f32 to vector<8x128xf32>
    %213 = arith.select %6, %173, %212 : vector<8x128xi1>, vector<8x128xf32>
    %cst_101 = arith.constant dense<0xFF800000> : vector<8xf32>
    %214 = vector.multi_reduction <maximumf>, %213, %cst_101 [1] : vector<8x128xf32> to vector<8xf32>
    %215 = vector.shape_cast %214 : vector<8xf32> to vector<8x1xf32>
    %cst_102 = arith.constant 1.625000e+00 : f32
    %216 = vector.broadcast %cst_102 : f32 to vector<8x1xf32>
    %217 = arith.mulf %216, %215 : vector<8x1xf32>
    %cst_103 = arith.constant 1.000000e+00 : f32
    %218 = vector.broadcast %cst_103 : f32 to vector<8x128xf32>
    %219 = arith.subf %218, %204 : vector<8x128xf32>
    %220 = vector.broadcast %217 : vector<8x1xf32> to vector<8x128xf32>
    %221 = arith.mulf %220, %219 : vector<8x128xf32>
    %222 = vector.broadcast %211 : f32 to vector<8x128xf32>
    %223 = arith.mulf %222, %221 : vector<8x128xf32>
    %224 = arith.subf %188, %223 : vector<8x128xf32>
    %cst_104 = arith.constant 2.000000e-03 : f32
    %225 = vector.broadcast %cst_104 : f32 to vector<8x128xf32>
    %226 = arith.mulf %225, %173 : vector<8x128xf32>
    %227 = arith.mulf %226, %204 : vector<8x128xf32>
    %cst_105 = arith.constant dense<0.000000e+00> : vector<128xf32>
    %228 = vector.multi_reduction <add>, %227, %cst_105 [0] : vector<8x128xf32> to vector<128xf32>
    %229 = vector.shape_cast %228 : vector<128xf32> to vector<1x128xf32>
    %230 = arith.addf %176, %229 : vector<1x128xf32>
    %231 = vector.shape_cast %230 : vector<1x128xf32> to vector<1x1x128xf32>
    %cst_106 = arith.constant dense<0xFF800000> : vector<1xf32>
    %232 = vector.multi_reduction <maximumf>, %231, %cst_106 [1, 2] : vector<1x1x128xf32> to vector<1xf32>
    %233 = vector.shape_cast %232 : vector<1xf32> to vector<1x1x1xf32>
    %234 = vector.extract %233[0, 0, 0] : f32 from vector<1x1x1xf32>
    %cst_107 = arith.constant 3.500000e+02 : f32
    %235 = arith.subf %234, %cst_107 : f32
    %cst_108 = arith.constant 0.000000e+00 : f32
    %236 = arith.maximumf %235, %cst_108 : f32
    %237 = vector.broadcast %236 : f32 to vector<1x128xf32>
    %238 = arith.subf %230, %237 : vector<1x128xf32>
    %c0_109 = arith.constant 0 : index
    %c0_110 = arith.constant 0 : index
    %239 = vector.load %arg9[%c0_109, %c0_110] : memref<8x128xf32, #tpu.memory_space<vmem>>, vector<8x128xf32>
    %cst_111 = arith.constant 9.900000e-01 : f32
    %240 = vector.broadcast %cst_111 : f32 to vector<8x128xf32>
    %241 = arith.mulf %239, %240 : vector<8x128xf32>
    %242 = arith.addf %241, %175 : vector<8x128xf32>
    %243 = arith.truncf %204 : vector<8x128xf32> to vector<8x128xbf16>
    %c16_112 = arith.constant 16 : index
    %c0_113 = arith.constant 0 : index
    %244 = vector.load %arg6[%c16_112, %c0_113] : memref<80x128xbf16, #tpu.memory_space<vmem>>, vector<8x128xbf16>
    tpu.vector_store %arg6[%c16_112, %c0_113], %243 {strides = array<i32>} : memref<80x128xbf16, #tpu.memory_space<vmem>>, vector<8x128xbf16>,
    %cst_114 = arith.constant 3.000000e-01 : f32
    %245 = vector.broadcast %cst_114 : f32 to vector<8x128xf32>
    %246 = arith.subf %242, %245 : vector<8x128xf32>
    %247 = arith.truncf %246 : vector<8x128xf32> to vector<8x128xbf16>
    %c16_115 = arith.constant 16 : index
    %c0_116 = arith.constant 0 : index
    %248 = vector.load %arg11[%c16_115, %c0_116] : memref<80x128xbf16, #tpu.memory_space<vmem>>, vector<8x128xbf16>
    tpu.vector_store %arg11[%c16_115, %c0_116], %247 {strides = array<i32>} : memref<80x128xbf16, #tpu.memory_space<vmem>>, vector<8x128xbf16>,
    %c0_117 = arith.constant 0 : index
    %c0_118 = arith.constant 0 : index
    %249 = vector.load %arg7[%c0_117, %c0_118] : memref<1x128xf32, #tpu.memory_space<vmem>>, vector<1x128xf32>
    tpu.vector_store %arg7[%c0_117, %c0_118], %238 {strides = array<i32>} : memref<1x128xf32, #tpu.memory_space<vmem>>, vector<1x128xf32>,
    %c0_119 = arith.constant 0 : index
    %c0_120 = arith.constant 0 : index
    %250 = vector.load %arg8[%c0_119, %c0_120] : memref<8x128xf32, #tpu.memory_space<vmem>>, vector<8x128xf32>
    tpu.vector_store %arg8[%c0_119, %c0_120], %224 {strides = array<i32>} : memref<8x128xf32, #tpu.memory_space<vmem>>, vector<8x128xf32>,
    %c0_121 = arith.constant 0 : index
    %c0_122 = arith.constant 0 : index
    %251 = vector.load %arg9[%c0_121, %c0_122] : memref<8x128xf32, #tpu.memory_space<vmem>>, vector<8x128xf32>
    tpu.vector_store %arg9[%c0_121, %c0_122], %242 {strides = array<i32>} : memref<8x128xf32, #tpu.memory_space<vmem>>, vector<8x128xf32>,
    %252 = arith.maximumf %172, %211 : f32
    %c24 = arith.constant 24 : index
    %c0_123 = arith.constant 0 : index
    %253 = vector.load %arg1[%c24, %c0_123] : memref<80x128xf32, #tpu.memory_space<vmem>>, vector<8x128xf32>
    %c24_124 = arith.constant 24 : index
    %c0_125 = arith.constant 0 : index
    %254 = vector.load %arg2[%c24_124, %c0_125] : memref<80x128xbf16, #tpu.memory_space<vmem>>, vector<8x128xbf16>
    %255 = arith.extf %254 : vector<8x128xbf16> to vector<8x128xf32>
    %c0_126 = arith.constant 0 : index
    %c0_127 = arith.constant 0 : index
    %256 = vector.load %arg7[%c0_126, %c0_127] : memref<1x128xf32, #tpu.memory_space<vmem>>, vector<1x128xf32>
    %c0_128 = arith.constant 0 : index
    %c0_129 = arith.constant 0 : index
    %257 = vector.load %arg8[%c0_128, %c0_129] : memref<8x128xf32, #tpu.memory_space<vmem>>, vector<8x128xf32>
    %cst_130 = arith.constant 9.900000e-01 : f32
    %258 = vector.broadcast %cst_130 : f32 to vector<8x128xf32>
    %259 = arith.mulf %257, %258 : vector<8x128xf32>
    %260 = arith.addf %259, %253 : vector<8x128xf32>
    %261 = vector.broadcast %256 : vector<1x128xf32> to vector<8x128xf32>
    %262 = arith.cmpf ogt, %260, %261 : vector<8x128xf32>
    %263 = arith.andi %262, %9 : vector<8x128xi1>
    %264 = arith.extui %263 : vector<8x128xi1> to vector<8x128xi32>
    %265 = arith.sitofp %264 : vector<8x128xi32> to vector<8x128xf32>
    %cst_131 = arith.constant 1.000000e+00 : f32
    %266 = vector.broadcast %cst_131 : f32 to vector<8x128xf32>
    %267 = arith.subf %266, %265 : vector<8x128xf32>
    %268 = arith.mulf %260, %267 : vector<8x128xf32>
    %cst_132 = arith.constant 0.000000e+00 : f32
    %269 = vector.broadcast %cst_132 : f32 to vector<8x128xf32>
    %270 = arith.cmpf ogt, %265, %269 : vector<8x128xf32>
    %cst_133 = arith.constant -1.000000e+30 : f32
    %271 = vector.broadcast %cst_133 : f32 to vector<8x128xf32>
    %272 = arith.select %270, %253, %271 : vector<8x128xi1>, vector<8x128xf32>
    %cst_134 = arith.constant dense<0xFF800000> : vector<8xf32>
    %273 = vector.multi_reduction <maximumf>, %272, %cst_134 [1] : vector<8x128xf32> to vector<8xf32>
    %274 = vector.shape_cast %273 : vector<8xf32> to vector<8x1xf32>
    %275 = vector.broadcast %274 : vector<8x1xf32> to vector<8x128xf32>
    %276 = arith.cmpf oge, %272, %275 : vector<8x128xf32>
    %c128_i32_135 = arith.constant 128 : i32
    %277 = vector.broadcast %c128_i32_135 : i32 to vector<8x128xi32>
    %278 = arith.select %276, %3, %277 : vector<8x128xi1>, vector<8x128xi32>
    %cst_136 = arith.constant dense<2147483647> : vector<8xi32>
    %279 = vector.multi_reduction <minsi>, %278, %cst_136 [1] : vector<8x128xi32> to vector<8xi32>
    %280 = vector.shape_cast %279 : vector<8xi32> to vector<8x1xi32>
    %281 = vector.broadcast %280 : vector<8x1xi32> to vector<8x128xi32>
    %282 = arith.cmpi eq, %3, %281 : vector<8x128xi32>
    %cst_137 = arith.constant 0.000000e+00 : f32
    %283 = vector.broadcast %cst_137 : f32 to vector<8x128xf32>
    %284 = arith.select %282, %265, %283 : vector<8x128xi1>, vector<8x128xf32>
    %285 = vector.shape_cast %274 : vector<8x1xf32> to vector<1x8x1xf32>
    %cst_138 = arith.constant dense<0xFF800000> : vector<1xf32>
    %286 = vector.multi_reduction <maximumf>, %285, %cst_138 [1, 2] : vector<1x8x1xf32> to vector<1xf32>
    %287 = vector.shape_cast %286 : vector<1xf32> to vector<1x1x1xf32>
    %288 = vector.extract %287[0, 0, 0] : f32 from vector<1x1x1xf32>
    %cst_139 = arith.constant -1.000000e+29 : f32
    %289 = arith.cmpf ogt, %288, %cst_139 : f32
    %290 = arith.extui %289 : i1 to i32
    %291 = arith.sitofp %290 : i32 to f32
    %cst_140 = arith.constant -1.000000e+30 : f32
    %292 = vector.broadcast %cst_140 : f32 to vector<8x128xf32>
    %293 = arith.select %6, %253, %292 : vector<8x128xi1>, vector<8x128xf32>
    %cst_141 = arith.constant dense<0xFF800000> : vector<8xf32>
    %294 = vector.multi_reduction <maximumf>, %293, %cst_141 [1] : vector<8x128xf32> to vector<8xf32>
    %295 = vector.shape_cast %294 : vector<8xf32> to vector<8x1xf32>
    %cst_142 = arith.constant 1.625000e+00 : f32
    %296 = vector.broadcast %cst_142 : f32 to vector<8x1xf32>
    %297 = arith.mulf %296, %295 : vector<8x1xf32>
    %cst_143 = arith.constant 1.000000e+00 : f32
    %298 = vector.broadcast %cst_143 : f32 to vector<8x128xf32>
    %299 = arith.subf %298, %284 : vector<8x128xf32>
    %300 = vector.broadcast %297 : vector<8x1xf32> to vector<8x128xf32>
    %301 = arith.mulf %300, %299 : vector<8x128xf32>
    %302 = vector.broadcast %291 : f32 to vector<8x128xf32>
    %303 = arith.mulf %302, %301 : vector<8x128xf32>
    %304 = arith.subf %268, %303 : vector<8x128xf32>
    %cst_144 = arith.constant 2.000000e-03 : f32
    %305 = vector.broadcast %cst_144 : f32 to vector<8x128xf32>
    %306 = arith.mulf %305, %253 : vector<8x128xf32>
    %307 = arith.mulf %306, %284 : vector<8x128xf32>
    %cst_145 = arith.constant dense<0.000000e+00> : vector<128xf32>
    %308 = vector.multi_reduction <add>, %307, %cst_145 [0] : vector<8x128xf32> to vector<128xf32>
    %309 = vector.shape_cast %308 : vector<128xf32> to vector<1x128xf32>
    %310 = arith.addf %256, %309 : vector<1x128xf32>
    %311 = vector.shape_cast %310 : vector<1x128xf32> to vector<1x1x128xf32>
    %cst_146 = arith.constant dense<0xFF800000> : vector<1xf32>
    %312 = vector.multi_reduction <maximumf>, %311, %cst_146 [1, 2] : vector<1x1x128xf32> to vector<1xf32>
    %313 = vector.shape_cast %312 : vector<1xf32> to vector<1x1x1xf32>
    %314 = vector.extract %313[0, 0, 0] : f32 from vector<1x1x1xf32>
    %cst_147 = arith.constant 3.500000e+02 : f32
    %315 = arith.subf %314, %cst_147 : f32
    %cst_148 = arith.constant 0.000000e+00 : f32
    %316 = arith.maximumf %315, %cst_148 : f32
    %317 = vector.broadcast %316 : f32 to vector<1x128xf32>
    %318 = arith.subf %310, %317 : vector<1x128xf32>
    %c0_149 = arith.constant 0 : index
    %c0_150 = arith.constant 0 : index
    %319 = vector.load %arg9[%c0_149, %c0_150] : memref<8x128xf32, #tpu.memory_space<vmem>>, vector<8x128xf32>
    %cst_151 = arith.constant 9.900000e-01 : f32
    %320 = vector.broadcast %cst_151 : f32 to vector<8x128xf32>
    %321 = arith.mulf %319, %320 : vector<8x128xf32>
    %322 = arith.addf %321, %255 : vector<8x128xf32>
    %323 = arith.truncf %284 : vector<8x128xf32> to vector<8x128xbf16>
    %c24_152 = arith.constant 24 : index
    %c0_153 = arith.constant 0 : index
    %324 = vector.load %arg6[%c24_152, %c0_153] : memref<80x128xbf16, #tpu.memory_space<vmem>>, vector<8x128xbf16>
    tpu.vector_store %arg6[%c24_152, %c0_153], %323 {strides = array<i32>} : memref<80x128xbf16, #tpu.memory_space<vmem>>, vector<8x128xbf16>,
    %cst_154 = arith.constant 3.000000e-01 : f32
    %325 = vector.broadcast %cst_154 : f32 to vector<8x128xf32>
    %326 = arith.subf %322, %325 : vector<8x128xf32>
    %327 = arith.truncf %326 : vector<8x128xf32> to vector<8x128xbf16>
    %c24_155 = arith.constant 24 : index
    %c0_156 = arith.constant 0 : index
    %328 = vector.load %arg11[%c24_155, %c0_156] : memref<80x128xbf16, #tpu.memory_space<vmem>>, vector<8x128xbf16>
    tpu.vector_store %arg11[%c24_155, %c0_156], %327 {strides = array<i32>} : memref<80x128xbf16, #tpu.memory_space<vmem>>, vector<8x128xbf16>,
    %c0_157 = arith.constant 0 : index
    %c0_158 = arith.constant 0 : index
    %329 = vector.load %arg7[%c0_157, %c0_158] : memref<1x128xf32, #tpu.memory_space<vmem>>, vector<1x128xf32>
    tpu.vector_store %arg7[%c0_157, %c0_158], %318 {strides = array<i32>} : memref<1x128xf32, #tpu.memory_space<vmem>>, vector<1x128xf32>,
    %c0_159 = arith.constant 0 : index
    %c0_160 = arith.constant 0 : index
    %330 = vector.load %arg8[%c0_159, %c0_160] : memref<8x128xf32, #tpu.memory_space<vmem>>, vector<8x128xf32>
    tpu.vector_store %arg8[%c0_159, %c0_160], %304 {strides = array<i32>} : memref<8x128xf32, #tpu.memory_space<vmem>>, vector<8x128xf32>,
    %c0_161 = arith.constant 0 : index
    %c0_162 = arith.constant 0 : index
    %331 = vector.load %arg9[%c0_161, %c0_162] : memref<8x128xf32, #tpu.memory_space<vmem>>, vector<8x128xf32>
    tpu.vector_store %arg9[%c0_161, %c0_162], %322 {strides = array<i32>} : memref<8x128xf32, #tpu.memory_space<vmem>>, vector<8x128xf32>,
    %332 = arith.maximumf %252, %291 : f32
    %c32 = arith.constant 32 : index
    %c0_163 = arith.constant 0 : index
    %333 = vector.load %arg1[%c32, %c0_163] : memref<80x128xf32, #tpu.memory_space<vmem>>, vector<8x128xf32>
    %c32_164 = arith.constant 32 : index
    %c0_165 = arith.constant 0 : index
    %334 = vector.load %arg2[%c32_164, %c0_165] : memref<80x128xbf16, #tpu.memory_space<vmem>>, vector<8x128xbf16>
    %335 = arith.extf %334 : vector<8x128xbf16> to vector<8x128xf32>
    %c0_166 = arith.constant 0 : index
    %c0_167 = arith.constant 0 : index
    %336 = vector.load %arg7[%c0_166, %c0_167] : memref<1x128xf32, #tpu.memory_space<vmem>>, vector<1x128xf32>
    %c0_168 = arith.constant 0 : index
    %c0_169 = arith.constant 0 : index
    %337 = vector.load %arg8[%c0_168, %c0_169] : memref<8x128xf32, #tpu.memory_space<vmem>>, vector<8x128xf32>
    %cst_170 = arith.constant 9.900000e-01 : f32
    %338 = vector.broadcast %cst_170 : f32 to vector<8x128xf32>
    %339 = arith.mulf %337, %338 : vector<8x128xf32>
    %340 = arith.addf %339, %333 : vector<8x128xf32>
    %341 = vector.broadcast %336 : vector<1x128xf32> to vector<8x128xf32>
    %342 = arith.cmpf ogt, %340, %341 : vector<8x128xf32>
    %343 = arith.andi %342, %9 : vector<8x128xi1>
    %344 = arith.extui %343 : vector<8x128xi1> to vector<8x128xi32>
    %345 = arith.sitofp %344 : vector<8x128xi32> to vector<8x128xf32>
    %cst_171 = arith.constant 1.000000e+00 : f32
    %346 = vector.broadcast %cst_171 : f32 to vector<8x128xf32>
    %347 = arith.subf %346, %345 : vector<8x128xf32>
    %348 = arith.mulf %340, %347 : vector<8x128xf32>
    %cst_172 = arith.constant 0.000000e+00 : f32
    %349 = vector.broadcast %cst_172 : f32 to vector<8x128xf32>
    %350 = arith.cmpf ogt, %345, %349 : vector<8x128xf32>
    %cst_173 = arith.constant -1.000000e+30 : f32
    %351 = vector.broadcast %cst_173 : f32 to vector<8x128xf32>
    %352 = arith.select %350, %333, %351 : vector<8x128xi1>, vector<8x128xf32>
    %cst_174 = arith.constant dense<0xFF800000> : vector<8xf32>
    %353 = vector.multi_reduction <maximumf>, %352, %cst_174 [1] : vector<8x128xf32> to vector<8xf32>
    %354 = vector.shape_cast %353 : vector<8xf32> to vector<8x1xf32>
    %355 = vector.broadcast %354 : vector<8x1xf32> to vector<8x128xf32>
    %356 = arith.cmpf oge, %352, %355 : vector<8x128xf32>
    %c128_i32_175 = arith.constant 128 : i32
    %357 = vector.broadcast %c128_i32_175 : i32 to vector<8x128xi32>
    %358 = arith.select %356, %3, %357 : vector<8x128xi1>, vector<8x128xi32>
    %cst_176 = arith.constant dense<2147483647> : vector<8xi32>
    %359 = vector.multi_reduction <minsi>, %358, %cst_176 [1] : vector<8x128xi32> to vector<8xi32>
    %360 = vector.shape_cast %359 : vector<8xi32> to vector<8x1xi32>
    %361 = vector.broadcast %360 : vector<8x1xi32> to vector<8x128xi32>
    %362 = arith.cmpi eq, %3, %361 : vector<8x128xi32>
    %cst_177 = arith.constant 0.000000e+00 : f32
    %363 = vector.broadcast %cst_177 : f32 to vector<8x128xf32>
    %364 = arith.select %362, %345, %363 : vector<8x128xi1>, vector<8x128xf32>
    %365 = vector.shape_cast %354 : vector<8x1xf32> to vector<1x8x1xf32>
    %cst_178 = arith.constant dense<0xFF800000> : vector<1xf32>
    %366 = vector.multi_reduction <maximumf>, %365, %cst_178 [1, 2] : vector<1x8x1xf32> to vector<1xf32>
    %367 = vector.shape_cast %366 : vector<1xf32> to vector<1x1x1xf32>
    %368 = vector.extract %367[0, 0, 0] : f32 from vector<1x1x1xf32>
    %cst_179 = arith.constant -1.000000e+29 : f32
    %369 = arith.cmpf ogt, %368, %cst_179 : f32
    %370 = arith.extui %369 : i1 to i32
    %371 = arith.sitofp %370 : i32 to f32
    %cst_180 = arith.constant -1.000000e+30 : f32
    %372 = vector.broadcast %cst_180 : f32 to vector<8x128xf32>
    %373 = arith.select %6, %333, %372 : vector<8x128xi1>, vector<8x128xf32>
    %cst_181 = arith.constant dense<0xFF800000> : vector<8xf32>
    %374 = vector.multi_reduction <maximumf>, %373, %cst_181 [1] : vector<8x128xf32> to vector<8xf32>
    %375 = vector.shape_cast %374 : vector<8xf32> to vector<8x1xf32>
    %cst_182 = arith.constant 1.625000e+00 : f32
    %376 = vector.broadcast %cst_182 : f32 to vector<8x1xf32>
    %377 = arith.mulf %376, %375 : vector<8x1xf32>
    %cst_183 = arith.constant 1.000000e+00 : f32
    %378 = vector.broadcast %cst_183 : f32 to vector<8x128xf32>
    %379 = arith.subf %378, %364 : vector<8x128xf32>
    %380 = vector.broadcast %377 : vector<8x1xf32> to vector<8x128xf32>
    %381 = arith.mulf %380, %379 : vector<8x128xf32>
    %382 = vector.broadcast %371 : f32 to vector<8x128xf32>
    %383 = arith.mulf %382, %381 : vector<8x128xf32>
    %384 = arith.subf %348, %383 : vector<8x128xf32>
    %cst_184 = arith.constant 2.000000e-03 : f32
    %385 = vector.broadcast %cst_184 : f32 to vector<8x128xf32>
    %386 = arith.mulf %385, %333 : vector<8x128xf32>
    %387 = arith.mulf %386, %364 : vector<8x128xf32>
    %cst_185 = arith.constant dense<0.000000e+00> : vector<128xf32>
    %388 = vector.multi_reduction <add>, %387, %cst_185 [0] : vector<8x128xf32> to vector<128xf32>
    %389 = vector.shape_cast %388 : vector<128xf32> to vector<1x128xf32>
    %390 = arith.addf %336, %389 : vector<1x128xf32>
    %391 = vector.shape_cast %390 : vector<1x128xf32> to vector<1x1x128xf32>
    %cst_186 = arith.constant dense<0xFF800000> : vector<1xf32>
    %392 = vector.multi_reduction <maximumf>, %391, %cst_186 [1, 2] : vector<1x1x128xf32> to vector<1xf32>
    %393 = vector.shape_cast %392 : vector<1xf32> to vector<1x1x1xf32>
    %394 = vector.extract %393[0, 0, 0] : f32 from vector<1x1x1xf32>
    %cst_187 = arith.constant 3.500000e+02 : f32
    %395 = arith.subf %394, %cst_187 : f32
    %cst_188 = arith.constant 0.000000e+00 : f32
    %396 = arith.maximumf %395, %cst_188 : f32
    %397 = vector.broadcast %396 : f32 to vector<1x128xf32>
    %398 = arith.subf %390, %397 : vector<1x128xf32>
    %c0_189 = arith.constant 0 : index
    %c0_190 = arith.constant 0 : index
    %399 = vector.load %arg9[%c0_189, %c0_190] : memref<8x128xf32, #tpu.memory_space<vmem>>, vector<8x128xf32>
    %cst_191 = arith.constant 9.900000e-01 : f32
    %400 = vector.broadcast %cst_191 : f32 to vector<8x128xf32>
    %401 = arith.mulf %399, %400 : vector<8x128xf32>
    %402 = arith.addf %401, %335 : vector<8x128xf32>
    %403 = arith.truncf %364 : vector<8x128xf32> to vector<8x128xbf16>
    %c32_192 = arith.constant 32 : index
    %c0_193 = arith.constant 0 : index
    %404 = vector.load %arg6[%c32_192, %c0_193] : memref<80x128xbf16, #tpu.memory_space<vmem>>, vector<8x128xbf16>
    tpu.vector_store %arg6[%c32_192, %c0_193], %403 {strides = array<i32>} : memref<80x128xbf16, #tpu.memory_space<vmem>>, vector<8x128xbf16>,
    %cst_194 = arith.constant 3.000000e-01 : f32
    %405 = vector.broadcast %cst_194 : f32 to vector<8x128xf32>
    %406 = arith.subf %402, %405 : vector<8x128xf32>
    %407 = arith.truncf %406 : vector<8x128xf32> to vector<8x128xbf16>
    %c32_195 = arith.constant 32 : index
    %c0_196 = arith.constant 0 : index
    %408 = vector.load %arg11[%c32_195, %c0_196] : memref<80x128xbf16, #tpu.memory_space<vmem>>, vector<8x128xbf16>
    tpu.vector_store %arg11[%c32_195, %c0_196], %407 {strides = array<i32>} : memref<80x128xbf16, #tpu.memory_space<vmem>>, vector<8x128xbf16>,
    %c0_197 = arith.constant 0 : index
    %c0_198 = arith.constant 0 : index
    %409 = vector.load %arg7[%c0_197, %c0_198] : memref<1x128xf32, #tpu.memory_space<vmem>>, vector<1x128xf32>
    tpu.vector_store %arg7[%c0_197, %c0_198], %398 {strides = array<i32>} : memref<1x128xf32, #tpu.memory_space<vmem>>, vector<1x128xf32>,
    %c0_199 = arith.constant 0 : index
    %c0_200 = arith.constant 0 : index
    %410 = vector.load %arg8[%c0_199, %c0_200] : memref<8x128xf32, #tpu.memory_space<vmem>>, vector<8x128xf32>
    tpu.vector_store %arg8[%c0_199, %c0_200], %384 {strides = array<i32>} : memref<8x128xf32, #tpu.memory_space<vmem>>, vector<8x128xf32>,
    %c0_201 = arith.constant 0 : index
    %c0_202 = arith.constant 0 : index
    %411 = vector.load %arg9[%c0_201, %c0_202] : memref<8x128xf32, #tpu.memory_space<vmem>>, vector<8x128xf32>
    tpu.vector_store %arg9[%c0_201, %c0_202], %402 {strides = array<i32>} : memref<8x128xf32, #tpu.memory_space<vmem>>, vector<8x128xf32>,
    %412 = arith.maximumf %332, %371 : f32
    %c40 = arith.constant 40 : index
    %c0_203 = arith.constant 0 : index
    %413 = vector.load %arg1[%c40, %c0_203] : memref<80x128xf32, #tpu.memory_space<vmem>>, vector<8x128xf32>
    %c40_204 = arith.constant 40 : index
    %c0_205 = arith.constant 0 : index
    %414 = vector.load %arg2[%c40_204, %c0_205] : memref<80x128xbf16, #tpu.memory_space<vmem>>, vector<8x128xbf16>
    %415 = arith.extf %414 : vector<8x128xbf16> to vector<8x128xf32>
    %c0_206 = arith.constant 0 : index
    %c0_207 = arith.constant 0 : index
    %416 = vector.load %arg7[%c0_206, %c0_207] : memref<1x128xf32, #tpu.memory_space<vmem>>, vector<1x128xf32>
    %c0_208 = arith.constant 0 : index
    %c0_209 = arith.constant 0 : index
    %417 = vector.load %arg8[%c0_208, %c0_209] : memref<8x128xf32, #tpu.memory_space<vmem>>, vector<8x128xf32>
    %cst_210 = arith.constant 9.900000e-01 : f32
    %418 = vector.broadcast %cst_210 : f32 to vector<8x128xf32>
    %419 = arith.mulf %417, %418 : vector<8x128xf32>
    %420 = arith.addf %419, %413 : vector<8x128xf32>
    %421 = vector.broadcast %416 : vector<1x128xf32> to vector<8x128xf32>
    %422 = arith.cmpf ogt, %420, %421 : vector<8x128xf32>
    %423 = arith.andi %422, %9 : vector<8x128xi1>
    %424 = arith.extui %423 : vector<8x128xi1> to vector<8x128xi32>
    %425 = arith.sitofp %424 : vector<8x128xi32> to vector<8x128xf32>
    %cst_211 = arith.constant 1.000000e+00 : f32
    %426 = vector.broadcast %cst_211 : f32 to vector<8x128xf32>
    %427 = arith.subf %426, %425 : vector<8x128xf32>
    %428 = arith.mulf %420, %427 : vector<8x128xf32>
    %cst_212 = arith.constant 0.000000e+00 : f32
    %429 = vector.broadcast %cst_212 : f32 to vector<8x128xf32>
    %430 = arith.cmpf ogt, %425, %429 : vector<8x128xf32>
    %cst_213 = arith.constant -1.000000e+30 : f32
    %431 = vector.broadcast %cst_213 : f32 to vector<8x128xf32>
    %432 = arith.select %430, %413, %431 : vector<8x128xi1>, vector<8x128xf32>
    %cst_214 = arith.constant dense<0xFF800000> : vector<8xf32>
    %433 = vector.multi_reduction <maximumf>, %432, %cst_214 [1] : vector<8x128xf32> to vector<8xf32>
    %434 = vector.shape_cast %433 : vector<8xf32> to vector<8x1xf32>
    %435 = vector.broadcast %434 : vector<8x1xf32> to vector<8x128xf32>
    %436 = arith.cmpf oge, %432, %435 : vector<8x128xf32>
    %c128_i32_215 = arith.constant 128 : i32
    %437 = vector.broadcast %c128_i32_215 : i32 to vector<8x128xi32>
    %438 = arith.select %436, %3, %437 : vector<8x128xi1>, vector<8x128xi32>
    %cst_216 = arith.constant dense<2147483647> : vector<8xi32>
    %439 = vector.multi_reduction <minsi>, %438, %cst_216 [1] : vector<8x128xi32> to vector<8xi32>
    %440 = vector.shape_cast %439 : vector<8xi32> to vector<8x1xi32>
    %441 = vector.broadcast %440 : vector<8x1xi32> to vector<8x128xi32>
    %442 = arith.cmpi eq, %3, %441 : vector<8x128xi32>
    %cst_217 = arith.constant 0.000000e+00 : f32
    %443 = vector.broadcast %cst_217 : f32 to vector<8x128xf32>
    %444 = arith.select %442, %425, %443 : vector<8x128xi1>, vector<8x128xf32>
    %445 = vector.shape_cast %434 : vector<8x1xf32> to vector<1x8x1xf32>
    %cst_218 = arith.constant dense<0xFF800000> : vector<1xf32>
    %446 = vector.multi_reduction <maximumf>, %445, %cst_218 [1, 2] : vector<1x8x1xf32> to vector<1xf32>
    %447 = vector.shape_cast %446 : vector<1xf32> to vector<1x1x1xf32>
    %448 = vector.extract %447[0, 0, 0] : f32 from vector<1x1x1xf32>
    %cst_219 = arith.constant -1.000000e+29 : f32
    %449 = arith.cmpf ogt, %448, %cst_219 : f32
    %450 = arith.extui %449 : i1 to i32
    %451 = arith.sitofp %450 : i32 to f32
    %cst_220 = arith.constant -1.000000e+30 : f32
    %452 = vector.broadcast %cst_220 : f32 to vector<8x128xf32>
    %453 = arith.select %6, %413, %452 : vector<8x128xi1>, vector<8x128xf32>
    %cst_221 = arith.constant dense<0xFF800000> : vector<8xf32>
    %454 = vector.multi_reduction <maximumf>, %453, %cst_221 [1] : vector<8x128xf32> to vector<8xf32>
    %455 = vector.shape_cast %454 : vector<8xf32> to vector<8x1xf32>
    %cst_222 = arith.constant 1.625000e+00 : f32
    %456 = vector.broadcast %cst_222 : f32 to vector<8x1xf32>
    %457 = arith.mulf %456, %455 : vector<8x1xf32>
    %cst_223 = arith.constant 1.000000e+00 : f32
    %458 = vector.broadcast %cst_223 : f32 to vector<8x128xf32>
    %459 = arith.subf %458, %444 : vector<8x128xf32>
    %460 = vector.broadcast %457 : vector<8x1xf32> to vector<8x128xf32>
    %461 = arith.mulf %460, %459 : vector<8x128xf32>
    %462 = vector.broadcast %451 : f32 to vector<8x128xf32>
    %463 = arith.mulf %462, %461 : vector<8x128xf32>
    %464 = arith.subf %428, %463 : vector<8x128xf32>
    %cst_224 = arith.constant 2.000000e-03 : f32
    %465 = vector.broadcast %cst_224 : f32 to vector<8x128xf32>
    %466 = arith.mulf %465, %413 : vector<8x128xf32>
    %467 = arith.mulf %466, %444 : vector<8x128xf32>
    %cst_225 = arith.constant dense<0.000000e+00> : vector<128xf32>
    %468 = vector.multi_reduction <add>, %467, %cst_225 [0] : vector<8x128xf32> to vector<128xf32>
    %469 = vector.shape_cast %468 : vector<128xf32> to vector<1x128xf32>
    %470 = arith.addf %416, %469 : vector<1x128xf32>
    %471 = vector.shape_cast %470 : vector<1x128xf32> to vector<1x1x128xf32>
    %cst_226 = arith.constant dense<0xFF800000> : vector<1xf32>
    %472 = vector.multi_reduction <maximumf>, %471, %cst_226 [1, 2] : vector<1x1x128xf32> to vector<1xf32>
    %473 = vector.shape_cast %472 : vector<1xf32> to vector<1x1x1xf32>
    %474 = vector.extract %473[0, 0, 0] : f32 from vector<1x1x1xf32>
    %cst_227 = arith.constant 3.500000e+02 : f32
    %475 = arith.subf %474, %cst_227 : f32
    %cst_228 = arith.constant 0.000000e+00 : f32
    %476 = arith.maximumf %475, %cst_228 : f32
    %477 = vector.broadcast %476 : f32 to vector<1x128xf32>
    %478 = arith.subf %470, %477 : vector<1x128xf32>
    %c0_229 = arith.constant 0 : index
    %c0_230 = arith.constant 0 : index
    %479 = vector.load %arg9[%c0_229, %c0_230] : memref<8x128xf32, #tpu.memory_space<vmem>>, vector<8x128xf32>
    %cst_231 = arith.constant 9.900000e-01 : f32
    %480 = vector.broadcast %cst_231 : f32 to vector<8x128xf32>
    %481 = arith.mulf %479, %480 : vector<8x128xf32>
    %482 = arith.addf %481, %415 : vector<8x128xf32>
    %483 = arith.truncf %444 : vector<8x128xf32> to vector<8x128xbf16>
    %c40_232 = arith.constant 40 : index
    %c0_233 = arith.constant 0 : index
    %484 = vector.load %arg6[%c40_232, %c0_233] : memref<80x128xbf16, #tpu.memory_space<vmem>>, vector<8x128xbf16>
    tpu.vector_store %arg6[%c40_232, %c0_233], %483 {strides = array<i32>} : memref<80x128xbf16, #tpu.memory_space<vmem>>, vector<8x128xbf16>,
    %cst_234 = arith.constant 3.000000e-01 : f32
    %485 = vector.broadcast %cst_234 : f32 to vector<8x128xf32>
    %486 = arith.subf %482, %485 : vector<8x128xf32>
    %487 = arith.truncf %486 : vector<8x128xf32> to vector<8x128xbf16>
    %c40_235 = arith.constant 40 : index
    %c0_236 = arith.constant 0 : index
    %488 = vector.load %arg11[%c40_235, %c0_236] : memref<80x128xbf16, #tpu.memory_space<vmem>>, vector<8x128xbf16>
    tpu.vector_store %arg11[%c40_235, %c0_236], %487 {strides = array<i32>} : memref<80x128xbf16, #tpu.memory_space<vmem>>, vector<8x128xbf16>,
    %c0_237 = arith.constant 0 : index
    %c0_238 = arith.constant 0 : index
    %489 = vector.load %arg7[%c0_237, %c0_238] : memref<1x128xf32, #tpu.memory_space<vmem>>, vector<1x128xf32>
    tpu.vector_store %arg7[%c0_237, %c0_238], %478 {strides = array<i32>} : memref<1x128xf32, #tpu.memory_space<vmem>>, vector<1x128xf32>,
    %c0_239 = arith.constant 0 : index
    %c0_240 = arith.constant 0 : index
    %490 = vector.load %arg8[%c0_239, %c0_240] : memref<8x128xf32, #tpu.memory_space<vmem>>, vector<8x128xf32>
    tpu.vector_store %arg8[%c0_239, %c0_240], %464 {strides = array<i32>} : memref<8x128xf32, #tpu.memory_space<vmem>>, vector<8x128xf32>,
    %c0_241 = arith.constant 0 : index
    %c0_242 = arith.constant 0 : index
    %491 = vector.load %arg9[%c0_241, %c0_242] : memref<8x128xf32, #tpu.memory_space<vmem>>, vector<8x128xf32>
    tpu.vector_store %arg9[%c0_241, %c0_242], %482 {strides = array<i32>} : memref<8x128xf32, #tpu.memory_space<vmem>>, vector<8x128xf32>,
    %492 = arith.maximumf %412, %451 : f32
    %c48 = arith.constant 48 : index
    %c0_243 = arith.constant 0 : index
    %493 = vector.load %arg1[%c48, %c0_243] : memref<80x128xf32, #tpu.memory_space<vmem>>, vector<8x128xf32>
    %c48_244 = arith.constant 48 : index
    %c0_245 = arith.constant 0 : index
    %494 = vector.load %arg2[%c48_244, %c0_245] : memref<80x128xbf16, #tpu.memory_space<vmem>>, vector<8x128xbf16>
    %495 = arith.extf %494 : vector<8x128xbf16> to vector<8x128xf32>
    %c0_246 = arith.constant 0 : index
    %c0_247 = arith.constant 0 : index
    %496 = vector.load %arg7[%c0_246, %c0_247] : memref<1x128xf32, #tpu.memory_space<vmem>>, vector<1x128xf32>
    %c0_248 = arith.constant 0 : index
    %c0_249 = arith.constant 0 : index
    %497 = vector.load %arg8[%c0_248, %c0_249] : memref<8x128xf32, #tpu.memory_space<vmem>>, vector<8x128xf32>
    %cst_250 = arith.constant 9.900000e-01 : f32
    %498 = vector.broadcast %cst_250 : f32 to vector<8x128xf32>
    %499 = arith.mulf %497, %498 : vector<8x128xf32>
    %500 = arith.addf %499, %493 : vector<8x128xf32>
    %501 = vector.broadcast %496 : vector<1x128xf32> to vector<8x128xf32>
    %502 = arith.cmpf ogt, %500, %501 : vector<8x128xf32>
    %503 = arith.andi %502, %9 : vector<8x128xi1>
    %504 = arith.extui %503 : vector<8x128xi1> to vector<8x128xi32>
    %505 = arith.sitofp %504 : vector<8x128xi32> to vector<8x128xf32>
    %cst_251 = arith.constant 1.000000e+00 : f32
    %506 = vector.broadcast %cst_251 : f32 to vector<8x128xf32>
    %507 = arith.subf %506, %505 : vector<8x128xf32>
    %508 = arith.mulf %500, %507 : vector<8x128xf32>
    %cst_252 = arith.constant 0.000000e+00 : f32
    %509 = vector.broadcast %cst_252 : f32 to vector<8x128xf32>
    %510 = arith.cmpf ogt, %505, %509 : vector<8x128xf32>
    %cst_253 = arith.constant -1.000000e+30 : f32
    %511 = vector.broadcast %cst_253 : f32 to vector<8x128xf32>
    %512 = arith.select %510, %493, %511 : vector<8x128xi1>, vector<8x128xf32>
    %cst_254 = arith.constant dense<0xFF800000> : vector<8xf32>
    %513 = vector.multi_reduction <maximumf>, %512, %cst_254 [1] : vector<8x128xf32> to vector<8xf32>
    %514 = vector.shape_cast %513 : vector<8xf32> to vector<8x1xf32>
    %515 = vector.broadcast %514 : vector<8x1xf32> to vector<8x128xf32>
    %516 = arith.cmpf oge, %512, %515 : vector<8x128xf32>
    %c128_i32_255 = arith.constant 128 : i32
    %517 = vector.broadcast %c128_i32_255 : i32 to vector<8x128xi32>
    %518 = arith.select %516, %3, %517 : vector<8x128xi1>, vector<8x128xi32>
    %cst_256 = arith.constant dense<2147483647> : vector<8xi32>
    %519 = vector.multi_reduction <minsi>, %518, %cst_256 [1] : vector<8x128xi32> to vector<8xi32>
    %520 = vector.shape_cast %519 : vector<8xi32> to vector<8x1xi32>
    %521 = vector.broadcast %520 : vector<8x1xi32> to vector<8x128xi32>
    %522 = arith.cmpi eq, %3, %521 : vector<8x128xi32>
    %cst_257 = arith.constant 0.000000e+00 : f32
    %523 = vector.broadcast %cst_257 : f32 to vector<8x128xf32>
    %524 = arith.select %522, %505, %523 : vector<8x128xi1>, vector<8x128xf32>
    %525 = vector.shape_cast %514 : vector<8x1xf32> to vector<1x8x1xf32>
    %cst_258 = arith.constant dense<0xFF800000> : vector<1xf32>
    %526 = vector.multi_reduction <maximumf>, %525, %cst_258 [1, 2] : vector<1x8x1xf32> to vector<1xf32>
    %527 = vector.shape_cast %526 : vector<1xf32> to vector<1x1x1xf32>
    %528 = vector.extract %527[0, 0, 0] : f32 from vector<1x1x1xf32>
    %cst_259 = arith.constant -1.000000e+29 : f32
    %529 = arith.cmpf ogt, %528, %cst_259 : f32
    %530 = arith.extui %529 : i1 to i32
    %531 = arith.sitofp %530 : i32 to f32
    %cst_260 = arith.constant -1.000000e+30 : f32
    %532 = vector.broadcast %cst_260 : f32 to vector<8x128xf32>
    %533 = arith.select %6, %493, %532 : vector<8x128xi1>, vector<8x128xf32>
    %cst_261 = arith.constant dense<0xFF800000> : vector<8xf32>
    %534 = vector.multi_reduction <maximumf>, %533, %cst_261 [1] : vector<8x128xf32> to vector<8xf32>
    %535 = vector.shape_cast %534 : vector<8xf32> to vector<8x1xf32>
    %cst_262 = arith.constant 1.625000e+00 : f32
    %536 = vector.broadcast %cst_262 : f32 to vector<8x1xf32>
    %537 = arith.mulf %536, %535 : vector<8x1xf32>
    %cst_263 = arith.constant 1.000000e+00 : f32
    %538 = vector.broadcast %cst_263 : f32 to vector<8x128xf32>
    %539 = arith.subf %538, %524 : vector<8x128xf32>
    %540 = vector.broadcast %537 : vector<8x1xf32> to vector<8x128xf32>
    %541 = arith.mulf %540, %539 : vector<8x128xf32>
    %542 = vector.broadcast %531 : f32 to vector<8x128xf32>
    %543 = arith.mulf %542, %541 : vector<8x128xf32>
    %544 = arith.subf %508, %543 : vector<8x128xf32>
    %cst_264 = arith.constant 2.000000e-03 : f32
    %545 = vector.broadcast %cst_264 : f32 to vector<8x128xf32>
    %546 = arith.mulf %545, %493 : vector<8x128xf32>
    %547 = arith.mulf %546, %524 : vector<8x128xf32>
    %cst_265 = arith.constant dense<0.000000e+00> : vector<128xf32>
    %548 = vector.multi_reduction <add>, %547, %cst_265 [0] : vector<8x128xf32> to vector<128xf32>
    %549 = vector.shape_cast %548 : vector<128xf32> to vector<1x128xf32>
    %550 = arith.addf %496, %549 : vector<1x128xf32>
    %551 = vector.shape_cast %550 : vector<1x128xf32> to vector<1x1x128xf32>
    %cst_266 = arith.constant dense<0xFF800000> : vector<1xf32>
    %552 = vector.multi_reduction <maximumf>, %551, %cst_266 [1, 2] : vector<1x1x128xf32> to vector<1xf32>
    %553 = vector.shape_cast %552 : vector<1xf32> to vector<1x1x1xf32>
    %554 = vector.extract %553[0, 0, 0] : f32 from vector<1x1x1xf32>
    %cst_267 = arith.constant 3.500000e+02 : f32
    %555 = arith.subf %554, %cst_267 : f32
    %cst_268 = arith.constant 0.000000e+00 : f32
    %556 = arith.maximumf %555, %cst_268 : f32
    %557 = vector.broadcast %556 : f32 to vector<1x128xf32>
    %558 = arith.subf %550, %557 : vector<1x128xf32>
    %c0_269 = arith.constant 0 : index
    %c0_270 = arith.constant 0 : index
    %559 = vector.load %arg9[%c0_269, %c0_270] : memref<8x128xf32, #tpu.memory_space<vmem>>, vector<8x128xf32>
    %cst_271 = arith.constant 9.900000e-01 : f32
    %560 = vector.broadcast %cst_271 : f32 to vector<8x128xf32>
    %561 = arith.mulf %559, %560 : vector<8x128xf32>
    %562 = arith.addf %561, %495 : vector<8x128xf32>
    %563 = arith.truncf %524 : vector<8x128xf32> to vector<8x128xbf16>
    %c48_272 = arith.constant 48 : index
    %c0_273 = arith.constant 0 : index
    %564 = vector.load %arg6[%c48_272, %c0_273] : memref<80x128xbf16, #tpu.memory_space<vmem>>, vector<8x128xbf16>
    tpu.vector_store %arg6[%c48_272, %c0_273], %563 {strides = array<i32>} : memref<80x128xbf16, #tpu.memory_space<vmem>>, vector<8x128xbf16>,
    %cst_274 = arith.constant 3.000000e-01 : f32
    %565 = vector.broadcast %cst_274 : f32 to vector<8x128xf32>
    %566 = arith.subf %562, %565 : vector<8x128xf32>
    %567 = arith.truncf %566 : vector<8x128xf32> to vector<8x128xbf16>
    %c48_275 = arith.constant 48 : index
    %c0_276 = arith.constant 0 : index
    %568 = vector.load %arg11[%c48_275, %c0_276] : memref<80x128xbf16, #tpu.memory_space<vmem>>, vector<8x128xbf16>
    tpu.vector_store %arg11[%c48_275, %c0_276], %567 {strides = array<i32>} : memref<80x128xbf16, #tpu.memory_space<vmem>>, vector<8x128xbf16>,
    %c0_277 = arith.constant 0 : index
    %c0_278 = arith.constant 0 : index
    %569 = vector.load %arg7[%c0_277, %c0_278] : memref<1x128xf32, #tpu.memory_space<vmem>>, vector<1x128xf32>
    tpu.vector_store %arg7[%c0_277, %c0_278], %558 {strides = array<i32>} : memref<1x128xf32, #tpu.memory_space<vmem>>, vector<1x128xf32>,
    %c0_279 = arith.constant 0 : index
    %c0_280 = arith.constant 0 : index
    %570 = vector.load %arg8[%c0_279, %c0_280] : memref<8x128xf32, #tpu.memory_space<vmem>>, vector<8x128xf32>
    tpu.vector_store %arg8[%c0_279, %c0_280], %544 {strides = array<i32>} : memref<8x128xf32, #tpu.memory_space<vmem>>, vector<8x128xf32>,
    %c0_281 = arith.constant 0 : index
    %c0_282 = arith.constant 0 : index
    %571 = vector.load %arg9[%c0_281, %c0_282] : memref<8x128xf32, #tpu.memory_space<vmem>>, vector<8x128xf32>
    tpu.vector_store %arg9[%c0_281, %c0_282], %562 {strides = array<i32>} : memref<8x128xf32, #tpu.memory_space<vmem>>, vector<8x128xf32>,
    %572 = arith.maximumf %492, %531 : f32
    %c56 = arith.constant 56 : index
    %c0_283 = arith.constant 0 : index
    %573 = vector.load %arg1[%c56, %c0_283] : memref<80x128xf32, #tpu.memory_space<vmem>>, vector<8x128xf32>
    %c56_284 = arith.constant 56 : index
    %c0_285 = arith.constant 0 : index
    %574 = vector.load %arg2[%c56_284, %c0_285] : memref<80x128xbf16, #tpu.memory_space<vmem>>, vector<8x128xbf16>
    %575 = arith.extf %574 : vector<8x128xbf16> to vector<8x128xf32>
    %c0_286 = arith.constant 0 : index
    %c0_287 = arith.constant 0 : index
    %576 = vector.load %arg7[%c0_286, %c0_287] : memref<1x128xf32, #tpu.memory_space<vmem>>, vector<1x128xf32>
    %c0_288 = arith.constant 0 : index
    %c0_289 = arith.constant 0 : index
    %577 = vector.load %arg8[%c0_288, %c0_289] : memref<8x128xf32, #tpu.memory_space<vmem>>, vector<8x128xf32>
    %cst_290 = arith.constant 9.900000e-01 : f32
    %578 = vector.broadcast %cst_290 : f32 to vector<8x128xf32>
    %579 = arith.mulf %577, %578 : vector<8x128xf32>
    %580 = arith.addf %579, %573 : vector<8x128xf32>
    %581 = vector.broadcast %576 : vector<1x128xf32> to vector<8x128xf32>
    %582 = arith.cmpf ogt, %580, %581 : vector<8x128xf32>
    %583 = arith.andi %582, %9 : vector<8x128xi1>
    %584 = arith.extui %583 : vector<8x128xi1> to vector<8x128xi32>
    %585 = arith.sitofp %584 : vector<8x128xi32> to vector<8x128xf32>
    %cst_291 = arith.constant 1.000000e+00 : f32
    %586 = vector.broadcast %cst_291 : f32 to vector<8x128xf32>
    %587 = arith.subf %586, %585 : vector<8x128xf32>
    %588 = arith.mulf %580, %587 : vector<8x128xf32>
    %cst_292 = arith.constant 0.000000e+00 : f32
    %589 = vector.broadcast %cst_292 : f32 to vector<8x128xf32>
    %590 = arith.cmpf ogt, %585, %589 : vector<8x128xf32>
    %cst_293 = arith.constant -1.000000e+30 : f32
    %591 = vector.broadcast %cst_293 : f32 to vector<8x128xf32>
    %592 = arith.select %590, %573, %591 : vector<8x128xi1>, vector<8x128xf32>
    %cst_294 = arith.constant dense<0xFF800000> : vector<8xf32>
    %593 = vector.multi_reduction <maximumf>, %592, %cst_294 [1] : vector<8x128xf32> to vector<8xf32>
    %594 = vector.shape_cast %593 : vector<8xf32> to vector<8x1xf32>
    %595 = vector.broadcast %594 : vector<8x1xf32> to vector<8x128xf32>
    %596 = arith.cmpf oge, %592, %595 : vector<8x128xf32>
    %c128_i32_295 = arith.constant 128 : i32
    %597 = vector.broadcast %c128_i32_295 : i32 to vector<8x128xi32>
    %598 = arith.select %596, %3, %597 : vector<8x128xi1>, vector<8x128xi32>
    %cst_296 = arith.constant dense<2147483647> : vector<8xi32>
    %599 = vector.multi_reduction <minsi>, %598, %cst_296 [1] : vector<8x128xi32> to vector<8xi32>
    %600 = vector.shape_cast %599 : vector<8xi32> to vector<8x1xi32>
    %601 = vector.broadcast %600 : vector<8x1xi32> to vector<8x128xi32>
    %602 = arith.cmpi eq, %3, %601 : vector<8x128xi32>
    %cst_297 = arith.constant 0.000000e+00 : f32
    %603 = vector.broadcast %cst_297 : f32 to vector<8x128xf32>
    %604 = arith.select %602, %585, %603 : vector<8x128xi1>, vector<8x128xf32>
    %605 = vector.shape_cast %594 : vector<8x1xf32> to vector<1x8x1xf32>
    %cst_298 = arith.constant dense<0xFF800000> : vector<1xf32>
    %606 = vector.multi_reduction <maximumf>, %605, %cst_298 [1, 2] : vector<1x8x1xf32> to vector<1xf32>
    %607 = vector.shape_cast %606 : vector<1xf32> to vector<1x1x1xf32>
    %608 = vector.extract %607[0, 0, 0] : f32 from vector<1x1x1xf32>
    %cst_299 = arith.constant -1.000000e+29 : f32
    %609 = arith.cmpf ogt, %608, %cst_299 : f32
    %610 = arith.extui %609 : i1 to i32
    %611 = arith.sitofp %610 : i32 to f32
    %cst_300 = arith.constant -1.000000e+30 : f32
    %612 = vector.broadcast %cst_300 : f32 to vector<8x128xf32>
    %613 = arith.select %6, %573, %612 : vector<8x128xi1>, vector<8x128xf32>
    %cst_301 = arith.constant dense<0xFF800000> : vector<8xf32>
    %614 = vector.multi_reduction <maximumf>, %613, %cst_301 [1] : vector<8x128xf32> to vector<8xf32>
    %615 = vector.shape_cast %614 : vector<8xf32> to vector<8x1xf32>
    %cst_302 = arith.constant 1.625000e+00 : f32
    %616 = vector.broadcast %cst_302 : f32 to vector<8x1xf32>
    %617 = arith.mulf %616, %615 : vector<8x1xf32>
    %cst_303 = arith.constant 1.000000e+00 : f32
    %618 = vector.broadcast %cst_303 : f32 to vector<8x128xf32>
    %619 = arith.subf %618, %604 : vector<8x128xf32>
    %620 = vector.broadcast %617 : vector<8x1xf32> to vector<8x128xf32>
    %621 = arith.mulf %620, %619 : vector<8x128xf32>
    %622 = vector.broadcast %611 : f32 to vector<8x128xf32>
    %623 = arith.mulf %622, %621 : vector<8x128xf32>
    %624 = arith.subf %588, %623 : vector<8x128xf32>
    %cst_304 = arith.constant 2.000000e-03 : f32
    %625 = vector.broadcast %cst_304 : f32 to vector<8x128xf32>
    %626 = arith.mulf %625, %573 : vector<8x128xf32>
    %627 = arith.mulf %626, %604 : vector<8x128xf32>
    %cst_305 = arith.constant dense<0.000000e+00> : vector<128xf32>
    %628 = vector.multi_reduction <add>, %627, %cst_305 [0] : vector<8x128xf32> to vector<128xf32>
    %629 = vector.shape_cast %628 : vector<128xf32> to vector<1x128xf32>
    %630 = arith.addf %576, %629 : vector<1x128xf32>
    %631 = vector.shape_cast %630 : vector<1x128xf32> to vector<1x1x128xf32>
    %cst_306 = arith.constant dense<0xFF800000> : vector<1xf32>
    %632 = vector.multi_reduction <maximumf>, %631, %cst_306 [1, 2] : vector<1x1x128xf32> to vector<1xf32>
    %633 = vector.shape_cast %632 : vector<1xf32> to vector<1x1x1xf32>
    %634 = vector.extract %633[0, 0, 0] : f32 from vector<1x1x1xf32>
    %cst_307 = arith.constant 3.500000e+02 : f32
    %635 = arith.subf %634, %cst_307 : f32
    %cst_308 = arith.constant 0.000000e+00 : f32
    %636 = arith.maximumf %635, %cst_308 : f32
    %637 = vector.broadcast %636 : f32 to vector<1x128xf32>
    %638 = arith.subf %630, %637 : vector<1x128xf32>
    %c0_309 = arith.constant 0 : index
    %c0_310 = arith.constant 0 : index
    %639 = vector.load %arg9[%c0_309, %c0_310] : memref<8x128xf32, #tpu.memory_space<vmem>>, vector<8x128xf32>
    %cst_311 = arith.constant 9.900000e-01 : f32
    %640 = vector.broadcast %cst_311 : f32 to vector<8x128xf32>
    %641 = arith.mulf %639, %640 : vector<8x128xf32>
    %642 = arith.addf %641, %575 : vector<8x128xf32>
    %643 = arith.truncf %604 : vector<8x128xf32> to vector<8x128xbf16>
    %c56_312 = arith.constant 56 : index
    %c0_313 = arith.constant 0 : index
    %644 = vector.load %arg6[%c56_312, %c0_313] : memref<80x128xbf16, #tpu.memory_space<vmem>>, vector<8x128xbf16>
    tpu.vector_store %arg6[%c56_312, %c0_313], %643 {strides = array<i32>} : memref<80x128xbf16, #tpu.memory_space<vmem>>, vector<8x128xbf16>,
    %cst_314 = arith.constant 3.000000e-01 : f32
    %645 = vector.broadcast %cst_314 : f32 to vector<8x128xf32>
    %646 = arith.subf %642, %645 : vector<8x128xf32>
    %647 = arith.truncf %646 : vector<8x128xf32> to vector<8x128xbf16>
    %c56_315 = arith.constant 56 : index
    %c0_316 = arith.constant 0 : index
    %648 = vector.load %arg11[%c56_315, %c0_316] : memref<80x128xbf16, #tpu.memory_space<vmem>>, vector<8x128xbf16>
    tpu.vector_store %arg11[%c56_315, %c0_316], %647 {strides = array<i32>} : memref<80x128xbf16, #tpu.memory_space<vmem>>, vector<8x128xbf16>,
    %c0_317 = arith.constant 0 : index
    %c0_318 = arith.constant 0 : index
    %649 = vector.load %arg7[%c0_317, %c0_318] : memref<1x128xf32, #tpu.memory_space<vmem>>, vector<1x128xf32>
    tpu.vector_store %arg7[%c0_317, %c0_318], %638 {strides = array<i32>} : memref<1x128xf32, #tpu.memory_space<vmem>>, vector<1x128xf32>,
    %c0_319 = arith.constant 0 : index
    %c0_320 = arith.constant 0 : index
    %650 = vector.load %arg8[%c0_319, %c0_320] : memref<8x128xf32, #tpu.memory_space<vmem>>, vector<8x128xf32>
    tpu.vector_store %arg8[%c0_319, %c0_320], %624 {strides = array<i32>} : memref<8x128xf32, #tpu.memory_space<vmem>>, vector<8x128xf32>,
    %c0_321 = arith.constant 0 : index
    %c0_322 = arith.constant 0 : index
    %651 = vector.load %arg9[%c0_321, %c0_322] : memref<8x128xf32, #tpu.memory_space<vmem>>, vector<8x128xf32>
    tpu.vector_store %arg9[%c0_321, %c0_322], %642 {strides = array<i32>} : memref<8x128xf32, #tpu.memory_space<vmem>>, vector<8x128xf32>,
    %652 = arith.maximumf %572, %611 : f32
    %c64 = arith.constant 64 : index
    %c0_323 = arith.constant 0 : index
    %653 = vector.load %arg1[%c64, %c0_323] : memref<80x128xf32, #tpu.memory_space<vmem>>, vector<8x128xf32>
    %c64_324 = arith.constant 64 : index
    %c0_325 = arith.constant 0 : index
    %654 = vector.load %arg2[%c64_324, %c0_325] : memref<80x128xbf16, #tpu.memory_space<vmem>>, vector<8x128xbf16>
    %655 = arith.extf %654 : vector<8x128xbf16> to vector<8x128xf32>
    %c0_326 = arith.constant 0 : index
    %c0_327 = arith.constant 0 : index
    %656 = vector.load %arg7[%c0_326, %c0_327] : memref<1x128xf32, #tpu.memory_space<vmem>>, vector<1x128xf32>
    %c0_328 = arith.constant 0 : index
    %c0_329 = arith.constant 0 : index
    %657 = vector.load %arg8[%c0_328, %c0_329] : memref<8x128xf32, #tpu.memory_space<vmem>>, vector<8x128xf32>
    %cst_330 = arith.constant 9.900000e-01 : f32
    %658 = vector.broadcast %cst_330 : f32 to vector<8x128xf32>
    %659 = arith.mulf %657, %658 : vector<8x128xf32>
    %660 = arith.addf %659, %653 : vector<8x128xf32>
    %661 = vector.broadcast %656 : vector<1x128xf32> to vector<8x128xf32>
    %662 = arith.cmpf ogt, %660, %661 : vector<8x128xf32>
    %663 = arith.andi %662, %9 : vector<8x128xi1>
    %664 = arith.extui %663 : vector<8x128xi1> to vector<8x128xi32>
    %665 = arith.sitofp %664 : vector<8x128xi32> to vector<8x128xf32>
    %cst_331 = arith.constant 1.000000e+00 : f32
    %666 = vector.broadcast %cst_331 : f32 to vector<8x128xf32>
    %667 = arith.subf %666, %665 : vector<8x128xf32>
    %668 = arith.mulf %660, %667 : vector<8x128xf32>
    %cst_332 = arith.constant 0.000000e+00 : f32
    %669 = vector.broadcast %cst_332 : f32 to vector<8x128xf32>
    %670 = arith.cmpf ogt, %665, %669 : vector<8x128xf32>
    %cst_333 = arith.constant -1.000000e+30 : f32
    %671 = vector.broadcast %cst_333 : f32 to vector<8x128xf32>
    %672 = arith.select %670, %653, %671 : vector<8x128xi1>, vector<8x128xf32>
    %cst_334 = arith.constant dense<0xFF800000> : vector<8xf32>
    %673 = vector.multi_reduction <maximumf>, %672, %cst_334 [1] : vector<8x128xf32> to vector<8xf32>
    %674 = vector.shape_cast %673 : vector<8xf32> to vector<8x1xf32>
    %675 = vector.broadcast %674 : vector<8x1xf32> to vector<8x128xf32>
    %676 = arith.cmpf oge, %672, %675 : vector<8x128xf32>
    %c128_i32_335 = arith.constant 128 : i32
    %677 = vector.broadcast %c128_i32_335 : i32 to vector<8x128xi32>
    %678 = arith.select %676, %3, %677 : vector<8x128xi1>, vector<8x128xi32>
    %cst_336 = arith.constant dense<2147483647> : vector<8xi32>
    %679 = vector.multi_reduction <minsi>, %678, %cst_336 [1] : vector<8x128xi32> to vector<8xi32>
    %680 = vector.shape_cast %679 : vector<8xi32> to vector<8x1xi32>
    %681 = vector.broadcast %680 : vector<8x1xi32> to vector<8x128xi32>
    %682 = arith.cmpi eq, %3, %681 : vector<8x128xi32>
    %cst_337 = arith.constant 0.000000e+00 : f32
    %683 = vector.broadcast %cst_337 : f32 to vector<8x128xf32>
    %684 = arith.select %682, %665, %683 : vector<8x128xi1>, vector<8x128xf32>
    %685 = vector.shape_cast %674 : vector<8x1xf32> to vector<1x8x1xf32>
    %cst_338 = arith.constant dense<0xFF800000> : vector<1xf32>
    %686 = vector.multi_reduction <maximumf>, %685, %cst_338 [1, 2] : vector<1x8x1xf32> to vector<1xf32>
    %687 = vector.shape_cast %686 : vector<1xf32> to vector<1x1x1xf32>
    %688 = vector.extract %687[0, 0, 0] : f32 from vector<1x1x1xf32>
    %cst_339 = arith.constant -1.000000e+29 : f32
    %689 = arith.cmpf ogt, %688, %cst_339 : f32
    %690 = arith.extui %689 : i1 to i32
    %691 = arith.sitofp %690 : i32 to f32
    %cst_340 = arith.constant -1.000000e+30 : f32
    %692 = vector.broadcast %cst_340 : f32 to vector<8x128xf32>
    %693 = arith.select %6, %653, %692 : vector<8x128xi1>, vector<8x128xf32>
    %cst_341 = arith.constant dense<0xFF800000> : vector<8xf32>
    %694 = vector.multi_reduction <maximumf>, %693, %cst_341 [1] : vector<8x128xf32> to vector<8xf32>
    %695 = vector.shape_cast %694 : vector<8xf32> to vector<8x1xf32>
    %cst_342 = arith.constant 1.625000e+00 : f32
    %696 = vector.broadcast %cst_342 : f32 to vector<8x1xf32>
    %697 = arith.mulf %696, %695 : vector<8x1xf32>
    %cst_343 = arith.constant 1.000000e+00 : f32
    %698 = vector.broadcast %cst_343 : f32 to vector<8x128xf32>
    %699 = arith.subf %698, %684 : vector<8x128xf32>
    %700 = vector.broadcast %697 : vector<8x1xf32> to vector<8x128xf32>
    %701 = arith.mulf %700, %699 : vector<8x128xf32>
    %702 = vector.broadcast %691 : f32 to vector<8x128xf32>
    %703 = arith.mulf %702, %701 : vector<8x128xf32>
    %704 = arith.subf %668, %703 : vector<8x128xf32>
    %cst_344 = arith.constant 2.000000e-03 : f32
    %705 = vector.broadcast %cst_344 : f32 to vector<8x128xf32>
    %706 = arith.mulf %705, %653 : vector<8x128xf32>
    %707 = arith.mulf %706, %684 : vector<8x128xf32>
    %cst_345 = arith.constant dense<0.000000e+00> : vector<128xf32>
    %708 = vector.multi_reduction <add>, %707, %cst_345 [0] : vector<8x128xf32> to vector<128xf32>
    %709 = vector.shape_cast %708 : vector<128xf32> to vector<1x128xf32>
    %710 = arith.addf %656, %709 : vector<1x128xf32>
    %711 = vector.shape_cast %710 : vector<1x128xf32> to vector<1x1x128xf32>
    %cst_346 = arith.constant dense<0xFF800000> : vector<1xf32>
    %712 = vector.multi_reduction <maximumf>, %711, %cst_346 [1, 2] : vector<1x1x128xf32> to vector<1xf32>
    %713 = vector.shape_cast %712 : vector<1xf32> to vector<1x1x1xf32>
    %714 = vector.extract %713[0, 0, 0] : f32 from vector<1x1x1xf32>
    %cst_347 = arith.constant 3.500000e+02 : f32
    %715 = arith.subf %714, %cst_347 : f32
    %cst_348 = arith.constant 0.000000e+00 : f32
    %716 = arith.maximumf %715, %cst_348 : f32
    %717 = vector.broadcast %716 : f32 to vector<1x128xf32>
    %718 = arith.subf %710, %717 : vector<1x128xf32>
    %c0_349 = arith.constant 0 : index
    %c0_350 = arith.constant 0 : index
    %719 = vector.load %arg9[%c0_349, %c0_350] : memref<8x128xf32, #tpu.memory_space<vmem>>, vector<8x128xf32>
    %cst_351 = arith.constant 9.900000e-01 : f32
    %720 = vector.broadcast %cst_351 : f32 to vector<8x128xf32>
    %721 = arith.mulf %719, %720 : vector<8x128xf32>
    %722 = arith.addf %721, %655 : vector<8x128xf32>
    %723 = arith.truncf %684 : vector<8x128xf32> to vector<8x128xbf16>
    %c64_352 = arith.constant 64 : index
    %c0_353 = arith.constant 0 : index
    %724 = vector.load %arg6[%c64_352, %c0_353] : memref<80x128xbf16, #tpu.memory_space<vmem>>, vector<8x128xbf16>
    tpu.vector_store %arg6[%c64_352, %c0_353], %723 {strides = array<i32>} : memref<80x128xbf16, #tpu.memory_space<vmem>>, vector<8x128xbf16>,
    %cst_354 = arith.constant 3.000000e-01 : f32
    %725 = vector.broadcast %cst_354 : f32 to vector<8x128xf32>
    %726 = arith.subf %722, %725 : vector<8x128xf32>
    %727 = arith.truncf %726 : vector<8x128xf32> to vector<8x128xbf16>
    %c64_355 = arith.constant 64 : index
    %c0_356 = arith.constant 0 : index
    %728 = vector.load %arg11[%c64_355, %c0_356] : memref<80x128xbf16, #tpu.memory_space<vmem>>, vector<8x128xbf16>
    tpu.vector_store %arg11[%c64_355, %c0_356], %727 {strides = array<i32>} : memref<80x128xbf16, #tpu.memory_space<vmem>>, vector<8x128xbf16>,
    %c0_357 = arith.constant 0 : index
    %c0_358 = arith.constant 0 : index
    %729 = vector.load %arg7[%c0_357, %c0_358] : memref<1x128xf32, #tpu.memory_space<vmem>>, vector<1x128xf32>
    tpu.vector_store %arg7[%c0_357, %c0_358], %718 {strides = array<i32>} : memref<1x128xf32, #tpu.memory_space<vmem>>, vector<1x128xf32>,
    %c0_359 = arith.constant 0 : index
    %c0_360 = arith.constant 0 : index
    %730 = vector.load %arg8[%c0_359, %c0_360] : memref<8x128xf32, #tpu.memory_space<vmem>>, vector<8x128xf32>
    tpu.vector_store %arg8[%c0_359, %c0_360], %704 {strides = array<i32>} : memref<8x128xf32, #tpu.memory_space<vmem>>, vector<8x128xf32>,
    %c0_361 = arith.constant 0 : index
    %c0_362 = arith.constant 0 : index
    %731 = vector.load %arg9[%c0_361, %c0_362] : memref<8x128xf32, #tpu.memory_space<vmem>>, vector<8x128xf32>
    tpu.vector_store %arg9[%c0_361, %c0_362], %722 {strides = array<i32>} : memref<8x128xf32, #tpu.memory_space<vmem>>, vector<8x128xf32>,
    %732 = arith.maximumf %652, %691 : f32
    %c72 = arith.constant 72 : index
    %c0_363 = arith.constant 0 : index
    %733 = vector.load %arg1[%c72, %c0_363] : memref<80x128xf32, #tpu.memory_space<vmem>>, vector<8x128xf32>
    %c72_364 = arith.constant 72 : index
    %c0_365 = arith.constant 0 : index
    %734 = vector.load %arg2[%c72_364, %c0_365] : memref<80x128xbf16, #tpu.memory_space<vmem>>, vector<8x128xbf16>
    %735 = arith.extf %734 : vector<8x128xbf16> to vector<8x128xf32>
    %c0_366 = arith.constant 0 : index
    %c0_367 = arith.constant 0 : index
    %736 = vector.load %arg7[%c0_366, %c0_367] : memref<1x128xf32, #tpu.memory_space<vmem>>, vector<1x128xf32>
    %c0_368 = arith.constant 0 : index
    %c0_369 = arith.constant 0 : index
    %737 = vector.load %arg8[%c0_368, %c0_369] : memref<8x128xf32, #tpu.memory_space<vmem>>, vector<8x128xf32>
    %cst_370 = arith.constant 9.900000e-01 : f32
    %738 = vector.broadcast %cst_370 : f32 to vector<8x128xf32>
    %739 = arith.mulf %737, %738 : vector<8x128xf32>
    %740 = arith.addf %739, %733 : vector<8x128xf32>
    %741 = vector.broadcast %736 : vector<1x128xf32> to vector<8x128xf32>
    %742 = arith.cmpf ogt, %740, %741 : vector<8x128xf32>
    %743 = arith.andi %742, %9 : vector<8x128xi1>
    %744 = arith.extui %743 : vector<8x128xi1> to vector<8x128xi32>
    %745 = arith.sitofp %744 : vector<8x128xi32> to vector<8x128xf32>
    %cst_371 = arith.constant 1.000000e+00 : f32
    %746 = vector.broadcast %cst_371 : f32 to vector<8x128xf32>
    %747 = arith.subf %746, %745 : vector<8x128xf32>
    %748 = arith.mulf %740, %747 : vector<8x128xf32>
    %cst_372 = arith.constant 0.000000e+00 : f32
    %749 = vector.broadcast %cst_372 : f32 to vector<8x128xf32>
    %750 = arith.cmpf ogt, %745, %749 : vector<8x128xf32>
    %cst_373 = arith.constant -1.000000e+30 : f32
    %751 = vector.broadcast %cst_373 : f32 to vector<8x128xf32>
    %752 = arith.select %750, %733, %751 : vector<8x128xi1>, vector<8x128xf32>
    %cst_374 = arith.constant dense<0xFF800000> : vector<8xf32>
    %753 = vector.multi_reduction <maximumf>, %752, %cst_374 [1] : vector<8x128xf32> to vector<8xf32>
    %754 = vector.shape_cast %753 : vector<8xf32> to vector<8x1xf32>
    %755 = vector.broadcast %754 : vector<8x1xf32> to vector<8x128xf32>
    %756 = arith.cmpf oge, %752, %755 : vector<8x128xf32>
    %c128_i32_375 = arith.constant 128 : i32
    %757 = vector.broadcast %c128_i32_375 : i32 to vector<8x128xi32>
    %758 = arith.select %756, %3, %757 : vector<8x128xi1>, vector<8x128xi32>
    %cst_376 = arith.constant dense<2147483647> : vector<8xi32>
    %759 = vector.multi_reduction <minsi>, %758, %cst_376 [1] : vector<8x128xi32> to vector<8xi32>
    %760 = vector.shape_cast %759 : vector<8xi32> to vector<8x1xi32>
    %761 = vector.broadcast %760 : vector<8x1xi32> to vector<8x128xi32>
    %762 = arith.cmpi eq, %3, %761 : vector<8x128xi32>
    %cst_377 = arith.constant 0.000000e+00 : f32
    %763 = vector.broadcast %cst_377 : f32 to vector<8x128xf32>
    %764 = arith.select %762, %745, %763 : vector<8x128xi1>, vector<8x128xf32>
    %765 = vector.shape_cast %754 : vector<8x1xf32> to vector<1x8x1xf32>
    %cst_378 = arith.constant dense<0xFF800000> : vector<1xf32>
    %766 = vector.multi_reduction <maximumf>, %765, %cst_378 [1, 2] : vector<1x8x1xf32> to vector<1xf32>
    %767 = vector.shape_cast %766 : vector<1xf32> to vector<1x1x1xf32>
    %768 = vector.extract %767[0, 0, 0] : f32 from vector<1x1x1xf32>
    %cst_379 = arith.constant -1.000000e+29 : f32
    %769 = arith.cmpf ogt, %768, %cst_379 : f32
    %770 = arith.extui %769 : i1 to i32
    %771 = arith.sitofp %770 : i32 to f32
    %cst_380 = arith.constant -1.000000e+30 : f32
    %772 = vector.broadcast %cst_380 : f32 to vector<8x128xf32>
    %773 = arith.select %6, %733, %772 : vector<8x128xi1>, vector<8x128xf32>
    %cst_381 = arith.constant dense<0xFF800000> : vector<8xf32>
    %774 = vector.multi_reduction <maximumf>, %773, %cst_381 [1] : vector<8x128xf32> to vector<8xf32>
    %775 = vector.shape_cast %774 : vector<8xf32> to vector<8x1xf32>
    %cst_382 = arith.constant 1.625000e+00 : f32
    %776 = vector.broadcast %cst_382 : f32 to vector<8x1xf32>
    %777 = arith.mulf %776, %775 : vector<8x1xf32>
    %cst_383 = arith.constant 1.000000e+00 : f32
    %778 = vector.broadcast %cst_383 : f32 to vector<8x128xf32>
    %779 = arith.subf %778, %764 : vector<8x128xf32>
    %780 = vector.broadcast %777 : vector<8x1xf32> to vector<8x128xf32>
    %781 = arith.mulf %780, %779 : vector<8x128xf32>
    %782 = vector.broadcast %771 : f32 to vector<8x128xf32>
    %783 = arith.mulf %782, %781 : vector<8x128xf32>
    %784 = arith.subf %748, %783 : vector<8x128xf32>
    %cst_384 = arith.constant 2.000000e-03 : f32
    %785 = vector.broadcast %cst_384 : f32 to vector<8x128xf32>
    %786 = arith.mulf %785, %733 : vector<8x128xf32>
    %787 = arith.mulf %786, %764 : vector<8x128xf32>
    %cst_385 = arith.constant dense<0.000000e+00> : vector<128xf32>
    %788 = vector.multi_reduction <add>, %787, %cst_385 [0] : vector<8x128xf32> to vector<128xf32>
    %789 = vector.shape_cast %788 : vector<128xf32> to vector<1x128xf32>
    %790 = arith.addf %736, %789 : vector<1x128xf32>
    %791 = vector.shape_cast %790 : vector<1x128xf32> to vector<1x1x128xf32>
    %cst_386 = arith.constant dense<0xFF800000> : vector<1xf32>
    %792 = vector.multi_reduction <maximumf>, %791, %cst_386 [1, 2] : vector<1x1x128xf32> to vector<1xf32>
    %793 = vector.shape_cast %792 : vector<1xf32> to vector<1x1x1xf32>
    %794 = vector.extract %793[0, 0, 0] : f32 from vector<1x1x1xf32>
    %cst_387 = arith.constant 3.500000e+02 : f32
    %795 = arith.subf %794, %cst_387 : f32
    %cst_388 = arith.constant 0.000000e+00 : f32
    %796 = arith.maximumf %795, %cst_388 : f32
    %797 = vector.broadcast %796 : f32 to vector<1x128xf32>
    %798 = arith.subf %790, %797 : vector<1x128xf32>
    %c0_389 = arith.constant 0 : index
    %c0_390 = arith.constant 0 : index
    %799 = vector.load %arg9[%c0_389, %c0_390] : memref<8x128xf32, #tpu.memory_space<vmem>>, vector<8x128xf32>
    %cst_391 = arith.constant 9.900000e-01 : f32
    %800 = vector.broadcast %cst_391 : f32 to vector<8x128xf32>
    %801 = arith.mulf %799, %800 : vector<8x128xf32>
    %802 = arith.addf %801, %735 : vector<8x128xf32>
    %803 = arith.truncf %764 : vector<8x128xf32> to vector<8x128xbf16>
    %c72_392 = arith.constant 72 : index
    %c0_393 = arith.constant 0 : index
    %804 = vector.load %arg6[%c72_392, %c0_393] : memref<80x128xbf16, #tpu.memory_space<vmem>>, vector<8x128xbf16>
    tpu.vector_store %arg6[%c72_392, %c0_393], %803 {strides = array<i32>} : memref<80x128xbf16, #tpu.memory_space<vmem>>, vector<8x128xbf16>,
    %cst_394 = arith.constant 3.000000e-01 : f32
    %805 = vector.broadcast %cst_394 : f32 to vector<8x128xf32>
    %806 = arith.subf %802, %805 : vector<8x128xf32>
    %807 = arith.truncf %806 : vector<8x128xf32> to vector<8x128xbf16>
    %c72_395 = arith.constant 72 : index
    %c0_396 = arith.constant 0 : index
    %808 = vector.load %arg11[%c72_395, %c0_396] : memref<80x128xbf16, #tpu.memory_space<vmem>>, vector<8x128xbf16>
    tpu.vector_store %arg11[%c72_395, %c0_396], %807 {strides = array<i32>} : memref<80x128xbf16, #tpu.memory_space<vmem>>, vector<8x128xbf16>,
    %c0_397 = arith.constant 0 : index
    %c0_398 = arith.constant 0 : index
    %809 = vector.load %arg7[%c0_397, %c0_398] : memref<1x128xf32, #tpu.memory_space<vmem>>, vector<1x128xf32>
    tpu.vector_store %arg7[%c0_397, %c0_398], %798 {strides = array<i32>} : memref<1x128xf32, #tpu.memory_space<vmem>>, vector<1x128xf32>,
    %c0_399 = arith.constant 0 : index
    %c0_400 = arith.constant 0 : index
    %810 = vector.load %arg8[%c0_399, %c0_400] : memref<8x128xf32, #tpu.memory_space<vmem>>, vector<8x128xf32>
    tpu.vector_store %arg8[%c0_399, %c0_400], %784 {strides = array<i32>} : memref<8x128xf32, #tpu.memory_space<vmem>>, vector<8x128xf32>,
    %c0_401 = arith.constant 0 : index
    %c0_402 = arith.constant 0 : index
    %811 = vector.load %arg9[%c0_401, %c0_402] : memref<8x128xf32, #tpu.memory_space<vmem>>, vector<8x128xf32>
    tpu.vector_store %arg9[%c0_401, %c0_402], %802 {strides = array<i32>} : memref<8x128xf32, #tpu.memory_space<vmem>>, vector<8x128xf32>,
    %812 = arith.maximumf %732, %771 : f32
    %cst_403 = arith.constant 0.000000e+00 : f32
    %813 = arith.cmpf ogt, %812, %cst_403 : f32
    %814 = arith.extui %813 : i1 to i32
    %c0_i32_404 = arith.constant 0 : i32
    %815 = arith.cmpi ne, %814, %c0_i32_404 : i32
    scf.if %815 {
      %c0_405 = arith.constant 0 : index
      %c0_406 = arith.constant 0 : index
      %816 = vector.load %arg11[%c0_405, %c0_406] : memref<80x128xbf16, #tpu.memory_space<vmem>>, vector<80x128xbf16>
      %c0_407 = arith.constant 0 : index
      %c0_408 = arith.constant 0 : index
      %817 = vector.load %arg6[%c0_407, %c0_408] : memref<80x128xbf16, #tpu.memory_space<vmem>>, vector<80x128xbf16>
      %cst_409 = arith.constant dense<0.000000e+00> : vector<128x128xf32>
      %818 = tpu.matmul %816, %817, %cst_409 {dimension_numbers = #tpu.dot_dimension_numbers<[0], [0], [1], [1], [0, 1, 1, 1], [], []>} : vector<80x128xbf16>, vector<80x128xbf16>, vector<128x128xf32> -> vector<128x128xf32>
      %cst_410 = arith.constant 1.250000e-01 : f32
      %819 = vector.broadcast %cst_410 : f32 to vector<128x128xf32>
      %820 = arith.mulf %818, %819 : vector<128x128xf32>
      %c0_411 = arith.constant 0 : index
      %c0_412 = arith.constant 0 : index
      %821 = vector.load %arg10[%c0_411, %c0_412] : memref<128x128xf32, #tpu.memory_space<vmem>>, vector<128x128xf32>
      %822 = arith.addf %821, %820 : vector<128x128xf32>
      %c0_413 = arith.constant 0 : index
      %c0_414 = arith.constant 0 : index
      %823 = vector.load %arg10[%c0_413, %c0_414] : memref<128x128xf32, #tpu.memory_space<vmem>>, vector<128x128xf32>
      tpu.vector_store %arg10[%c0_413, %c0_414], %822 {strides = array<i32>} : memref<128x128xf32, #tpu.memory_space<vmem>>, vector<128x128xf32>,
    } else {
    }
    return
  }
  func.func @transform_0(%arg0: i32) -> (i32, i32) {
    %c0_i32 = arith.constant 0 : i32
    %c0_i32_0 = arith.constant 0 : i32
    return %arg0, %c0_i32 : i32, i32
  }
  func.func @transform_1(%arg0: i32) -> (i32, i32) {
    %c0_i32 = arith.constant 0 : i32
    %c0_i32_0 = arith.constant 0 : i32
    return %arg0, %c0_i32 : i32, i32
  }
  func.func @transform_2(%arg0: i32) -> (i32, i32) {
    %c0_i32 = arith.constant 0 : i32
    %c0_i32_0 = arith.constant 0 : i32
    %c0_i32_1 = arith.constant 0 : i32
    return %c0_i32, %c0_i32_0 : i32, i32
  }
  func.func @transform_3(%arg0: i32) -> (i32, i32) {
    %c0_i32 = arith.constant 0 : i32
    %c0_i32_0 = arith.constant 0 : i32
    %c0_i32_1 = arith.constant 0 : i32
    return %c0_i32, %c0_i32_0 : i32, i32
  }
  func.func @transform_4(%arg0: i32) -> (i32, i32) {
    %c0_i32 = arith.constant 0 : i32
    %c0_i32_0 = arith.constant 0 : i32
    %c0_i32_1 = arith.constant 0 : i32
    return %c0_i32, %c0_i32_0 : i32, i32
  }
  func.func @transform_5(%arg0: i32) -> (i32, i32) {
    %c0_i32 = arith.constant 0 : i32
    %c0_i32_0 = arith.constant 0 : i32
    return %arg0, %c0_i32 : i32, i32
  }
  func.func @transform_6(%arg0: i32) -> (i32, i32) {
    %c0_i32 = arith.constant 0 : i32
    %c0_i32_0 = arith.constant 0 : i32
    %c0_i32_1 = arith.constant 0 : i32
    return %c0_i32, %c0_i32_0 : i32, i32
  }
  func.func @transform_7(%arg0: i32) -> (i32, i32) {
    %c0_i32 = arith.constant 0 : i32
    %c0_i32_0 = arith.constant 0 : i32
    %c0_i32_1 = arith.constant 0 : i32
    return %c0_i32, %c0_i32_0 : i32, i32
  }
  func.func @transform_8(%arg0: i32) -> (i32, i32) {
    %c0_i32 = arith.constant 0 : i32
    %c0_i32_0 = arith.constant 0 : i32
    %c0_i32_1 = arith.constant 0 : i32
    return %c0_i32, %c0_i32_0 : i32, i32
  }
  func.func @transform_9(%arg0: i32) -> (i32, i32) {
    %c0_i32 = arith.constant 0 : i32
    %c0_i32_0 = arith.constant 0 : i32
    %c0_i32_1 = arith.constant 0 : i32
    return %c0_i32, %c0_i32_0 : i32, i32
  }
}

</mosaic_0001>

<bundles_post_ra>
// kernel: stdp_linear_forward.1
= control target key start
LH: loop header
LB: loop body
LE: loop exit
PB: predicated region body
PF: predicated region fallthrough
CT: control target
= control target key end

     0   :  { %v1449_v1 = vmov 0.0   ;;  %v52_v8 = vlaneseq  ;;  %vm140_vm7 = vcmask 1040384   ;;  %s1450_s15 = smov 0.0   ;;  %s2084_s0 = inlined_call_operand.vmem [shape: f32[80,128], index: 0, kind: input, shape index: {}]   ;;  %s2085_s2 = inlined_call_operand.vmem [shape: f32[1,128], index: 2, kind: input, shape index: {}, may-alias: {2,6}]   ;;  %s2086_s6 = inlined_call_operand.vmem [shape: f32[1,128], index: 6, kind: output, shape index: {1}, may-alias: {2,6}]   ;;  %s2087_s9 = inlined_call_operand.vmem [shape: f32[128,128], index: 9, kind: output, shape index: {4}]   ;;  %s2088_s3 = inlined_call_operand.vmem [shape: f32[8,128], index: 3, kind: input, shape index: {}, may-alias: {3,7}]   ;;  %s2089_s5 = inlined_call_operand.vmem [shape: bf16[80,128], index: 5, kind: output, shape index: {0}]   ;;  %s2090_s1 = inlined_call_operand.vmem [shape: bf16[80,128], index: 1, kind: input, shape index: {}]   ;;  %s2091_s4 = inlined_call_operand.vmem [shape: f32[8,128], index: 4, kind: input, shape index: {}, may-alias: {4,8}]   ;;  %s2092_s7 = inlined_call_operand.vmem [shape: f32[8,128], index: 7, kind: output, shape index: {2}, may-alias: {3,7}]   ;;  %s2093_s8 = inlined_call_operand.vmem [shape: f32[8,128], index: 8, kind: output, shape index: {3}, may-alias: {4,8}]  }
   0x1   :  { %v30_v0 = vld [vmem:[%s2085_s2] sm:$0x1]  ;;  %36 = vst [vmem:[%s2087_s9] sm:$0xff] %v1449_v1  ;;  %37 = vst [vmem:[%s2087_s9 + $0x8] sm:$0xff] %v1449_v1 }
   0x2   :  { %38 = vst [vmem:[%s2087_s9 + $0x10] sm:$0xff] %v1449_v1  ;;  %39 = vst [vmem:[%s2087_s9 + $0x18] sm:$0xff] %v1449_v1  ;;  %v59_v2 = vld [vmem:[%s2084_s0] sm:$0xff]  ;;  %v80_v12 = vshrl.u32 %v52_v8, 7  ;;  %v1580_v14 = vand.u32 127, %v52_v8 }
   0x3   :  { %40 = vst [vmem:[%s2087_s9 + $0x20] sm:$0xff] %v1449_v1  ;;  %41 = vst [vmem:[%s2087_s9 + $0x28] sm:$0xff] %v1449_v1  ;;  %v66_v3 = vrot.slane %v59_v2, 4  ;;  %v32_v11 = vld [vmem:[%s2088_s3] sm:$0xff]  ;;  %v131_v41 = vmul.f32 0.002, %v59_v2 }
   0x4   :  { %42 = vst [vmem:[%s2087_s9 + $0x30] sm:$0xff] %v1449_v1  ;;  %43 = vst [vmem:[%s2087_s9 + $0x38] sm:$0xff] %v1449_v1  ;;  %v76_v13 = vmul.f32 0.99, %v32_v11  ;;  %v1582_v15 = vsub.s32 0, %v80_v12  ;;  %vm56_vm0 = vcmp.lt.s32.totalorder %v1580_v14, 120 }
   0x5   :  { %44 = vst [vmem:[%s2087_s9 + $0x40] sm:$0xff] %v1449_v1  ;;  %45 = vst [vmem:[%s2087_s9 + $0x48] sm:$0xff] %v1449_v1  ;;  %v67_v4 = vmax.f32 %v59_v2, %v66_v3  ;;  %v122_v31 = vsel %vm56_vm0, %v59_v2, -1e+30 }
   0x6   :  { %46 = vst [vmem:[%s2087_s9 + $0x50] sm:$0xff] %v1449_v1  ;;  %47 = vst [vmem:[%s2087_s9 + $0x58] sm:$0xff] %v1449_v1  ;;  %v77_v16 = vadd.f32 %v76_v13, %v59_v2 }
   0x7   :  { %48 = vst [vmem:[%s2087_s9 + $0x60] sm:$0xff] %v1449_v1  ;;  %49 = vst [vmem:[%s2087_s9 + $0x68] sm:$0xff] %v1449_v1  ;;  %v68_v5 = vrot.slane %v67_v4, 2 }
   0x8   :  { %50 = vst [vmem:[%s2087_s9 + $0x70] sm:$0xff] %v1449_v1  ;;  %51 = vst [vmem:[%s2087_s9 + $0x78] sm:$0xff] %v1449_v1 }
   0x9   :  { %31 = vst [vmem:[%s2086_s6] sm:$0x1] %v30_v0  ;;  %v69_v6 = vmax.f32 %v67_v4, %v68_v5 }
   0xb   :  { %v70_v7 = vrot.slane %v69_v6, 1 }
   0xd   :  { %v71_v9 = vmax.f32 %v69_v6, %v70_v7 }
   0xf   :  { %v72_v10 = vmul.f32 3.0, %v71_v9  ;;  %v167_v9 = vld [vmem:[%s2084_s0 + $0x8] sm:$0xff] }
  0x11   :  { %73 = vst [vmem:[%s2086_s6] sm:$0x1] %v72_v10 }
  0x18   :  { %v74_v17 = vld [vmem:[%s2086_s6] sm:$0x1] }
  0x19   :  { %v82_v18 = vrot.slane %v74_v17, %v1582_v15 }
  0x1b   :  { %vm84_vm1 = vcmp.gt.f32.partialorder %v77_v16, %v82_v18  ;;  %v34_v18 = vld [vmem:[%s2091_s4] sm:$0xff] }
  0x1c   :  { %vm85_vm2 = vmand %vm84_vm1, %vm56_vm0 }
  0x1d   :  { %v1308_v19 = vsel %vm85_vm2, 1.0, %v1449_v1 }
  0x1e   :  { %vm90_vm3 = vcmp.gt.f32.partialorder %v1308_v19, 0.0  ;;  %v88_v43 = vsub.f32 1.0, %v1308_v19 }
  0x1f   :  { %v91_v20 = vsel %vm90_vm3, %v59_v2, -1e+30 }
  0x20   :  { %92 = vmax.xlane.f32.xlu0 %v91_v20  ;;  %v89_v49 = vmul.f32 %v88_v43, %v77_v16  ;;  %v227_v43 = vmul.f32 0.002, %v167_v9 }
  0xad   :  { %v93_v21 = vpop.xlane.xlu0 %92 }
  0xae   :  { %vm94_vm4 = vcmp.ge.f32.partialorder %v91_v20, %v93_v21  ;;  %v112_v22 = vrot.slane %v93_v21, 4  ;;  %v156_v20 = vmul.f32 0.99, %v34_v18 }
  0xaf   :  { %v95_v23 = vsel %vm94_vm4, %v1580_v14, 128 }
  0xb0   :  { %v113_v24 = vmax.f32 %v93_v21, %v112_v22  ;;  %v97_v25 = vshra.s32 %v95_v23, 16  ;;  %v96_v32 = vand.u32 65535, %v95_v23 }
  0xb2   :  { %v99_v26 = vcvt.s32.f32 %v97_v25  ;;  %v114_v27 = vrot.slane %v113_v24, 2  ;;  %v98_v34 = vcvt.s32.f32 %v96_v32 }
  0xb4   :  { %100 = vmin.xlane.f32.xlu0 %v99_v26  ;;  %v115_v28 = vmax.f32 %v113_v24, %v114_v27 }
  0xb6   :  { %v116_v29 = vrot.slane %v115_v28, 1 }
  0xb8   :  { %v117_v30 = vmax.f32 %v115_v28, %v116_v29  ;;  %123 = vmax.xlane.f32.xlu0 %v122_v31 }
  0xba   :  { %1400 = vpush %v117_v30 }
  0xeb   :  { %s1401_s3 = spop %1400 }
  0xec   :  { %p119_p0 = scmp.gt.f32.partialorder %s1401_s3, -1e+29 }
  0xee   :  { %s1595_s30 = scalar_select %p119_p0, 1, 0 }
  0xf0   :  { %s121_s10 = scvt.s32.f32 %s1595_s30 }
  0xf2   :  { %v128_v52 = vstv %s121_s10  ;;  %s166_s28 = smax.f32 %s1450_s15, %s121_s10 }
 0x141   :  { %v101_v33 = vpop.xlane.xlu0 %100 }
 0x142   :  { %vm102_vm5 = vcmp.eq.f32.partialorder %v99_v26, %v101_v33  ;;  %v107_v36 = vcvt.f32.s32 %v101_v33 }
 0x143   :  { %v103_v35 = vsel %vm102_vm5, %v98_v34, inf }
 0x144   :  { %104 = vmin.xlane.f32.xlu1 %v103_v35  ;;  %v108_v38 = vshll.u32 %v107_v36, 16 }
 0x145   :  { %v124_v40 = vpop.xlane.xlu0 %123 }
 0x146   :  { %v125_v44 = vmul.f32 1.625, %v124_v40 }
 0x1d1   :  { %v105_v37 = vpop.xlane.xlu1 %104 }
 0x1d2   :  { %v106_v39 = vcvt.f32.s32 %v105_v37 }
 0x1d4   :  { %v109_v42 = vadd.s32 %v108_v38, %v106_v39  ;;  %v218_v38 = vsel %vm56_vm0, %v167_v9, -1e+30 }
 0x1d6   :  { %vm110_vm6 = vcmp.eq.s32.totalorder %v1580_v14, %v109_v42 }
 0x1d7   :  { %v111_v45 = vsel %vm110_vm6, %v1308_v19, 0.0 }
 0x1d8   :  { %v132_v46 = vmul.f32 %v131_v41, %v111_v45  ;;  %v158_v47 = vpack.c.bf16 %v111_v45, %v111_v45  ;;  %v126_v48 = vsub.f32 1.0, %v111_v45 }
 0x1da   :  { %v133_v50 = vrot.slane %v132_v46, 4  ;;  %159 = vst [vmem:[%s2089_s5] sm:$0xf] %v158_v47  ;;  %v127_v51 = vmul.f32 %v126_v48, %v125_v44 }
 0x1dc   :  { %v129_v53 = vmul.f32 %v128_v52, %v127_v51  ;;  %v134_v54 = vadd.f32 %v133_v50, %v132_v46 }
 0x1de   :  { %v130_v55 = vsub.f32 %v89_v49, %v129_v53  ;;  %v135_v56 = vrot.slane %v134_v54, 2 }
 0x1e0   :  { %v136_v57 = vadd.f32 %v135_v56, %v134_v54  ;;  %v172_v8 = vmul.f32 0.99, %v130_v55 }
 0x1e2   :  { %v137_v58 = vrot.slane %v136_v57, 1  ;;  %v1617_v11 = vadd.f32 %v172_v8, %v167_v9 }
 0x1e4   :  { %v138_v59 = vadd.f32 %v137_v58, %v136_v57 }
 0x1e6   :  { %v139_v60 = vadd.f32 %v138_v59, %v74_v17  ;;  %v60_v17 = vld [vmem:[%s2090_s1] sm:$0xf] }
 0x1e7   :  { %v61_v19 = vunpack.c.l.bf16 %v60_v17 }
 0x1e8   :  { %v141_v61 = vsel %vm140_vm7, %v139_v60, -inf }
 0x1e9   :  { %142 = vmax.xlane.f32.xlu1 %v141_v61  ;;  %v1631_v21 = vadd.f32 %v156_v20, %v61_v19  ;;  %v168_v20 = vld [vmem:[%s2090_s1 + $0x4] sm:$0xf] }
 0x1eb   :  { %v1310_v22 = vadd.f32 -0.3, %v1631_v21 }
 0x1ed   :  { %v161_v23 = vpack.c.bf16 %v1310_v22, %v1310_v22  ;;  %v169_v22 = vunpack.c.l.bf16 %v168_v20 }
 0x1ef   :  { %162 = vst [vmem:[#allocation2] sm:$0xf] %v161_v23  ;;  %v251_v23 = vmul.f32 0.99, %v1631_v21 }
 0x276   :  { %v143_v62 = vpop.xlane.xlu1 %142 }
 0x277   :  { %v144_v63 = vrot.slane %v143_v62, 4 }
 0x279   :  { %v145_v0 = vmax.f32 %v143_v62, %v144_v63 }
 0x27b   :  { %v146_v2 = vrot.slane %v145_v0, 2 }
 0x27d   :  { %v147_v3 = vmax.f32 %v145_v0, %v146_v2 }
 0x27f   :  { %v148_v4 = vrot.slane %v147_v3, 1 }
 0x281   :  { %v149_v5 = vmax.f32 %v147_v3, %v148_v4 }
 0x283   :  { %1402 = vpush %v149_v5 }
 0x2b4   :  { %s1403_s13 = spop %1402 }
 0x2b5   :  { %s1309_s14 = sadd.f32 -350.0, %s1403_s13 }
 0x2b7   :  { %s152_s16 = smax.f32 %s1450_s15, %s1309_s14 }
 0x2b8   :  { %v153_v6 = vstv %s152_s16 }
 0x2b9   :  { %v154_v7 = vsub.f32 %v139_v60, %v153_v6 }
 0x2bb   :  { %163 = vst [vmem:[%s2086_s6] sm:$0x1] %v154_v7 }
 0x2c2   :  { %v1615_v10 = vld [vmem:[%s2086_s6] sm:$0x1] }
 0x2c3   :  { %v178_v12 = vrot.slane %v1615_v10, %v1582_v15 }
 0x2c5   :  { %vm180_vm8 = vcmp.gt.f32.partialorder %v1617_v11, %v178_v12  ;;  %v265_v12 = vld [vmem:[%s2084_s0 + $0x10] sm:$0xff] }
 0x2c6   :  { %vm181_vm9 = vmand %vm180_vm8, %vm56_vm0 }
 0x2c7   :  { %v1311_v13 = vsel %vm181_vm9, 1.0, %v1449_v1 }
 0x2c8   :  { %vm186_vm10 = vcmp.gt.f32.partialorder %v1311_v13, 0.0  ;;  %v184_v48 = vsub.f32 1.0, %v1311_v13 }
 0x2c9   :  { %v187_v16 = vsel %vm186_vm10, %v167_v9, -1e+30 }
 0x2ca   :  { %188 = vmax.xlane.f32.xlu1 %v187_v16  ;;  %v185_v55 = vmul.f32 %v184_v48, %v1617_v11 }
 0x357   :  { %v189_v24 = vpop.xlane.xlu1 %188 }
 0x358   :  { %vm190_vm11 = vcmp.ge.f32.partialorder %v187_v16, %v189_v24  ;;  %v208_v25 = vrot.slane %v189_v24, 4 }
 0x359   :  { %v191_v26 = vsel %vm190_vm11, %v1580_v14, 128 }
 0x35a   :  { %v209_v27 = vmax.f32 %v189_v24, %v208_v25  ;;  %v193_v28 = vshra.s32 %v191_v26, 16  ;;  %v192_v34 = vand.u32 65535, %v191_v26  ;;  %v1673_v24 = vadd.f32 %v251_v23, %v169_v22 }
 0x35c   :  { %v195_v29 = vcvt.s32.f32 %v193_v28  ;;  %v210_v30 = vrot.slane %v209_v27, 2  ;;  %v194_v36 = vcvt.s32.f32 %v192_v34  ;;  %v1313_v25 = vadd.f32 -0.3, %v1673_v24 }
 0x35e   :  { %196 = vmin.xlane.f32.xlu0 %v195_v29  ;;  %v211_v31 = vmax.f32 %v209_v27, %v210_v30  ;;  %v256_v26 = vpack.c.bf16 %v1313_v25, %v1313_v25  ;;  %v266_v25 = vld [vmem:[%s2090_s1 + $0x8] sm:$0xf] }
 0x360   :  { %v212_v32 = vrot.slane %v211_v31, 1  ;;  %v258_v27 = vrot.slane %v256_v26, 4  ;;  %v267_v26 = vunpack.c.l.bf16 %v266_v25 }
 0x362   :  { %v213_v33 = vmax.f32 %v211_v31, %v212_v32  ;;  %260 = vst [vmem:[#allocation2] sm:$0xf0] %v258_v27  ;;  %v349_v27 = vmul.f32 0.99, %v1673_v24 }
 0x364   :  { %1404 = vpush %v213_v33 }
 0x395   :  { %s1405_s4 = spop %1404 }
 0x396   :  { %p215_p1 = scmp.gt.f32.partialorder %s1405_s4, -1e+29 }
 0x398   :  { %s1635_s26 = scalar_select %p215_p1, 1, 0 }
 0x39a   :  { %s217_s27 = scvt.s32.f32 %s1635_s26 }
 0x39c   :  { %s1641_s29 = smax.f32 %s217_s27, %s166_s28  ;;  %v224_v54 = vstv %s217_s27 }
 0x3eb   :  { %v197_v35 = vpop.xlane.xlu0 %196 }
 0x3ec   :  { %vm198_vm12 = vcmp.eq.f32.partialorder %v195_v29, %v197_v35  ;;  %v203_v39 = vcvt.f32.s32 %v197_v35 }
 0x3ed   :  { %v199_v37 = vsel %vm198_vm12, %v194_v36, inf }
 0x3ee   :  { %200 = vmin.xlane.f32.xlu1 %v199_v37  ;;  %v204_v41 = vshll.u32 %v203_v39, 16 }
 0x3f2   :  { %219 = vmax.xlane.f32.xlu1 %v218_v38 }
 0x47b   :  { %v201_v40 = vpop.xlane.xlu1 %200 }
 0x47c   :  { %v202_v42 = vcvt.f32.s32 %v201_v40 }
 0x47e   :  { %v205_v44 = vadd.s32 %v204_v41, %v202_v42  ;;  %v316_v41 = vsel %vm56_vm0, %v265_v12, -1e+30 }
 0x47f   :  { %v220_v45 = vpop.xlane.xlu1 %219 }
 0x480   :  { %vm206_vm13 = vcmp.eq.s32.totalorder %v1580_v14, %v205_v44  ;;  %v221_v46 = vmul.f32 1.625, %v220_v45 }
 0x481   :  { %v207_v47 = vsel %vm206_vm13, %v1311_v13, 0.0 }
 0x482   :  { %v228_v49 = vmul.f32 %v227_v43, %v207_v47  ;;  %v253_v50 = vpack.c.bf16 %v207_v47, %v207_v47  ;;  %v222_v51 = vsub.f32 1.0, %v207_v47 }
 0x484   :  { %v229_v52 = vrot.slane %v228_v49, 4  ;;  %254 = vst [vmem:[%s2089_s5 + $0x4] sm:$0xf] %v253_v50  ;;  %v223_v53 = vmul.f32 %v222_v51, %v221_v46  ;;  %v325_v46 = vmul.f32 0.002, %v265_v12 }
 0x486   :  { %v225_v56 = vmul.f32 %v224_v54, %v223_v53  ;;  %v230_v57 = vadd.f32 %v229_v52, %v228_v49 }
 0x488   :  { %v226_v58 = vsub.f32 %v185_v55, %v225_v56  ;;  %v231_v59 = vrot.slane %v230_v57, 2 }
 0x48a   :  { %v232_v60 = vadd.f32 %v231_v59, %v230_v57 }
 0x48c   :  { %v233_v61 = vrot.slane %v232_v60, 1 }
 0x48e   :  { %v234_v62 = vadd.f32 %v233_v61, %v232_v60 }
 0x490   :  { %v235_v63 = vadd.f32 %v234_v62, %v1615_v10  ;;  %v270_v10 = vmul.f32 0.99, %v226_v58 }
 0x492   :  { %v236_v0 = vsel %vm140_vm7, %v235_v63, -inf  ;;  %v271_v16 = vadd.f32 %v270_v10, %v265_v12 }
 0x493   :  { %237 = vmax.xlane.f32.xlu0 %v236_v0 }
 0x520   :  { %v238_v2 = vpop.xlane.xlu0 %237 }
 0x521   :  { %v239_v3 = vrot.slane %v238_v2, 4 }
 0x523   :  { %v240_v4 = vmax.f32 %v238_v2, %v239_v3 }
 0x525   :  { %v241_v5 = vrot.slane %v240_v4, 2 }
 0x527   :  { %v242_v6 = vmax.f32 %v240_v4, %v241_v5 }
 0x529   :  { %v243_v7 = vrot.slane %v242_v6, 1 }
 0x52b   :  { %v244_v8 = vmax.f32 %v242_v6, %v243_v7 }
 0x52d   :  { %1406 = vpush %v244_v8 }
 0x55e   :  { %s1407_s10 = spop %1406 }
 0x55f   :  { %s1312_s11 = sadd.f32 -350.0, %s1407_s10 }
 0x561   :  { %s247_s12 = smax.f32 %s1450_s15, %s1312_s11 }
 0x562   :  { %v248_v9 = vstv %s247_s12 }
 0x563   :  { %v249_v11 = vsub.f32 %v235_v63, %v248_v9 }
 0x565   :  { %261 = vst [vmem:[%s2086_s6] sm:$0x1] %v249_v11 }
 0x56c   :  { %v1662_v13 = vld [vmem:[%s2086_s6] sm:$0x1] }
 0x56d   :  { %v276_v17 = vrot.slane %v1662_v13, %v1582_v15 }
 0x56f   :  { %vm278_vm14 = vcmp.gt.f32.partialorder %v271_v16, %v276_v17  ;;  %v360_v17 = vld [vmem:[%s2084_s0 + $0x18] sm:$0xff] }
 0x570   :  { %vm279_vm15 = vmand %vm278_vm14, %vm56_vm0 }
 0x571   :  { %v1314_v18 = vsel %vm279_vm15, 1.0, %v1449_v1 }
 0x572   :  { %vm284_vm1 = vcmp.gt.f32.partialorder %v1314_v18, 0.0  ;;  %v282_v51 = vsub.f32 1.0, %v1314_v18 }
 0x573   :  { %v285_v19 = vsel %vm284_vm1, %v265_v12, -1e+30 }
 0x574   :  { %286 = vmax.xlane.f32.xlu0 %v285_v19  ;;  %v283_v58 = vmul.f32 %v282_v51, %v271_v16 }
 0x601   :  { %v287_v28 = vpop.xlane.xlu0 %286 }
 0x602   :  { %vm288_vm2 = vcmp.ge.f32.partialorder %v285_v19, %v287_v28  ;;  %v306_v29 = vrot.slane %v287_v28, 4 }
 0x603   :  { %v289_v30 = vsel %vm288_vm2, %v1580_v14, 128 }
 0x604   :  { %v307_v31 = vmax.f32 %v287_v28, %v306_v29  ;;  %v291_v32 = vshra.s32 %v289_v30, 16  ;;  %v290_v37 = vand.u32 65535, %v289_v30  ;;  %v1709_v28 = vadd.f32 %v349_v27, %v267_v26  ;;  %v361_v27 = vld [vmem:[%s2090_s1 + $0xc] sm:$0xf] }
 0x606   :  { %v293_v33 = vcvt.s32.f32 %v291_v32  ;;  %v308_v34 = vrot.slane %v307_v31, 2  ;;  %v292_v39 = vcvt.s32.f32 %v290_v37  ;;  %v1316_v29 = vadd.f32 -0.3, %v1709_v28 }
 0x608   :  { %294 = vmin.xlane.f32.xlu1 %v293_v33  ;;  %v309_v35 = vmax.f32 %v307_v31, %v308_v34  ;;  %v354_v30 = vpack.c.bf16 %v1316_v29, %v1316_v29  ;;  %v362_v29 = vunpack.c.l.bf16 %v361_v27 }
 0x60a   :  { %v310_v21 = vrot.slane %v309_v35, 1  ;;  %355 = vst [vmem:[#allocation2 + $0x8] sm:$0xf] %v354_v30  ;;  %v444_v30 = vmul.f32 0.99, %v1709_v28 }
 0x60c   :  { %v311_v36 = vmax.f32 %v309_v35, %v310_v21 }
 0x60e   :  { %1408 = vpush %v311_v36 }
 0x63f   :  { %s1409_s21 = spop %1408 }
 0x640   :  { %p313_p2 = scmp.gt.f32.partialorder %s1409_s21, -1e+29 }
 0x642   :  { %s314_s22 = scalar_select %p313_p2, 1, 0 }
 0x644   :  { %s315_s23 = scvt.s32.f32 %s314_s22 }
 0x646   :  { %s1678_s24 = smax.f32 %s315_s23, %s1641_s29  ;;  %v322_v57 = vstv %s315_s23 }
 0x695   :  { %v295_v38 = vpop.xlane.xlu1 %294 }
 0x696   :  { %vm296_vm3 = vcmp.eq.f32.partialorder %v293_v33, %v295_v38  ;;  %v301_v42 = vcvt.f32.s32 %v295_v38 }
 0x697   :  { %v297_v40 = vsel %vm296_vm3, %v292_v39, inf }
 0x698   :  { %298 = vmin.xlane.f32.xlu0 %v297_v40  ;;  %v302_v44 = vshll.u32 %v301_v42, 16 }
 0x69c   :  { %317 = vmax.xlane.f32.xlu0 %v316_v41 }
 0x725   :  { %v299_v43 = vpop.xlane.xlu0 %298 }
 0x726   :  { %v300_v45 = vcvt.f32.s32 %v299_v43  ;;  %v411_v43 = vsel %vm56_vm0, %v360_v17, -1e+30 }
 0x728   :  { %v303_v47 = vadd.s32 %v302_v44, %v300_v45 }
 0x729   :  { %v318_v48 = vpop.xlane.xlu0 %317 }
 0x72a   :  { %vm304_vm4 = vcmp.eq.s32.totalorder %v1580_v14, %v303_v47  ;;  %v319_v49 = vmul.f32 1.625, %v318_v48  ;;  %v420_v48 = vmul.f32 0.002, %v360_v17 }
 0x72b   :  { %v305_v50 = vsel %vm304_vm4, %v1314_v18, 0.0 }
 0x72c   :  { %v326_v52 = vmul.f32 %v325_v46, %v305_v50  ;;  %v351_v53 = vpack.c.bf16 %v305_v50, %v305_v50  ;;  %v320_v54 = vsub.f32 1.0, %v305_v50 }
 0x72e   :  { %v327_v55 = vrot.slane %v326_v52, 4  ;;  %352 = vst [vmem:[%s2089_s5 + $0x8] sm:$0xf] %v351_v53  ;;  %v321_v56 = vmul.f32 %v320_v54, %v319_v49 }
 0x730   :  { %v323_v59 = vmul.f32 %v322_v57, %v321_v56  ;;  %v328_v60 = vadd.f32 %v327_v55, %v326_v52 }
 0x732   :  { %v324_v61 = vsub.f32 %v283_v58, %v323_v59  ;;  %v329_v62 = vrot.slane %v328_v60, 2 }
 0x734   :  { %v330_v63 = vadd.f32 %v329_v62, %v328_v60 }
 0x736   :  { %v331_v0 = vrot.slane %v330_v63, 1 }
 0x738   :  { %v332_v2 = vadd.f32 %v331_v0, %v330_v63 }
 0x73a   :  { %v333_v3 = vadd.f32 %v332_v2, %v1662_v13  ;;  %v365_v13 = vmul.f32 0.99, %v324_v61 }
 0x73c   :  { %v334_v4 = vsel %vm140_vm7, %v333_v3, -inf  ;;  %v366_v19 = vadd.f32 %v365_v13, %v360_v17 }
 0x73d   :  { %335 = vmax.xlane.f32.xlu1 %v334_v4 }
 0x7ca   :  { %v336_v5 = vpop.xlane.xlu1 %335 }
 0x7cb   :  { %v337_v6 = vrot.slane %v336_v5, 4 }
 0x7cd   :  { %v338_v7 = vmax.f32 %v336_v5, %v337_v6 }
 0x7cf   :  { %v339_v8 = vrot.slane %v338_v7, 2 }
 0x7d1   :  { %v340_v9 = vmax.f32 %v338_v7, %v339_v8 }
 0x7d3   :  { %v341_v11 = vrot.slane %v340_v9, 1 }
 0x7d5   :  { %v342_v10 = vmax.f32 %v340_v9, %v341_v11 }
 0x7d7   :  { %1410 = vpush %v342_v10 }
 0x808   :  { %s1411_s26 = spop %1410 }
 0x809   :  { %s1315_s27 = sadd.f32 -350.0, %s1411_s26 }
 0x80b   :  { %s345_s28 = smax.f32 %s1450_s15, %s1315_s27 }
 0x80c   :  { %v346_v12 = vstv %s345_s28 }
 0x80d   :  { %v347_v16 = vsub.f32 %v333_v3, %v346_v12 }
 0x80f   :  { %356 = vst [vmem:[%s2086_s6] sm:$0x1] %v347_v16 }
 0x816   :  { %v1698_v18 = vld [vmem:[%s2086_s6] sm:$0x1] }
 0x817   :  { %v371_v20 = vrot.slane %v1698_v18, %v1582_v15 }
 0x819   :  { %vm373_vm5 = vcmp.gt.f32.partialorder %v366_v19, %v371_v20 }
 0x81a   :  { %vm374_vm6 = vmand %vm373_vm5, %vm56_vm0 }
 0x81b   :  { %v1317_v22 = vsel %vm374_vm6, 1.0, %v1449_v1 }
 0x81c   :  { %vm379_vm8 = vcmp.gt.f32.partialorder %v1317_v22, 0.0  ;;  %v377_v53 = vsub.f32 1.0, %v1317_v22 }
 0x81d   :  { %v380_v23 = vsel %vm379_vm8, %v360_v17, -1e+30 }
 0x81e   :  { %381 = vmax.xlane.f32.xlu1 %v380_v23  ;;  %v378_v60 = vmul.f32 %v377_v53, %v366_v19  ;;  %v458_v19 = vld [vmem:[%s2084_s0 + $0x20] sm:$0xff] }
 0x8ab   :  { %v382_v31 = vpop.xlane.xlu1 %381 }
 0x8ac   :  { %vm383_vm9 = vcmp.ge.f32.partialorder %v380_v23, %v382_v31  ;;  %v401_v32 = vrot.slane %v382_v31, 4 }
 0x8ad   :  { %v384_v33 = vsel %vm383_vm9, %v1580_v14, 128 }
 0x8ae   :  { %v402_v34 = vmax.f32 %v382_v31, %v401_v32  ;;  %v386_v35 = vshra.s32 %v384_v33, 16  ;;  %v385_v39 = vand.u32 65535, %v384_v33  ;;  %v1745_v31 = vadd.f32 %v444_v30, %v362_v29 }
 0x8b0   :  { %v388_v21 = vcvt.s32.f32 %v386_v35  ;;  %v403_v36 = vrot.slane %v402_v34, 2  ;;  %v387_v41 = vcvt.s32.f32 %v385_v39  ;;  %v1319_v32 = vadd.f32 -0.3, %v1745_v31 }
 0x8b2   :  { %389 = vmin.xlane.f32.xlu0 %v388_v21  ;;  %v404_v37 = vmax.f32 %v402_v34, %v403_v36  ;;  %v449_v33 = vpack.c.bf16 %v1319_v32, %v1319_v32  ;;  %v459_v32 = vld [vmem:[%s2090_s1 + $0x10] sm:$0xf] }
 0x8b4   :  { %v405_v38 = vrot.slane %v404_v37, 1  ;;  %v451_v34 = vrot.slane %v449_v33, 4  ;;  %v460_v33 = vunpack.c.l.bf16 %v459_v32 }
 0x8b6   :  { %v406_v24 = vmax.f32 %v404_v37, %v405_v38  ;;  %453 = vst [vmem:[#allocation2 + $0x8] sm:$0xf0] %v451_v34  ;;  %v542_v34 = vmul.f32 0.99, %v1745_v31 }
 0x8b8   :  { %1412 = vpush %v406_v24 }
 0x8e9   :  { %s1413_s16 = spop %1412 }
 0x8ea   :  { %p408_p3 = scmp.gt.f32.partialorder %s1413_s16, -1e+29 }
 0x8ec   :  { %s409_s17 = scalar_select %p408_p3, 1, 0 }
 0x8ee   :  { %s410_s18 = scvt.s32.f32 %s409_s17 }
 0x8f0   :  { %s1714_s2 = smax.f32 %s410_s18, %s1678_s24  ;;  %v417_v59 = vstv %s410_s18 }
 0x93f   :  { %v390_v40 = vpop.xlane.xlu0 %389 }
 0x940   :  { %vm391_vm10 = vcmp.eq.f32.partialorder %v388_v21, %v390_v40  ;;  %v396_v44 = vcvt.f32.s32 %v390_v40 }
 0x941   :  { %v392_v42 = vsel %vm391_vm10, %v387_v41, inf }
 0x942   :  { %393 = vmin.xlane.f32.xlu1 %v392_v42  ;;  %v397_v46 = vshll.u32 %v396_v44, 16 }
 0x946   :  { %412 = vmax.xlane.f32.xlu1 %v411_v43 }
 0x9cf   :  { %v394_v45 = vpop.xlane.xlu1 %393 }
 0x9d0   :  { %v395_v47 = vcvt.f32.s32 %v394_v45 }
 0x9d2   :  { %v398_v49 = vadd.s32 %v397_v46, %v395_v47  ;;  %v509_v46 = vsel %vm56_vm0, %v458_v19, -1e+30 }
 0x9d3   :  { %v413_v50 = vpop.xlane.xlu1 %412 }
 0x9d4   :  { %vm399_vm11 = vcmp.eq.s32.totalorder %v1580_v14, %v398_v49  ;;  %v414_v51 = vmul.f32 1.625, %v413_v50 }
 0x9d5   :  { %v400_v52 = vsel %vm399_vm11, %v1317_v22, 0.0 }
 0x9d6   :  { %v421_v54 = vmul.f32 %v420_v48, %v400_v52  ;;  %v446_v55 = vpack.c.bf16 %v400_v52, %v400_v52  ;;  %v415_v56 = vsub.f32 1.0, %v400_v52 }
 0x9d8   :  { %v422_v57 = vrot.slane %v421_v54, 4  ;;  %447 = vst [vmem:[%s2089_s5 + $0xc] sm:$0xf] %v446_v55  ;;  %v416_v58 = vmul.f32 %v415_v56, %v414_v51  ;;  %v518_v51 = vmul.f32 0.002, %v458_v19 }
 0x9da   :  { %v418_v61 = vmul.f32 %v417_v59, %v416_v58  ;;  %v423_v62 = vadd.f32 %v422_v57, %v421_v54 }
 0x9dc   :  { %v419_v63 = vsub.f32 %v378_v60, %v418_v61  ;;  %v424_v0 = vrot.slane %v423_v62, 2 }
 0x9de   :  { %v425_v2 = vadd.f32 %v424_v0, %v423_v62 }
 0x9e0   :  { %v426_v3 = vrot.slane %v425_v2, 1 }
 0x9e2   :  { %v427_v4 = vadd.f32 %v426_v3, %v425_v2 }
 0x9e4   :  { %v428_v5 = vadd.f32 %v427_v4, %v1698_v18  ;;  %v463_v18 = vmul.f32 0.99, %v419_v63 }
 0x9e6   :  { %v429_v6 = vsel %vm140_vm7, %v428_v5, -inf  ;;  %v464_v22 = vadd.f32 %v463_v18, %v458_v19 }
 0x9e7   :  { %430 = vmax.xlane.f32.xlu0 %v429_v6 }
 0xa74   :  { %v431_v7 = vpop.xlane.xlu0 %430 }
 0xa75   :  { %v432_v8 = vrot.slane %v431_v7, 4 }
 0xa77   :  { %v433_v9 = vmax.f32 %v431_v7, %v432_v8 }
 0xa79   :  { %v434_v11 = vrot.slane %v433_v9, 2 }
 0xa7b   :  { %v435_v10 = vmax.f32 %v433_v9, %v434_v11 }
 0xa7d   :  { %v436_v12 = vrot.slane %v435_v10, 1 }
 0xa7f   :  { %v437_v16 = vmax.f32 %v435_v10, %v436_v12 }
 0xa81   :  { %1414 = vpush %v437_v16 }
 0xab2   :  { %s1415_s21 = spop %1414 }
 0xab3   :  { %s1318_s22 = sadd.f32 -350.0, %s1415_s21 }
 0xab5   :  { %s440_s23 = smax.f32 %s1450_s15, %s1318_s22 }
 0xab6   :  { %v441_v13 = vstv %s440_s23 }
 0xab7   :  { %v442_v17 = vsub.f32 %v428_v5, %v441_v13 }
 0xab9   :  { %454 = vst [vmem:[%s2086_s6] sm:$0x1] %v442_v17 }
 0xac0   :  { %v1734_v20 = vld [vmem:[%s2086_s6] sm:$0x1] }
 0xac1   :  { %v469_v23 = vrot.slane %v1734_v20, %v1582_v15 }
 0xac3   :  { %vm471_vm12 = vcmp.gt.f32.partialorder %v464_v22, %v469_v23  ;;  %v553_v23 = vld [vmem:[%s2084_s0 + $0x28] sm:$0xff] }
 0xac4   :  { %vm472_vm13 = vmand %vm471_vm12, %vm56_vm0 }
 0xac5   :  { %v1320_v25 = vsel %vm472_vm13, 1.0, %v1449_v1 }
 0xac6   :  { %vm477_vm14 = vcmp.gt.f32.partialorder %v1320_v25, 0.0  ;;  %v475_v56 = vsub.f32 1.0, %v1320_v25 }
 0xac7   :  { %v478_v26 = vsel %vm477_vm14, %v458_v19, -1e+30 }
 0xac8   :  { %479 = vmax.xlane.f32.xlu0 %v478_v26  ;;  %v476_v63 = vmul.f32 %v475_v56, %v464_v22 }
 0xb55   :  { %v480_v35 = vpop.xlane.xlu0 %479 }
 0xb56   :  { %vm481_vm15 = vcmp.ge.f32.partialorder %v478_v26, %v480_v35  ;;  %v499_v21 = vrot.slane %v480_v35, 4 }
 0xb57   :  { %v482_v36 = vsel %vm481_vm15, %v1580_v14, 128 }
 0xb58   :  { %v500_v37 = vmax.f32 %v480_v35, %v499_v21  ;;  %v484_v38 = vshra.s32 %v482_v36, 16  ;;  %v483_v42 = vand.u32 65535, %v482_v36  ;;  %v1781_v35 = vadd.f32 %v542_v34, %v460_v33  ;;  %v554_v34 = vld [vmem:[%s2090_s1 + $0x14] sm:$0xf] }
 0xb5a   :  { %v486_v24 = vcvt.s32.f32 %v484_v38  ;;  %v501_v39 = vrot.slane %v500_v37, 2  ;;  %v485_v44 = vcvt.s32.f32 %v483_v42  ;;  %v1322_v21 = vadd.f32 -0.3, %v1781_v35 }
 0xb5c   :  { %487 = vmin.xlane.f32.xlu1 %v486_v24  ;;  %v502_v40 = vmax.f32 %v500_v37, %v501_v39  ;;  %v547_v36 = vpack.c.bf16 %v1322_v21, %v1322_v21  ;;  %v555_v21 = vunpack.c.l.bf16 %v554_v34 }
 0xb5e   :  { %v503_v28 = vrot.slane %v502_v40, 1  ;;  %548 = vst [vmem:[#allocation2 + $0x10] sm:$0xf] %v547_v36  ;;  %v637_v36 = vmul.f32 0.99, %v1781_v35 }
 0xb60   :  { %v504_v41 = vmax.f32 %v502_v40, %v503_v28 }
 0xb62   :  { %1416 = vpush %v504_v41 }
 0xb93   :  { %s1417_s30 = spop %1416 }
 0xb94   :  { %p506_p4 = scmp.gt.f32.partialorder %s1417_s30, -1e+29 }
 0xb96   :  { %s507_s10 = scalar_select %p506_p4, 1, 0 }
 0xb98   :  { %s508_s11 = scvt.s32.f32 %s507_s10 }
 0xb9a   :  { %s1750_s12 = smax.f32 %s508_s11, %s1714_s2  ;;  %v515_v62 = vstv %s508_s11 }
 0xbe9   :  { %v488_v43 = vpop.xlane.xlu1 %487 }
 0xbea   :  { %vm489_vm1 = vcmp.eq.f32.partialorder %v486_v24, %v488_v43  ;;  %v494_v47 = vcvt.f32.s32 %v488_v43 }
 0xbeb   :  { %v490_v45 = vsel %vm489_vm1, %v485_v44, inf }
 0xbec   :  { %491 = vmin.xlane.f32.xlu0 %v490_v45  ;;  %v495_v49 = vshll.u32 %v494_v47, 16  ;;  %v604_v47 = vsel %vm56_vm0, %v553_v23, -1e+30 }
 0xbf0   :  { %510 = vmax.xlane.f32.xlu0 %v509_v46 }
 0xc79   :  { %v492_v48 = vpop.xlane.xlu0 %491 }
 0xc7a   :  { %v493_v50 = vcvt.f32.s32 %v492_v48 }
 0xc7c   :  { %v496_v52 = vadd.s32 %v495_v49, %v493_v50 }
 0xc7d   :  { %v511_v53 = vpop.xlane.xlu0 %510 }
 0xc7e   :  { %vm497_vm2 = vcmp.eq.s32.totalorder %v1580_v14, %v496_v52  ;;  %v512_v54 = vmul.f32 1.625, %v511_v53  ;;  %v613_v52 = vmul.f32 0.002, %v553_v23 }
 0xc7f   :  { %v498_v55 = vsel %vm497_vm2, %v1320_v25, 0.0 }
 0xc80   :  { %v519_v57 = vmul.f32 %v518_v51, %v498_v55  ;;  %v544_v58 = vpack.c.bf16 %v498_v55, %v498_v55  ;;  %v513_v59 = vsub.f32 1.0, %v498_v55 }
 0xc82   :  { %v520_v60 = vrot.slane %v519_v57, 4  ;;  %545 = vst [vmem:[%s2089_s5 + $0x10] sm:$0xf] %v544_v58  ;;  %v514_v61 = vmul.f32 %v513_v59, %v512_v54 }
 0xc84   :  { %v516_v0 = vmul.f32 %v515_v62, %v514_v61  ;;  %v521_v2 = vadd.f32 %v520_v60, %v519_v57 }
 0xc86   :  { %v517_v3 = vsub.f32 %v476_v63, %v516_v0  ;;  %v522_v4 = vrot.slane %v521_v2, 2 }
 0xc88   :  { %v523_v5 = vadd.f32 %v522_v4, %v521_v2 }
 0xc8a   :  { %v524_v6 = vrot.slane %v523_v5, 1 }
 0xc8c   :  { %v525_v7 = vadd.f32 %v524_v6, %v523_v5 }
 0xc8e   :  { %v526_v8 = vadd.f32 %v525_v7, %v1734_v20  ;;  %v558_v20 = vmul.f32 0.99, %v517_v3 }
 0xc90   :  { %v527_v9 = vsel %vm140_vm7, %v526_v8, -inf  ;;  %v559_v26 = vadd.f32 %v558_v20, %v553_v23 }
 0xc91   :  { %528 = vmax.xlane.f32.xlu1 %v527_v9 }
 0xd1e   :  { %v529_v11 = vpop.xlane.xlu1 %528 }
 0xd1f   :  { %v530_v10 = vrot.slane %v529_v11, 4 }
 0xd21   :  { %v531_v12 = vmax.f32 %v529_v11, %v530_v10 }
 0xd23   :  { %v532_v16 = vrot.slane %v531_v12, 2 }
 0xd25   :  { %v533_v13 = vmax.f32 %v531_v12, %v532_v16 }
 0xd27   :  { %v534_v17 = vrot.slane %v533_v13, 1 }
 0xd29   :  { %v535_v18 = vmax.f32 %v533_v13, %v534_v17 }
 0xd2b   :  { %1418 = vpush %v535_v18 }
 0xd5c   :  { %s1419_s16 = spop %1418 }
 0xd5d   :  { %s1321_s17 = sadd.f32 -350.0, %s1419_s16 }
 0xd5f   :  { %s538_s18 = smax.f32 %s1450_s15, %s1321_s17 }
 0xd60   :  { %v539_v19 = vstv %s538_s18 }
 0xd61   :  { %v540_v22 = vsub.f32 %v526_v8, %v539_v19 }
 0xd63   :  { %549 = vst [vmem:[%s2086_s6] sm:$0x1] %v540_v22 }
 0xd6a   :  { %v1770_v25 = vld [vmem:[%s2086_s6] sm:$0x1] }
 0xd6b   :  { %v564_v27 = vrot.slane %v1770_v25, %v1582_v15 }
 0xd6d   :  { %vm566_vm3 = vcmp.gt.f32.partialorder %v559_v26, %v564_v27 }
 0xd6e   :  { %vm567_vm4 = vmand %vm566_vm3, %vm56_vm0 }
 0xd6f   :  { %v1323_v29 = vsel %vm567_vm4, 1.0, %v1449_v1 }
 0xd70   :  { %vm572_vm5 = vcmp.gt.f32.partialorder %v1323_v29, 0.0  ;;  %v570_v57 = vsub.f32 1.0, %v1323_v29 }
 0xd71   :  { %v573_v30 = vsel %vm572_vm5, %v553_v23, -1e+30 }
 0xd72   :  { %574 = vmax.xlane.f32.xlu1 %v573_v30  ;;  %v571_v0 = vmul.f32 %v570_v57, %v559_v26 }
 0xdff   :  { %v575_v37 = vpop.xlane.xlu1 %574 }
 0xe00   :  { %vm576_vm6 = vcmp.ge.f32.partialorder %v573_v30, %v575_v37  ;;  %v594_v1 = vrot.slane %v575_v37, 4  ;;  %v1815_v30 = vld [vmem:[%s2087_s9] sm:$0xff] }
 0xe01   :  { %v577_v38 = vsel %vm576_vm6, %v1580_v14, 128 }
 0xe02   :  { %v595_v24 = vmax.f32 %v575_v37, %v594_v1  ;;  %v579_v39 = vshra.s32 %v577_v38, 16  ;;  %v578_v43 = vand.u32 65535, %v577_v38  ;;  %v1822_v37 = vadd.f32 %v637_v36, %v555_v21 }
 0xe04   :  { %v581_v40 = vcvt.s32.f32 %v579_v39  ;;  %v596_v28 = vrot.slane %v595_v24, 2  ;;  %v580_v45 = vcvt.s32.f32 %v578_v43  ;;  %v1325_v1 = vadd.f32 -0.3, %v1822_v37 }
 0xe06   :  { %582 = vmin.xlane.f32.xlu0 %v581_v40  ;;  %v597_v41 = vmax.f32 %v595_v24, %v596_v28  ;;  %v642_v38 = vpack.c.bf16 %v1325_v1, %v1325_v1  ;;  %v652_v1 = vld [vmem:[%s2090_s1 + $0x18] sm:$0xf] }
 0xe08   :  { %v598_v42 = vrot.slane %v597_v41, 1  ;;  %v644_v24 = vrot.slane %v642_v38, 4  ;;  %v653_v38 = vunpack.c.l.bf16 %v652_v1 }
 0xe0a   :  { %v599_v31 = vmax.f32 %v597_v41, %v598_v42  ;;  %646 = vst [vmem:[#allocation2 + $0x10] sm:$0xf0] %v644_v24  ;;  %v735_v24 = vmul.f32 0.99, %v1822_v37 }
 0xe0c   :  { %1420 = vpush %v599_v31 }
 0xe3d   :  { %s1421_s4 = spop %1420 }
 0xe3e   :  { %p601_p5 = scmp.gt.f32.partialorder %s1421_s4, -1e+29 }
 0xe40   :  { %s602_s26 = scalar_select %p601_p5, 1, 0 }
 0xe42   :  { %s603_s27 = scvt.s32.f32 %s602_s26 }
 0xe44   :  { %s1786_s28 = smax.f32 %s603_s27, %s1750_s12  ;;  %v610_v63 = vstv %s603_s27 }
 0xe93   :  { %v583_v44 = vpop.xlane.xlu0 %582 }
 0xe94   :  { %vm584_vm8 = vcmp.eq.f32.partialorder %v581_v40, %v583_v44  ;;  %v589_v48 = vcvt.f32.s32 %v583_v44 }
 0xe95   :  { %v585_v46 = vsel %vm584_vm8, %v580_v45, inf }
 0xe96   :  { %586 = vmin.xlane.f32.xlu1 %v585_v46  ;;  %v590_v50 = vshll.u32 %v589_v48, 16 }
 0xe9a   :  { %605 = vmax.xlane.f32.xlu1 %v604_v47 }
 0xf23   :  { %v587_v49 = vpop.xlane.xlu1 %586 }
 0xf24   :  { %v588_v51 = vcvt.f32.s32 %v587_v49 }
 0xf26   :  { %v591_v53 = vadd.s32 %v590_v50, %v588_v51 }
 0xf27   :  { %v606_v54 = vpop.xlane.xlu1 %605 }
 0xf28   :  { %vm592_vm9 = vcmp.eq.s32.totalorder %v1580_v14, %v591_v53  ;;  %v607_v55 = vmul.f32 1.625, %v606_v54 }
 0xf29   :  { %v593_v56 = vsel %vm592_vm9, %v1323_v29, 0.0 }
 0xf2a   :  { %v614_v58 = vmul.f32 %v613_v52, %v593_v56  ;;  %v639_v59 = vpack.c.bf16 %v593_v56, %v593_v56  ;;  %v608_v60 = vsub.f32 1.0, %v593_v56 }
 0xf2c   :  { %v615_v61 = vrot.slane %v614_v58, 4  ;;  %640 = vst [vmem:[%s2089_s5 + $0x14] sm:$0xf] %v639_v59  ;;  %v609_v62 = vmul.f32 %v608_v60, %v607_v55 }
 0xf2e   :  { %v611_v2 = vmul.f32 %v610_v63, %v609_v62  ;;  %v616_v3 = vadd.f32 %v615_v61, %v614_v58 }
 0xf30   :  { %v612_v4 = vsub.f32 %v571_v0, %v611_v2  ;;  %v617_v5 = vrot.slane %v616_v3, 2 }
 0xf32   :  { %v618_v6 = vadd.f32 %v617_v5, %v616_v3  ;;  %v656_v23 = vmul.f32 0.99, %v612_v4 }
 0xf34   :  { %v619_v7 = vrot.slane %v618_v6, 1 }
 0xf36   :  { %v620_v8 = vadd.f32 %v619_v7, %v618_v6 }
 0xf38   :  { %v621_v9 = vadd.f32 %v620_v8, %v1770_v25  ;;  %v651_v25 = vld [vmem:[%s2084_s0 + $0x30] sm:$0xff] }
 0xf39   :  { %v657_v27 = vadd.f32 %v656_v23, %v651_v25  ;;  %v702_v50 = vsel %vm56_vm0, %v651_v25, -1e+30  ;;  %v711_v55 = vmul.f32 0.002, %v651_v25 }
 0xf3a   :  { %v622_v11 = vsel %vm140_vm7, %v621_v9, -inf }
 0xf3b   :  { %623 = vmax.xlane.f32.xlu0 %v622_v11 }
 0xfc8   :  { %v624_v10 = vpop.xlane.xlu0 %623 }
 0xfc9   :  { %v625_v12 = vrot.slane %v624_v10, 4 }
 0xfcb   :  { %v626_v16 = vmax.f32 %v624_v10, %v625_v12 }
 0xfcd   :  { %v627_v13 = vrot.slane %v626_v16, 2 }
 0xfcf   :  { %v628_v17 = vmax.f32 %v626_v16, %v627_v13 }
 0xfd1   :  { %v629_v18 = vrot.slane %v628_v17, 1 }
 0xfd3   :  { %v630_v19 = vmax.f32 %v628_v17, %v629_v18 }
 0xfd5   :  { %1422 = vpush %v630_v19 }
0x1006   :  { %s1423_s30 = spop %1422 }
0x1007   :  { %s1324_s10 = sadd.f32 -350.0, %s1423_s30 }
0x1009   :  { %s633_s11 = smax.f32 %s1450_s15, %s1324_s10 }
0x100a   :  { %v634_v22 = vstv %s633_s11 }
0x100b   :  { %v635_v20 = vsub.f32 %v621_v9, %v634_v22 }
0x100d   :  { %647 = vst [vmem:[%s2086_s6] sm:$0x1] %v635_v20 }
0x1014   :  { %v1806_v26 = vld [vmem:[%s2086_s6] sm:$0x1] }
0x1015   :  { %v662_v29 = vrot.slane %v1806_v26, %v1582_v15 }
0x1017   :  { %vm664_vm10 = vcmp.gt.f32.partialorder %v657_v27, %v662_v29  ;;  %v746_v29 = vld [vmem:[%s2084_s0 + $0x38] sm:$0xff] }
0x1018   :  { %vm665_vm11 = vmand %vm664_vm10, %vm56_vm0 }
0x1019   :  { %v1326_v32 = vsel %vm665_vm11, 1.0, %v1815_v30 }
0x101a   :  { %vm670_vm12 = vcmp.gt.f32.partialorder %v1326_v32, 0.0  ;;  %v668_v60 = vsub.f32 1.0, %v1326_v32 }
0x101b   :  { %v671_v33 = vsel %vm670_vm12, %v651_v25, -1e+30 }
0x101c   :  { %672 = vmax.xlane.f32.xlu0 %v671_v33  ;;  %v669_v4 = vmul.f32 %v668_v60, %v657_v27 }
0x10a9   :  { %v673_v39 = vpop.xlane.xlu0 %672 }
0x10aa   :  { %vm674_vm13 = vcmp.ge.f32.partialorder %v671_v33, %v673_v39  ;;  %v692_v40 = vrot.slane %v673_v39, 4 }
0x10ab   :  { %v675_v28 = vsel %vm674_vm13, %v1580_v14, 128 }
0x10ac   :  { %v693_v41 = vmax.f32 %v673_v39, %v692_v40  ;;  %v677_v42 = vshra.s32 %v675_v28, 16  ;;  %v676_v46 = vand.u32 65535, %v675_v28  ;;  %v1858_v39 = vadd.f32 %v735_v24, %v653_v38  ;;  %v747_v24 = vld [vmem:[%s2090_s1 + $0x1c] sm:$0xf] }
0x10ae   :  { %v679_v31 = vcvt.s32.f32 %v677_v42  ;;  %v694_v43 = vrot.slane %v693_v41, 2  ;;  %v678_v48 = vcvt.s32.f32 %v676_v46  ;;  %v1328_v40 = vadd.f32 -0.3, %v1858_v39 }
0x10b0   :  { %680 = vmin.xlane.f32.xlu1 %v679_v31  ;;  %v695_v44 = vmax.f32 %v693_v41, %v694_v43  ;;  %v740_v28 = vpack.c.bf16 %v1328_v40, %v1328_v40  ;;  %v748_v40 = vunpack.c.l.bf16 %v747_v24 }
0x10b2   :  { %v696_v35 = vrot.slane %v695_v44, 1  ;;  %741 = vst [vmem:[#allocation2 + $0x18] sm:$0xf] %v740_v28  ;;  %v830_v28 = vmul.f32 0.99, %v1858_v39 }
0x10b4   :  { %v697_v45 = vmax.f32 %v695_v44, %v696_v35 }
0x10b6   :  { %1424 = vpush %v697_v45 }
0x10e7   :  { %s1425_s22 = spop %1424 }
0x10e8   :  { %p699_p6 = scmp.gt.f32.partialorder %s1425_s22, -1e+29 }
0x10ea   :  { %s700_s23 = scalar_select %p699_p6, 1, 0 }
0x10ec   :  { %s701_s24 = scvt.s32.f32 %s700_s23 }
0x10ee   :  { %s1827_s25 = smax.f32 %s701_s24, %s1786_s28  ;;  %v708_v3 = vstv %s701_s24 }
0x113d   :  { %v681_v47 = vpop.xlane.xlu1 %680 }
0x113e   :  { %vm682_vm14 = vcmp.eq.f32.partialorder %v679_v31, %v681_v47  ;;  %v687_v51 = vcvt.f32.s32 %v681_v47 }
0x113f   :  { %v683_v49 = vsel %vm682_vm14, %v678_v48, inf }
0x1140   :  { %684 = vmin.xlane.f32.xlu0 %v683_v49  ;;  %v688_v53 = vshll.u32 %v687_v51, 16 }
0x1144   :  { %703 = vmax.xlane.f32.xlu0 %v702_v50 }
0x11cd   :  { %v685_v52 = vpop.xlane.xlu0 %684 }
0x11ce   :  { %v686_v54 = vcvt.f32.s32 %v685_v52  ;;  %v797_v52 = vsel %vm56_vm0, %v746_v29, -1e+30 }
0x11d0   :  { %v689_v56 = vadd.s32 %v688_v53, %v686_v54 }
0x11d1   :  { %v704_v57 = vpop.xlane.xlu0 %703 }
0x11d2   :  { %vm690_vm15 = vcmp.eq.s32.totalorder %v1580_v14, %v689_v56  ;;  %v705_v58 = vmul.f32 1.625, %v704_v57  ;;  %v806_v57 = vmul.f32 0.002, %v746_v29 }
0x11d3   :  { %v691_v59 = vsel %vm690_vm15, %v1326_v32, 0.0 }
0x11d4   :  { %v712_v61 = vmul.f32 %v711_v55, %v691_v59  ;;  %v737_v62 = vpack.c.bf16 %v691_v59, %v691_v59  ;;  %v706_v63 = vsub.f32 1.0, %v691_v59 }
0x11d6   :  { %v713_v0 = vrot.slane %v712_v61, 4  ;;  %738 = vst [vmem:[%s2089_s5 + $0x18] sm:$0xf] %v737_v62  ;;  %v707_v2 = vmul.f32 %v706_v63, %v705_v58 }
0x11d8   :  { %v709_v5 = vmul.f32 %v708_v3, %v707_v2  ;;  %v714_v6 = vadd.f32 %v713_v0, %v712_v61 }
0x11da   :  { %v710_v7 = vsub.f32 %v669_v4, %v709_v5  ;;  %v715_v8 = vrot.slane %v714_v6, 2 }
0x11dc   :  { %v716_v9 = vadd.f32 %v715_v8, %v714_v6 }
0x11de   :  { %v717_v11 = vrot.slane %v716_v9, 1 }
0x11e0   :  { %v718_v10 = vadd.f32 %v717_v11, %v716_v9 }
0x11e2   :  { %v719_v12 = vadd.f32 %v718_v10, %v1806_v26  ;;  %v751_v26 = vmul.f32 0.99, %v710_v7 }
0x11e4   :  { %v720_v16 = vsel %vm140_vm7, %v719_v12, -inf  ;;  %v752_v33 = vadd.f32 %v751_v26, %v746_v29 }
0x11e5   :  { %721 = vmax.xlane.f32.xlu1 %v720_v16 }
0x1272   :  { %v722_v13 = vpop.xlane.xlu1 %721 }
0x1273   :  { %v723_v17 = vrot.slane %v722_v13, 4 }
0x1275   :  { %v724_v18 = vmax.f32 %v722_v13, %v723_v17 }
0x1277   :  { %v725_v19 = vrot.slane %v724_v18, 2 }
0x1279   :  { %v726_v22 = vmax.f32 %v724_v18, %v725_v19 }
0x127b   :  { %v727_v20 = vrot.slane %v726_v22, 1 }
0x127d   :  { %v728_v23 = vmax.f32 %v726_v22, %v727_v20 }
0x127f   :  { %1426 = vpush %v728_v23 }
0x12b0   :  { %s1427_s27 = spop %1426 }
0x12b1   :  { %s1327_s28 = sadd.f32 -350.0, %s1427_s27 }
0x12b3   :  { %s731_s29 = smax.f32 %s1450_s15, %s1327_s28 }
0x12b4   :  { %v732_v25 = vstv %s731_s29 }
0x12b5   :  { %v733_v27 = vsub.f32 %v719_v12, %v732_v25 }
0x12b7   :  { %742 = vst [vmem:[%s2086_s6] sm:$0x1] %v733_v27 }
0x12be   :  { %v1847_v32 = vld [vmem:[%s2086_s6] sm:$0x1] }
0x12bf   :  { %v757_v34 = vrot.slane %v1847_v32, %v1582_v15 }
0x12c1   :  { %vm759_vm1 = vcmp.gt.f32.partialorder %v752_v33, %v757_v34 }
0x12c2   :  { %vm760_vm2 = vmand %vm759_vm1, %vm56_vm0 }
0x12c3   :  { %v1329_v21 = vsel %vm760_vm2, 1.0, %v1815_v30 }
0x12c4   :  { %vm765_vm3 = vcmp.gt.f32.partialorder %v1329_v21, 0.0  ;;  %v763_v62 = vsub.f32 1.0, %v1329_v21 }
0x12c5   :  { %v766_v36 = vsel %vm765_vm3, %v746_v29, -1e+30 }
0x12c6   :  { %767 = vmax.xlane.f32.xlu1 %v766_v36  ;;  %v764_v6 = vmul.f32 %v763_v62, %v752_v33  ;;  %v844_v33 = vld [vmem:[%s2084_s0 + $0x40] sm:$0xff] }
0x1353   :  { %v768_v41 = vpop.xlane.xlu1 %767 }
0x1354   :  { %vm769_vm4 = vcmp.ge.f32.partialorder %v766_v36, %v768_v41  ;;  %v787_v42 = vrot.slane %v768_v41, 4 }
0x1355   :  { %v770_v31 = vsel %vm769_vm4, %v1580_v14, 128 }
0x1356   :  { %v788_v43 = vmax.f32 %v768_v41, %v787_v42  ;;  %v772_v44 = vshra.s32 %v770_v31, 16  ;;  %v771_v48 = vand.u32 65535, %v770_v31  ;;  %v1894_v41 = vadd.f32 %v830_v28, %v748_v40 }
0x1358   :  { %v774_v35 = vcvt.s32.f32 %v772_v44  ;;  %v789_v45 = vrot.slane %v788_v43, 2  ;;  %v773_v50 = vcvt.s32.f32 %v771_v48  ;;  %v1331_v42 = vadd.f32 -0.3, %v1894_v41 }
0x135a   :  { %775 = vmin.xlane.f32.xlu0 %v774_v35  ;;  %v790_v46 = vmax.f32 %v788_v43, %v789_v45  ;;  %v835_v31 = vpack.c.bf16 %v1331_v42, %v1331_v42  ;;  %v845_v42 = vld [vmem:[%s2090_s1 + $0x20] sm:$0xf] }
0x135c   :  { %v791_v47 = vrot.slane %v790_v46, 1  ;;  %v837_v43 = vrot.slane %v835_v31, 4  ;;  %v846_v31 = vunpack.c.l.bf16 %v845_v42 }
0x135e   :  { %v792_v37 = vmax.f32 %v790_v46, %v791_v47  ;;  %839 = vst [vmem:[#allocation2 + $0x18] sm:$0xf0] %v837_v43  ;;  %v928_v43 = vmul.f32 0.99, %v1894_v41 }
0x1360   :  { %1428 = vpush %v792_v37 }
0x1391   :  { %s1429_s17 = spop %1428 }
0x1392   :  { %p794_p7 = scmp.gt.f32.partialorder %s1429_s17, -1e+29 }
0x1394   :  { %s795_s18 = scalar_select %p794_p7, 1, 0 }
0x1396   :  { %s796_s2 = scvt.s32.f32 %s795_s18 }
0x1398   :  { %s1863_s19 = smax.f32 %s796_s2, %s1827_s25  ;;  %v803_v5 = vstv %s796_s2 }
0x13e7   :  { %v776_v49 = vpop.xlane.xlu0 %775 }
0x13e8   :  { %vm777_vm5 = vcmp.eq.f32.partialorder %v774_v35, %v776_v49  ;;  %v782_v53 = vcvt.f32.s32 %v776_v49 }
0x13e9   :  { %v778_v51 = vsel %vm777_vm5, %v773_v50, inf }
0x13ea   :  { %779 = vmin.xlane.f32.xlu1 %v778_v51  ;;  %v783_v55 = vshll.u32 %v782_v53, 16 }
0x13ee   :  { %798 = vmax.xlane.f32.xlu1 %v797_v52 }
0x1477   :  { %v780_v54 = vpop.xlane.xlu1 %779 }
0x1478   :  { %v781_v56 = vcvt.f32.s32 %v780_v54 }
0x147a   :  { %v784_v58 = vadd.s32 %v783_v55, %v781_v56  ;;  %v895_v55 = vsel %vm56_vm0, %v844_v33, -1e+30 }
0x147b   :  { %v799_v59 = vpop.xlane.xlu1 %798 }
0x147c   :  { %vm785_vm6 = vcmp.eq.s32.totalorder %v1580_v14, %v784_v58  ;;  %v800_v60 = vmul.f32 1.625, %v799_v59 }
0x147d   :  { %v786_v61 = vsel %vm785_vm6, %v1329_v21, 0.0 }
0x147e   :  { %v807_v63 = vmul.f32 %v806_v57, %v786_v61  ;;  %v832_v0 = vpack.c.bf16 %v786_v61, %v786_v61  ;;  %v801_v2 = vsub.f32 1.0, %v786_v61 }
0x1480   :  { %v808_v3 = vrot.slane %v807_v63, 4  ;;  %833 = vst [vmem:[%s2089_s5 + $0x1c] sm:$0xf] %v832_v0  ;;  %v802_v4 = vmul.f32 %v801_v2, %v800_v60  ;;  %v904_v60 = vmul.f32 0.002, %v844_v33 }
0x1482   :  { %v804_v7 = vmul.f32 %v803_v5, %v802_v4  ;;  %v809_v8 = vadd.f32 %v808_v3, %v807_v63 }
0x1484   :  { %v805_v9 = vsub.f32 %v764_v6, %v804_v7  ;;  %v810_v11 = vrot.slane %v809_v8, 2 }
0x1486   :  { %v811_v10 = vadd.f32 %v810_v11, %v809_v8 }
0x1488   :  { %v812_v12 = vrot.slane %v811_v10, 1 }
0x148a   :  { %v813_v16 = vadd.f32 %v812_v12, %v811_v10 }
0x148c   :  { %v814_v13 = vadd.f32 %v813_v16, %v1847_v32  ;;  %v849_v32 = vmul.f32 0.99, %v805_v9 }
0x148e   :  { %v815_v17 = vsel %vm140_vm7, %v814_v13, -inf  ;;  %v850_v21 = vadd.f32 %v849_v32, %v844_v33 }
0x148f   :  { %816 = vmax.xlane.f32.xlu0 %v815_v17 }
0x151c   :  { %v817_v18 = vpop.xlane.xlu0 %816 }
0x151d   :  { %v818_v19 = vrot.slane %v817_v18, 4 }
0x151f   :  { %v819_v22 = vmax.f32 %v817_v18, %v818_v19 }
0x1521   :  { %v820_v20 = vrot.slane %v819_v22, 2 }
0x1523   :  { %v821_v23 = vmax.f32 %v819_v22, %v820_v20 }
0x1525   :  { %v822_v25 = vrot.slane %v821_v23, 1 }
0x1527   :  { %v823_v27 = vmax.f32 %v821_v23, %v822_v25 }
0x1529   :  { %1430 = vpush %v823_v27 }
0x155a   :  { %s1431_s22 = spop %1430 }
0x155b   :  { %s1330_s23 = sadd.f32 -350.0, %s1431_s22 }
0x155d   :  { %s826_s24 = smax.f32 %s1450_s15, %s1330_s23 }
0x155e   :  { %v827_v26 = vstv %s826_s24 }
0x155f   :  { %v828_v29 = vsub.f32 %v814_v13, %v827_v26 }
0x1561   :  { %840 = vst [vmem:[%s2086_s6] sm:$0x1] %v828_v29 }
0x1568   :  { %v1883_v34 = vld [vmem:[%s2086_s6] sm:$0x1] }
0x1569   :  { %v855_v36 = vrot.slane %v1883_v34, %v1582_v15 }
0x156b   :  { %vm857_vm8 = vcmp.gt.f32.partialorder %v850_v21, %v855_v36  ;;  %v939_v36 = vld [vmem:[%s2084_s0 + $0x48] sm:$0xff] }
0x156c   :  { %vm858_vm9 = vmand %vm857_vm8, %vm56_vm0 }
0x156d   :  { %v1332_v1 = vsel %vm858_vm9, 1.0, %v1815_v30 }
0x156e   :  { %vm863_vm10 = vcmp.gt.f32.partialorder %v1332_v1, 0.0  ;;  %v861_v2 = vsub.f32 1.0, %v1332_v1 }
0x156f   :  { %v864_v38 = vsel %vm863_vm10, %v844_v33, -1e+30 }
0x1570   :  { %865 = vmax.xlane.f32.xlu0 %v864_v38  ;;  %v862_v9 = vmul.f32 %v861_v2, %v850_v21 }
0x15fd   :  { %v866_v44 = vpop.xlane.xlu0 %865 }
0x15fe   :  { %vm867_vm11 = vcmp.ge.f32.partialorder %v864_v38, %v866_v44  ;;  %v885_v35 = vrot.slane %v866_v44, 4 }
0x15ff   :  { %v868_v45 = vsel %vm867_vm11, %v1580_v14, 128 }
0x1600   :  { %v886_v46 = vmax.f32 %v866_v44, %v885_v35  ;;  %v870_v47 = vshra.s32 %v868_v45, 16  ;;  %v869_v51 = vand.u32 65535, %v868_v45  ;;  %v1930_v44 = vadd.f32 %v928_v43, %v846_v31 }
0x1602   :  { %v872_v37 = vcvt.s32.f32 %v870_v47  ;;  %v887_v48 = vrot.slane %v886_v46, 2  ;;  %v871_v53 = vcvt.s32.f32 %v869_v51 }
0x1604   :  { %873 = vmin.xlane.f32.xlu1 %v872_v37  ;;  %v888_v49 = vmax.f32 %v886_v46, %v887_v48 }
0x1606   :  { %v889_v39 = vrot.slane %v888_v49, 1 }
0x1608   :  { %v890_v50 = vmax.f32 %v888_v49, %v889_v39 }
0x160a   :  { %1432 = vpush %v890_v50 }
0x163b   :  { %s1433_s10 = spop %1432 }
0x163c   :  { %p892_p8 = scmp.gt.f32.partialorder %s1433_s10, -1e+29 }
0x163e   :  { %s893_s11 = scalar_select %p892_p8, 1, 0 }
0x1640   :  { %s894_s12 = scvt.s32.f32 %s893_s11 }
0x1642   :  { %s1899_s13 = smax.f32 %s894_s12, %s1863_s19  ;;  %v901_v8 = vstv %s894_s12 }
0x1691   :  { %v874_v52 = vpop.xlane.xlu1 %873 }
0x1692   :  { %vm875_vm12 = vcmp.eq.f32.partialorder %v872_v37, %v874_v52  ;;  %v880_v56 = vcvt.f32.s32 %v874_v52 }
0x1693   :  { %v876_v54 = vsel %vm875_vm12, %v871_v53, inf }
0x1694   :  { %877 = vmin.xlane.f32.xlu0 %v876_v54  ;;  %v881_v58 = vshll.u32 %v880_v56, 16 }
0x1698   :  { %896 = vmax.xlane.f32.xlu0 %v895_v55  ;;  %v990_v55 = vsel %vm56_vm0, %v939_v36, -1e+30 }
0x1721   :  { %v878_v57 = vpop.xlane.xlu0 %877 }
0x1722   :  { %v879_v59 = vcvt.f32.s32 %v878_v57 }
0x1724   :  { %v882_v61 = vadd.s32 %v881_v58, %v879_v59 }
0x1725   :  { %v897_v62 = vpop.xlane.xlu0 %896 }
0x1726   :  { %vm883_vm13 = vcmp.eq.s32.totalorder %v1580_v14, %v882_v61  ;;  %v898_v63 = vmul.f32 1.625, %v897_v62 }
0x1727   :  { %v884_v0 = vsel %vm883_vm13, %v1332_v1, 0.0 }
0x1728   :  { %v905_v3 = vmul.f32 %v904_v60, %v884_v0  ;;  %v930_v4 = vpack.c.bf16 %v884_v0, %v884_v0  ;;  %v899_v5 = vsub.f32 1.0, %v884_v0  ;;  %v999_v60 = vmul.f32 0.002, %v939_v36 }
0x172a   :  { %v906_v6 = vrot.slane %v905_v3, 4  ;;  %931 = vst [vmem:[%s2089_s5 + $0x20] sm:$0xf] %v930_v4  ;;  %v900_v7 = vmul.f32 %v899_v5, %v898_v63 }
0x172c   :  { %v902_v11 = vmul.f32 %v901_v8, %v900_v7  ;;  %v907_v10 = vadd.f32 %v906_v6, %v905_v3 }
0x172e   :  { %v903_v12 = vsub.f32 %v862_v9, %v902_v11  ;;  %v908_v16 = vrot.slane %v907_v10, 2 }
0x1730   :  { %v909_v13 = vadd.f32 %v908_v16, %v907_v10 }
0x1732   :  { %v910_v17 = vrot.slane %v909_v13, 1 }
0x1734   :  { %v911_v18 = vadd.f32 %v910_v17, %v909_v13 }
0x1736   :  { %v912_v19 = vadd.f32 %v911_v18, %v1883_v34  ;;  %v944_v34 = vmul.f32 0.99, %v903_v12 }
0x1738   :  { %v913_v22 = vsel %vm140_vm7, %v912_v19, -inf  ;;  %v945_v38 = vadd.f32 %v944_v34, %v939_v36 }
0x1739   :  { %914 = vmax.xlane.f32.xlu1 %v913_v22  ;;  %v940_v22 = vld [vmem:[%s2090_s1 + $0x24] sm:$0xf] }
0x17c6   :  { %v915_v20 = vpop.xlane.xlu1 %914 }
0x17c7   :  { %v916_v23 = vrot.slane %v915_v20, 4 }
0x17c9   :  { %v917_v25 = vmax.f32 %v915_v20, %v916_v23  ;;  %v941_v20 = vunpack.c.l.bf16 %v940_v22  ;;  %v1023_v23 = vmul.f32 0.99, %v1930_v44 }
0x17cb   :  { %v918_v27 = vrot.slane %v917_v25, 2 }
0x17cd   :  { %v919_v26 = vmax.f32 %v917_v25, %v918_v27  ;;  %v1024_v25 = vadd.f32 %v1023_v23, %v941_v20 }
0x17cf   :  { %v920_v29 = vrot.slane %v919_v26, 1  ;;  %v1337_v27 = vadd.f32 -0.3, %v1024_v25  ;;  %1035 = vst [vmem:[%s2093_s8] sm:$0xff] %v1024_v25 }
0x17d1   :  { %v921_v32 = vmax.f32 %v919_v26, %v920_v29  ;;  %v1028_v26 = vpack.c.bf16 %v1337_v27, %v1337_v27 }
0x17d3   :  { %1434 = vpush %v921_v32  ;;  %v1030_v29 = vrot.slane %v1028_v26, 4 }
0x17d5   :  { %1032 = vst [vmem:[#allocation2 + $0x20] sm:$0xf0] %v1030_v29 }
0x1804   :  { %s1435_s17 = spop %1434 }
0x1805   :  { %s1333_s18 = sadd.f32 -350.0, %s1435_s17 }
0x1807   :  { %s924_s2 = smax.f32 %s1450_s15, %s1333_s18 }
0x1808   :  { %v925_v33 = vstv %s924_s2 }
0x1809   :  { %v926_v21 = vsub.f32 %v912_v19, %v925_v33 }
0x180b   :  { %935 = vst [vmem:[%s2086_s6] sm:$0x1] %v926_v21 }
0x1812   :  { %v1919_v1 = vld [vmem:[%s2086_s6] sm:$0x1] }
0x1813   :  { %v950_v24 = vrot.slane %v1919_v1, %v1582_v15  ;;  %v1334_v15 = vadd.f32 -0.3, %v1930_v44 }
0x1815   :  { %vm952_vm14 = vcmp.gt.f32.partialorder %v945_v38, %v950_v24  ;;  %v933_v35 = vpack.c.bf16 %v1334_v15, %v1334_v15 }
0x1816   :  { %vm953_vm15 = vmand %vm952_vm14, %vm56_vm0 }
0x1817   :  { %v1335_v40 = vsel %vm953_vm15, 1.0, %v1815_v30  ;;  %934 = vst [vmem:[#allocation2 + $0x20] sm:$0xf] %v933_v35 }
0x1818   :  { %vm958_vm1 = vcmp.gt.f32.partialorder %v1335_v40, 0.0  ;;  %v956_v2 = vsub.f32 1.0, %v1335_v40 }
0x1819   :  { %v959_v28 = vsel %vm958_vm1, %v939_v36, -1e+30 }
0x181a   :  { %960 = vmax.xlane.f32.xlu1 %v959_v28  ;;  %v957_v9 = vmul.f32 %v956_v2, %v945_v38 }
0x18a7   :  { %v961_v45 = vpop.xlane.xlu1 %960 }
0x18a8   :  { %vm962_vm2 = vcmp.ge.f32.partialorder %v959_v28, %v961_v45  ;;  %v980_v30 = vrot.slane %v961_v45, 4 }
0x18a9   :  { %v963_v46 = vsel %vm962_vm2, %v1580_v14, 128 }
0x18aa   :  { %v981_v47 = vmax.f32 %v961_v45, %v980_v30  ;;  %v965_v37 = vshra.s32 %v963_v46, 16  ;;  %v964_v51 = vand.u32 65535, %v963_v46 }
0x18ac   :  { %v967_v48 = vcvt.s32.f32 %v965_v37  ;;  %v982_v49 = vrot.slane %v981_v47, 2  ;;  %v966_v53 = vcvt.s32.f32 %v964_v51 }
0x18ae   :  { %968 = vmin.xlane.f32.xlu0 %v967_v48  ;;  %v983_v39 = vmax.f32 %v981_v47, %v982_v49 }
0x18b0   :  { %v984_v50 = vrot.slane %v983_v39, 1 }
0x18b2   :  { %v985_v41 = vmax.f32 %v983_v39, %v984_v50 }
0x18b4   :  { %1436 = vpush %v985_v41 }
0x18e5   :  { %s1437_s4 = spop %1436 }
0x18e6   :  { %p987_p9 = scmp.gt.f32.partialorder %s1437_s4, -1e+29 }
0x18e8   :  { %s1934_s26 = scalar_select %p987_p9, 1, 0 }
0x18ea   :  { %s989_s27 = scvt.s32.f32 %s1934_s26 }
0x18ec   :  { %s1938_s28 = smax.f32 %s989_s27, %s1899_s13  ;;  %v996_v8 = vstv %s989_s27 }
0x18ed   :  { %p1037_p10 = scmp.gt.f32.partialorder %s1938_s28, 0.0 }
0x18ee   :  { %v1041_v28 = vld [vmem:[#allocation2] sm:$0xff] (%p1037_p10)  ;;  %v1042_v42 = vld [vmem:[#allocation2 + $0x8] sm:$0xff] (%p1037_p10)  ;;  %v1043_v44 = vld [vmem:[#allocation2 + $0x10] sm:$0xff] (%p1037_p10)  ;;  %vm1102_vm0 = vcmask (%p1037_p10), 654336  }
0x18ef   :  { %v1444_v31 = vld [vmem:[%s2089_s5] sm:$0xff] (%p1037_p10)   ;;  %v1445_v43 = vld [vmem:[%s2089_s5 + $0x8] sm:$0xff] (%p1037_p10)   ;;  %v1446_v15 = vld [vmem:[%s2089_s5 + $0x10] sm:$0xff] (%p1037_p10)  }
0x18f0   :  { %1364 = vmatprep.subr.bf16.mxu0 (%p1037_p10), %v1444_v31  ;;  %1390 = vmatprep.subr.bf16.mxu1 (%p1037_p10), %v1444_v31  ;;  %v1044_v35 = vld [vmem:[#allocation2 + $0x18] sm:$0xff] (%p1037_p10)  ;;  %v1045_v30 = vld [vmem:[#allocation2 + $0x20] sm:$0xff] (%p1037_p10)  ;;  %v1250_v25 = vld [vmem:[%s2087_s9 + $0x50] sm:$0xff] (%p1037_p10) }
0x18f1   :  { %1365 = vmatpush3.bf16.msra.mxu0 (%p1037_p10), %v1444_v31  ;;  %1395 = vmatpush3.bf16.msra.mxu1 (%p1037_p10), %v1444_v31  ;;  %v1447_v45 = vld [vmem:[%s2089_s5 + $0x18] sm:$0xff] (%p1037_p10)   ;;  %v1248_v29 = vld [vmem:[%s2087_s9 + $0x40] sm:$0xff] (%p1037_p10) }
0x18f2   :  { %1366 = vmatprep.subr.bf16.mxu0 (%p1037_p10), %v1445_v43  ;;  %1391 = vmatprep.subr.bf16.mxu1 (%p1037_p10), %v1445_v43 }
0x18f5   :  { %1367 = vmatpush3.bf16.msra.mxu0 (%p1037_p10), %v1445_v43  ;;  %1396 = vmatpush3.bf16.msra.mxu1 (%p1037_p10), %v1445_v43  ;;  %v1254_v43 = vld [vmem:[%s2087_s9 + $0x70] sm:$0xff] (%p1037_p10) }
0x18f6   :  { %1368 = vmatprep.subr.bf16.mxu0 (%p1037_p10), %v1446_v15  ;;  %1392 = vmatprep.subr.bf16.mxu1 (%p1037_p10), %v1446_v15 }
0x18f9   :  { %1369 = vmatpush3.bf16.msra.mxu0 (%p1037_p10), %v1446_v15  ;;  %1397 = vmatpush3.bf16.msra.mxu1 (%p1037_p10), %v1446_v15 }
0x18fa   :  { %1370 = vmatprep.subr.bf16.mxu0 (%p1037_p10), %v1447_v45  ;;  %1393 = vmatprep.subr.bf16.mxu1 (%p1037_p10), %v1447_v45 }
0x18fd   :  { %1371 = vmatpush3.bf16.msra.mxu0 (%p1037_p10), %v1447_v45  ;;  %1398 = vmatpush3.bf16.msra.mxu1 (%p1037_p10), %v1447_v45 }
0x193b   :  { %v969_v52 = vpop.xlane.xlu0 %968 }
0x193c   :  { %vm970_vm3 = vcmp.eq.f32.partialorder %v967_v48, %v969_v52  ;;  %v975_v56 = vcvt.f32.s32 %v969_v52 }
0x193d   :  { %v971_v54 = vsel %vm970_vm3, %v966_v53, inf  ;;  %v1242_v53 = vld [vmem:[%s2087_s9 + $0x10] sm:$0xff] (%p1037_p10) }
0x193e   :  { %972 = vmin.xlane.f32.xlu1 %v971_v54  ;;  %v976_v58 = vshll.u32 %v975_v56, 16  ;;  %v1240_v56 = vld [vmem:[%s2087_s9] sm:$0xff] (%p1037_p10) }
0x1942   :  { %991 = vmax.xlane.f32.xlu1 %v990_v55 }
0x19cb   :  { %v973_v57 = vpop.xlane.xlu1 %972 }
0x19cc   :  { %v974_v59 = vcvt.f32.s32 %v973_v57 }
0x19ce   :  { %v977_v61 = vadd.s32 %v976_v58, %v974_v59  ;;  %v1243_v59 = vld [vmem:[%s2087_s9 + $0x18] sm:$0xff] (%p1037_p10) }
0x19cf   :  { %v992_v62 = vpop.xlane.xlu1 %991 }
0x19d0   :  { %vm978_vm4 = vcmp.eq.s32.totalorder %v1580_v14, %v977_v61  ;;  %v993_v63 = vmul.f32 1.625, %v992_v62 }
0x19d1   :  { %v979_v0 = vsel %vm978_vm4, %v1335_v40, 0.0 }
0x19d2   :  { %v1000_v3 = vmul.f32 %v999_v60, %v979_v0  ;;  %v1025_v4 = vpack.c.bf16 %v979_v0, %v979_v0  ;;  %v994_v5 = vsub.f32 1.0, %v979_v0 }
0x19d4   :  { %v1001_v6 = vrot.slane %v1000_v3, 4  ;;  %1026 = vst [vmem:[%s2089_s5 + $0x24] sm:$0xf] %v1025_v4  ;;  %v995_v7 = vmul.f32 %v994_v5, %v993_v63  ;;  %v1241_v63 = vld [vmem:[%s2087_s9 + $0x8] sm:$0xff] (%p1037_p10) }
0x19d6   :  { %v997_v11 = vmul.f32 %v996_v8, %v995_v7  ;;  %v1002_v10 = vadd.f32 %v1001_v6, %v1000_v3  ;;  %v1246_v6 = vld [vmem:[%s2087_s9 + $0x30] sm:$0xff] (%p1037_p10) }
0x19d8   :  { %v998_v12 = vsub.f32 %v957_v9, %v997_v11  ;;  %v1003_v16 = vrot.slane %v1002_v10, 2  ;;  %v1244_v9 = vld [vmem:[%s2087_s9 + $0x20] sm:$0xff] (%p1037_p10) }
0x19da   :  { %1034 = vst [vmem:[%s2092_s7] sm:$0xff] %v998_v12  ;;  %v1004_v14 = vadd.f32 %v1003_v16, %v1002_v10  ;;  %v1247_v12 = vld [vmem:[%s2087_s9 + $0x38] sm:$0xff] (%p1037_p10) }
0x19db   :  { %v1448_v46 = vld [vmem:[%s2089_s5 + $0x20] sm:$0xff] (%p1037_p10)  }
0x19dc   :  { %v1005_v13 = vrot.slane %v1004_v14, 1  ;;  %1372 = vmatprep.subr.bf16.mxu0 (%p1037_p10), %v1448_v46  ;;  %1394 = vmatprep.subr.bf16.mxu1 (%p1037_p10), %v1448_v46 }
0x19dd   :  { %1373 = vmatpush3.bf16.msra.mxu0 (%p1037_p10), %v1448_v46  ;;  %1399 = vmatpush3.bf16.msra.mxu1 (%p1037_p10), %v1448_v46  ;;  %v1255_v46 = vld [vmem:[%s2087_s9 + $0x78] sm:$0xff] (%p1037_p10) }
0x19de   :  { %v1006_v17 = vadd.f32 %v1005_v13, %v1004_v14 }
0x19e0   :  { %v1007_v18 = vadd.f32 %v1006_v17, %v1919_v1  ;;  %v1245_v17 = vld [vmem:[%s2087_s9 + $0x28] sm:$0xff] (%p1037_p10) }
0x19e2   :  { %v1008_v19 = vsel %vm140_vm7, %v1007_v18, -inf }
0x19e3   :  { %1009 = vmax.xlane.f32.xlu0 %v1008_v19 }
0x1a10   :  { %1056 = vxpose.xlu0.c.b16.start [1/5] (short) (%p1037_p10), %v1041_v28, 128 }
0x1a14   :  { %1057 = vxpose.xlu0.c.b16.cont [2/5] (short) (%p1037_p10), %v1042_v42, 128 }
0x1a18   :  { %1058 = vxpose.xlu0.c.b16.cont [3/5] (short) (%p1037_p10), %v1043_v44, 128 }
0x1a1c   :  { %1059 = vxpose.xlu0.c.b16.cont [4/5] (short) (%p1037_p10), %v1044_v35, 128  ;;  %v1252_v35 = vld [vmem:[%s2087_s9 + $0x60] sm:$0xff] (%p1037_p10) }
0x1a20   :  { %1060 = vxpose.xlu0.c.b16.end [5/5] (short) (%p1037_p10), %v1045_v30, 128 }
0x1a70   :  { %v1010_v32 = vpop.xlane.xlu0 %1009 }
0x1a71   :  { %v1011_v33 = vrot.slane %v1010_v32, 4 }
0x1a73   :  { %v1012_v21 = vmax.f32 %v1010_v32, %v1011_v33 }
0x1a75   :  { %v1013_v34 = vrot.slane %v1012_v21, 2 }
0x1a76   :  { %v1064_v47 = vpop.trf.xlu0 (%p1037_p10) }
0x1a77   :  { %v1014_v36 = vmax.f32 %v1012_v21, %v1013_v34  ;;  %1374 = vmatprep.mubr.msk.bf16.mxu0 (%p1037_p10), %vm1102_vm0, %v1064_v47  ;;  %v1251_v21 = vld [vmem:[%s2087_s9 + $0x58] sm:$0xff] (%p1037_p10) }
0x1a79   :  { %v1015_v1 = vrot.slane %v1014_v36, 1 }
0x1a7a   :  { %v1065_v37 = vpop.trf.xlu0 (%p1037_p10) }
0x1a7b   :  { %v1016_v38 = vmax.f32 %v1014_v36, %v1015_v1  ;;  %1375 = vmatmul.mubr.msk.bf16.vlgmr.msra.gmra.mrb[0].mxu0 (%p1037_p10), %vm1102_vm0, %v1065_v37 }
0x1a7d   :  { %1438 = vpush %v1016_v38  ;;  %v1249_v38 = vld [vmem:[%s2087_s9 + $0x48] sm:$0xff] (%p1037_p10) }
0x1a7e   :  { %v1066_v48 = vpop.trf.xlu0 (%p1037_p10) }
0x1a7f   :  { %1378 = vmatprep.mubr.msk.bf16.mxu0 (%p1037_p10), %vm1102_vm0, %v1066_v48 }
0x1a82   :  { %v1067_v49 = vpop.trf.xlu0 (%p1037_p10) }
0x1a83   :  { %1379 = vmatmul.mubr.msk.bf16.gmra.mrb[4].mxu0 (%p1037_p10), %vm1102_vm0, %v1067_v49  ;;  %v1253_v49 = vld [vmem:[%s2087_s9 + $0x68] sm:$0xff] (%p1037_p10) }
0x1a86   :  { %v1068_v39 = vpop.trf.xlu0 (%p1037_p10) }
0x1a87   :  { %1382 = vmatprep.mubr.msk.bf16.mxu1 (%p1037_p10), %vm1102_vm0, %v1068_v39 }
0x1a8a   :  { %v1069_v50 = vpop.trf.xlu0 (%p1037_p10) }
0x1a8b   :  { %1383 = vmatmul.mubr.msk.bf16.vlgmr.msra.gmra.mrb[0].mxu1 (%p1037_p10), %vm1102_vm0, %v1069_v50 }
0x1a8e   :  { %v1070_v41 = vpop.trf.xlu0 (%p1037_p10) }
0x1a8f   :  { %1386 = vmatprep.mubr.msk.bf16.mxu1 (%p1037_p10), %vm1102_vm0, %v1070_v41 }
0x1a92   :  { %v1071_v51 = vpop.trf.xlu0 (%p1037_p10) }
0x1a93   :  { %1387 = vmatmul.mubr.msk.bf16.gmra.mrb[4].mxu1 (%p1037_p10), %vm1102_vm0, %v1071_v51 }
0x1aae   :  { %s1439_s1 = spop %1438 }
0x1aaf   :  { %s1336_s7 = sadd.f32 -350.0, %s1439_s1  ;;  %1040 = sbr.rel (!%p1037_p10) target bundleno = 7023 (0x1b6f), region = 33 }
0x1ab1   :  { %s1019_s16 = smax.f32 %s1450_s15, %s1336_s7 }
0x1ab2   :  { %v1020_v24 = vstv %s1019_s16 }
0x1ab3   :  { %v1021_v40 = vsub.f32 %v1007_v18, %v1020_v24 }
0x1ab5   :  { %1033 = vst [vmem:[%s2086_s6] sm:$0x1] %v1021_v40 }
0x1b4e   :  { %v1376_v52 = vpop.f32.mrb[0].mxu0 }
0x1b4f   :  { %v1226_v54 = vmul.f32 0.125, %v1376_v52  ;;  %v1161_v55 = vpop.f32.mrb[1].mxu0 }
0x1b50   :  { %v1224_v57 = vmul.f32 0.125, %v1161_v55  ;;  %v1377_v58 = vpop.f32.mrb[2].mxu0 }
0x1b51   :  { %v1258_v60 = vadd.f32 %v1242_v53, %v1226_v54  ;;  %v1227_v61 = vmul.f32 0.125, %v1377_v58  ;;  %v1164_v62 = vpop.f32.mrb[3].mxu0 }
0x1b52   :  { %v1256_v0 = vadd.f32 %v1240_v56, %v1224_v57  ;;  %v1225_v2 = vmul.f32 0.125, %v1164_v62 }
0x1b53   :  { %1274 = vst [vmem:[%s2087_s9 + $0x10] sm:$0xff] %v1258_v60  ;;  %v1259_v3 = vadd.f32 %v1243_v59, %v1227_v61 }
0x1b54   :  { %1272 = vst [vmem:[%s2087_s9] sm:$0xff] %v1256_v0  ;;  %v1257_v4 = vadd.f32 %v1241_v63, %v1225_v2 }
0x1b55   :  { %1275 = vst [vmem:[%s2087_s9 + $0x18] sm:$0xff] %v1259_v3 }
0x1b56   :  { %1273 = vst [vmem:[%s2087_s9 + $0x8] sm:$0xff] %v1257_v4  ;;  %v1380_v5 = vpop.f32.mrb[4].mxu0 }
0x1b57   :  { %v1230_v7 = vmul.f32 0.125, %v1380_v5  ;;  %v1177_v8 = vpop.f32.mrb[5].mxu0 }
0x1b58   :  { %v1228_v11 = vmul.f32 0.125, %v1177_v8  ;;  %v1381_v10 = vpop.f32.mrb[6].mxu0 }
0x1b59   :  { %v1262_v16 = vadd.f32 %v1246_v6, %v1230_v7  ;;  %v1231_v14 = vmul.f32 0.125, %v1381_v10  ;;  %v1180_v13 = vpop.f32.mrb[7].mxu0 }
0x1b5a   :  { %v1260_v18 = vadd.f32 %v1244_v9, %v1228_v11  ;;  %v1229_v19 = vmul.f32 0.125, %v1180_v13 }
0x1b5b   :  { %1278 = vst [vmem:[%s2087_s9 + $0x30] sm:$0xff] %v1262_v16  ;;  %v1263_v22 = vadd.f32 %v1247_v12, %v1231_v14 }
0x1b5c   :  { %1276 = vst [vmem:[%s2087_s9 + $0x20] sm:$0xff] %v1260_v18  ;;  %v1261_v20 = vadd.f32 %v1245_v17, %v1229_v19 }
0x1b5d   :  { %1279 = vst [vmem:[%s2087_s9 + $0x38] sm:$0xff] %v1263_v22 }
0x1b5e   :  { %1277 = vst [vmem:[%s2087_s9 + $0x28] sm:$0xff] %v1261_v20  ;;  %v1384_v23 = vpop.f32.mrb[0].mxu1 }
0x1b5f   :  { %v1234_v27 = vmul.f32 0.125, %v1384_v23  ;;  %v1193_v26 = vpop.f32.mrb[1].mxu1 }
0x1b60   :  { %v1232_v32 = vmul.f32 0.125, %v1193_v26  ;;  %v1385_v33 = vpop.f32.mrb[2].mxu1 }
0x1b61   :  { %v1266_v34 = vadd.f32 %v1250_v25, %v1234_v27  ;;  %v1235_v36 = vmul.f32 0.125, %v1385_v33  ;;  %v1196_v1 = vpop.f32.mrb[3].mxu1 }
0x1b62   :  { %v1264_v24 = vadd.f32 %v1248_v29, %v1232_v32  ;;  %v1233_v40 = vmul.f32 0.125, %v1196_v1 }
0x1b63   :  { %1282 = vst [vmem:[%s2087_s9 + $0x50] sm:$0xff] %v1266_v34  ;;  %v1267_v28 = vadd.f32 %v1251_v21, %v1235_v36 }
0x1b64   :  { %1280 = vst [vmem:[%s2087_s9 + $0x40] sm:$0xff] %v1264_v24  ;;  %v1265_v42 = vadd.f32 %v1249_v38, %v1233_v40 }
0x1b65   :  { %1283 = vst [vmem:[%s2087_s9 + $0x58] sm:$0xff] %v1267_v28 }
0x1b66   :  { %1281 = vst [vmem:[%s2087_s9 + $0x48] sm:$0xff] %v1265_v42  ;;  %v1388_v31 = vpop.f32.mrb[4].mxu1 }
0x1b67   :  { %v1238_v44 = vmul.f32 0.125, %v1388_v31  ;;  %v1209_v15 = vpop.f32.mrb[5].mxu1 }
0x1b68   :  { %v1236_v45 = vmul.f32 0.125, %v1209_v15  ;;  %v1389_v30 = vpop.f32.mrb[6].mxu1 }
0x1b69   :  { %v1270_v47 = vadd.f32 %v1254_v43, %v1238_v44  ;;  %v1239_v37 = vmul.f32 0.125, %v1389_v30  ;;  %v1212_v48 = vpop.f32.mrb[7].mxu1 }
0x1b6a   :  { %v1268_v39 = vadd.f32 %v1252_v35, %v1236_v45  ;;  %v1237_v50 = vmul.f32 0.125, %v1212_v48 }
0x1b6b   :  { %1286 = vst [vmem:[%s2087_s9 + $0x70] sm:$0xff] %v1270_v47  ;;  %v1271_v41 = vadd.f32 %v1255_v46, %v1239_v37 }
0x1b6c   :  { %1284 = vst [vmem:[%s2087_s9 + $0x60] sm:$0xff] %v1268_v39  ;;  %v1269_v51 = vadd.f32 %v1253_v49, %v1237_v50 }
0x1b6d   :  { %1287 = vst [vmem:[%s2087_s9 + $0x78] sm:$0xff] %v1271_v41 }
0x1b6e   :  { %1285 = vst [vmem:[%s2087_s9 + $0x68] sm:$0xff] %v1269_v51 }
0x1b6f PF:  {}

</bundles_post_ra>
